<compile_context>
chip_gen: v7x
topology: tpu7x:2x2x1
jax: 0.10.0
libtpu: 0.0.40
codegen_flags: <defaults>
</compile_context>

<pallas_src>
import jax
import jax.numpy as jnp
from jax.experimental import pallas as pl
from jax.experimental.pallas import tpu as pltpu

BERT_EMB = 768
NEG_SLOPE = 0.01  # PyTorch nn.LeakyReLU default

_MAX_TILE_1TC = 2048  # single-TC (v5e/v6e): one big step, ~25 MiB activations
_MAX_TILE_2TC = 1024  # dual-TC (v7x): keep 2x2 act buffers + weights < ~48 MiB


def mlp_kernel(x_ref, w1_ref, b1_ref, w2_ref, b2_ref, w3_ref, b3_ref, o_ref):
    """Fused 3x(Linear + LeakyReLU).

    MXU accumulates in f32; bias-add + LeakyReLU are done in f32 (v5e has no
    bf16 VPU), then the intermediate fed to the next matmul is stored in the
    weight dtype (bf16 by default) to halve VMEM traffic between layers.
    """
    cdt = w1_ref.dtype  # operand/compute dtype for the MXU inputs

    def layer(h, w_ref, b_ref):
        z = jnp.dot(h, w_ref[...], preferred_element_type=jnp.float32)
        z = z + b_ref[...]                      # f32 bias
        return jnp.where(z > 0, z, NEG_SLOPE * z)

    h = x_ref[...].astype(cdt)
    h = layer(h, w1_ref, b1_ref).astype(cdt)    # bf16 intermediate
    h = layer(h, w2_ref, b2_ref).astype(cdt)    # bf16 intermediate
    h = layer(h, w3_ref, b3_ref)                # f32 result
    o_ref[...] = h.astype(o_ref.dtype)


def _tensorcores_per_chip():
    devs = jax.devices()
    kind = devs[0].device_kind.lower() if devs else ""
    return 2 if ("v7" in kind or "tpu7" in kind) else 1


def _plan_grid(B, n_cores):
    """Pick (tile_b, num_steps).

    - Small/latency batches (B<=256): one step regardless of chip -- the
      weight DMA dominates, extra steps only add ~0.35us each.
    - Single-TC chips (v5e/v6e): one step up to 2048 rows (no per-step
      overhead, weights resident).
    - Dual-TC (v7x): split with an EVEN number of steps so both cores get
      equal work; ragged last block is handled by the cdiv grid (no padding).
    """
    max_tile = _MAX_TILE_1TC if n_cores == 1 else _MAX_TILE_2TC
    if B <= 256 or (n_cores == 1 and B <= max_tile):
        return B, 1
    target_steps = max(n_cores, pl.cdiv(B, max_tile))
    if n_cores == 2 and target_steps % 2:
        target_steps += 1                       # even split for megacore balance
    tile_b = ((pl.cdiv(B, target_steps) + 7) // 8) * 8  # sublane-aligned
    return tile_b, pl.cdiv(B, tile_b)


def _build_call(B, D, tile_b, steps, x_dtype, w_dtype):
    w_spec = pl.BlockSpec((D, D), lambda i: (0, 0))   # weights resident
    b_spec = pl.BlockSpec((1, D), lambda i: (0, 0))

    wbytes = jnp.dtype(w_dtype).itemsize
    xbytes = jnp.dtype(x_dtype).itemsize
    cost = pl.CostEstimate(
        flops=2 * 3 * B * D * D,
        transcendentals=0,
        bytes_accessed=(B * D * xbytes          # x in
                        + B * D * 4             # out (f32)
                        + 3 * D * D * wbytes    # weights
                        + 3 * D * 4),           # biases (f32)
    )

    return pl.pallas_call(
        mlp_kernel,
        out_shape=jax.ShapeDtypeStruct((B, D), jnp.float32),
        grid=(steps,),
        in_specs=[
            pl.BlockSpec((tile_b, D), lambda i: (i, 0)),
            w_spec, b_spec,
            w_spec, b_spec,
            w_spec, b_spec,
        ],
        out_specs=pl.BlockSpec((tile_b, D), lambda i: (i, 0)),
        compiler_params=pltpu.CompilerParams(
            dimension_semantics=("parallel",),
            vmem_limit_bytes=48 * 1024 * 1024,   # < v7x's 64 MiB per-TC VMEM
        ),
        cost_estimate=cost,
    )


def prepare_params(params, weight_dtype=jnp.bfloat16):
    """Cast weights ONCE to the MXU operand dtype; cache the result.

    Pass weight_dtype=jnp.float32 for strict parity with the f32 nn.Linear
    semantics (at a reduced MXU rate).  Biases stay f32 either way.
    """
    out = dict(params)
    for k in ("w1", "w2", "w3"):
        out[k] = params[k].astype(weight_dtype)
    return out


def transformation_learner(x, params):
    """Inference forward of MyModel.transformation_learner.

    x: [B, 768] f32.  params: dict w1,b1,w2,b2,w3,b3 with weights [in, out]
    already in the desired operand dtype (use prepare_params(); no per-call
    casts happen here).
    Dropout layers are identity (inference only).
    """
    # TODO(synk): training-mode dropout (PRNG mask via pltpu.prng_*) not implemented.
    B, D = x.shape
    assert D == BERT_EMB
    tile_b, steps = _plan_grid(B, _tensorcores_per_chip())
    return _build_call(B, D, tile_b, steps, x.dtype, params["w1"].dtype)(
        x,
        params["w1"], params["b1"],
        params["w2"], params["b2"],
        params["w3"], params["b3"],
    )


def init_params(key):
    """Deterministic init mimicking nn.Linear's uniform(-1/sqrt(fan_in), +)."""
    bound = 1.0 / jnp.sqrt(jnp.float32(BERT_EMB))
    ks = jax.random.split(key, 6)

    def u(k, shape):
        return jax.random.uniform(k, shape, jnp.float32, -bound, bound)

    return {
        "w1": u(ks[0], (BERT_EMB, BERT_EMB)),  # [in, out] (transpose of torch)
        "b1": u(ks[1], (1, BERT_EMB)),
        "w2": u(ks[2], (BERT_EMB, BERT_EMB)),
        "b2": u(ks[3], (1, BERT_EMB)),
        "w3": u(ks[4], (BERT_EMB, BERT_EMB)),
        "b3": u(ks[5], (1, BERT_EMB)),
    }


def reference(x, p, w_dtype=jnp.float32):
    """Pure-JAX reference; w_dtype selects matmul-operand precision."""
    def layer(h, w, b):
        z = jnp.dot(h.astype(w_dtype), w.astype(w_dtype),
                    preferred_element_type=jnp.float32) + b
        return jnp.where(z > 0, z, NEG_SLOPE * z)

    h = layer(x, p["w1"], p["b1"])
    h = layer(h, p["w2"], p["b2"])
    h = layer(h, p["w3"], p["b3"])
    return h


if __name__ == "__main__":
    key = jax.random.PRNGKey(0)
    k_param, k_x = jax.random.split(key)

    B = 16  # small demo batch; feature dim fixed at 768 by the module
    params_f32 = init_params(k_param)
    params = prepare_params(params_f32)  # bf16 weights, cast once & cached
    x = jax.random.normal(k_x, (B, BERT_EMB), dtype=jnp.float32)

    out = jax.block_until_ready(transformation_learner(x, params))
    assert out.shape == (B, BERT_EMB)

    # Matched-precision reference (bf16 operands, f32 accumulation).
    ref_bf16 = reference(x, params_f32, w_dtype=jnp.bfloat16)
    assert jnp.allclose(out, ref_bf16, atol=5e-3, rtol=5e-3), \
        "mismatch vs bf16 reference"

    # Loose sanity check against the full-f32 semantics of the PyTorch module.
    ref_f32 = reference(x, params_f32, w_dtype=jnp.float32)
    assert jnp.allclose(out, ref_f32, atol=5e-2, rtol=5e-2), \
        "mismatch vs f32 reference"

    print("KERNEL_OK")
</pallas_src>

<mosaic_0001>
module attributes {stable_mosaic.version = 11 : i64} {
  func.func @mlp_kernel(%arg0: i32, %arg1: memref<16x768xf32, #tpu.memory_space<vmem>>, %arg2: memref<768x768xbf16, #tpu.memory_space<vmem>>, %arg3: memref<1x768xf32, #tpu.memory_space<vmem>>, %arg4: memref<768x768xbf16, #tpu.memory_space<vmem>>, %arg5: memref<1x768xf32, #tpu.memory_space<vmem>>, %arg6: memref<768x768xbf16, #tpu.memory_space<vmem>>, %arg7: memref<1x768xf32, #tpu.memory_space<vmem>>, %arg8: memref<16x768xf32, #tpu.memory_space<vmem>>) attributes {dimension_semantics = [#tpu.dimension_semantics<parallel>], iteration_bounds = array<i64: 1>, scalar_prefetch = 0 : i64, scratch_operands = 0 : i64, tpu.core_type = #tpu.core_type<tc>, window_params = [{transform_indices = @transform_0, window_bounds = array<i64: 16, 768>}, {pipeline_mode = #tpu.pipeline_mode<synchronous>, transform_indices = @transform_1, window_bounds = array<i64: 768, 768>}, {pipeline_mode = #tpu.pipeline_mode<synchronous>, transform_indices = @transform_2, window_bounds = array<i64: 1, 768>}, {pipeline_mode = #tpu.pipeline_mode<synchronous>, transform_indices = @transform_3, window_bounds = array<i64: 768, 768>}, {pipeline_mode = #tpu.pipeline_mode<synchronous>, transform_indices = @transform_4, window_bounds = array<i64: 1, 768>}, {pipeline_mode = #tpu.pipeline_mode<synchronous>, transform_indices = @transform_5, window_bounds = array<i64: 768, 768>}, {pipeline_mode = #tpu.pipeline_mode<synchronous>, transform_indices = @transform_6, window_bounds = array<i64: 1, 768>}, {transform_indices = @transform_7, window_bounds = array<i64: 16, 768>}]} {
    %c0 = arith.constant 0 : index
    %c0_0 = arith.constant 0 : index
    %0 = vector.load %arg1[%c0, %c0_0] : memref<16x768xf32, #tpu.memory_space<vmem>>, vector<16x768xf32>
    %1 = arith.truncf %0 : vector<16x768xf32> to vector<16x768xbf16>
    %c0_1 = arith.constant 0 : index
    %c0_2 = arith.constant 0 : index
    %2 = vector.load %arg2[%c0_1, %c0_2] : memref<768x768xbf16, #tpu.memory_space<vmem>>, vector<768x768xbf16>
    %cst = arith.constant dense<0.000000e+00> : vector<16x768xf32>
    %3 = tpu.matmul %1, %2, %cst {dimension_numbers = #tpu.dot_dimension_numbers<[1], [0], [0], [1], [0, 0, 1, 1], [], []>} : vector<16x768xbf16>, vector<768x768xbf16>, vector<16x768xf32> -> vector<16x768xf32>
    %c0_3 = arith.constant 0 : index
    %c0_4 = arith.constant 0 : index
    %4 = vector.load %arg3[%c0_3, %c0_4] : memref<1x768xf32, #tpu.memory_space<vmem>>, vector<1x768xf32>
    %5 = vector.broadcast %4 : vector<1x768xf32> to vector<16x768xf32>
    %6 = arith.addf %3, %5 : vector<16x768xf32>
    %cst_5 = arith.constant 0.000000e+00 : f32
    %7 = vector.broadcast %cst_5 : f32 to vector<16x768xf32>
    %8 = arith.cmpf ogt, %6, %7 : vector<16x768xf32>
    %cst_6 = arith.constant 0.00999999977 : f32
    %9 = vector.broadcast %cst_6 : f32 to vector<16x768xf32>
    %10 = arith.mulf %9, %6 : vector<16x768xf32>
    %11 = arith.select %8, %6, %10 : vector<16x768xi1>, vector<16x768xf32>
    %12 = arith.truncf %11 : vector<16x768xf32> to vector<16x768xbf16>
    %c0_7 = arith.constant 0 : index
    %c0_8 = arith.constant 0 : index
    %13 = vector.load %arg4[%c0_7, %c0_8] : memref<768x768xbf16, #tpu.memory_space<vmem>>, vector<768x768xbf16>
    %cst_9 = arith.constant dense<0.000000e+00> : vector<16x768xf32>
    %14 = tpu.matmul %12, %13, %cst_9 {dimension_numbers = #tpu.dot_dimension_numbers<[1], [0], [0], [1], [0, 0, 1, 1], [], []>} : vector<16x768xbf16>, vector<768x768xbf16>, vector<16x768xf32> -> vector<16x768xf32>
    %c0_10 = arith.constant 0 : index
    %c0_11 = arith.constant 0 : index
    %15 = vector.load %arg5[%c0_10, %c0_11] : memref<1x768xf32, #tpu.memory_space<vmem>>, vector<1x768xf32>
    %16 = vector.broadcast %15 : vector<1x768xf32> to vector<16x768xf32>
    %17 = arith.addf %14, %16 : vector<16x768xf32>
    %cst_12 = arith.constant 0.000000e+00 : f32
    %18 = vector.broadcast %cst_12 : f32 to vector<16x768xf32>
    %19 = arith.cmpf ogt, %17, %18 : vector<16x768xf32>
    %cst_13 = arith.constant 0.00999999977 : f32
    %20 = vector.broadcast %cst_13 : f32 to vector<16x768xf32>
    %21 = arith.mulf %20, %17 : vector<16x768xf32>
    %22 = arith.select %19, %17, %21 : vector<16x768xi1>, vector<16x768xf32>
    %23 = arith.truncf %22 : vector<16x768xf32> to vector<16x768xbf16>
    %c0_14 = arith.constant 0 : index
    %c0_15 = arith.constant 0 : index
    %24 = vector.load %arg6[%c0_14, %c0_15] : memref<768x768xbf16, #tpu.memory_space<vmem>>, vector<768x768xbf16>
    %cst_16 = arith.constant dense<0.000000e+00> : vector<16x768xf32>
    %25 = tpu.matmul %23, %24, %cst_16 {dimension_numbers = #tpu.dot_dimension_numbers<[1], [0], [0], [1], [0, 0, 1, 1], [], []>} : vector<16x768xbf16>, vector<768x768xbf16>, vector<16x768xf32> -> vector<16x768xf32>
    %c0_17 = arith.constant 0 : index
    %c0_18 = arith.constant 0 : index
    %26 = vector.load %arg7[%c0_17, %c0_18] : memref<1x768xf32, #tpu.memory_space<vmem>>, vector<1x768xf32>
    %27 = vector.broadcast %26 : vector<1x768xf32> to vector<16x768xf32>
    %28 = arith.addf %25, %27 : vector<16x768xf32>
    %cst_19 = arith.constant 0.000000e+00 : f32
    %29 = vector.broadcast %cst_19 : f32 to vector<16x768xf32>
    %30 = arith.cmpf ogt, %28, %29 : vector<16x768xf32>
    %cst_20 = arith.constant 0.00999999977 : f32
    %31 = vector.broadcast %cst_20 : f32 to vector<16x768xf32>
    %32 = arith.mulf %31, %28 : vector<16x768xf32>
    %33 = arith.select %30, %28, %32 : vector<16x768xi1>, vector<16x768xf32>
    %c0_21 = arith.constant 0 : index
    %c0_22 = arith.constant 0 : index
    %34 = vector.load %arg8[%c0_21, %c0_22] : memref<16x768xf32, #tpu.memory_space<vmem>>, vector<16x768xf32>
    tpu.vector_store %arg8[%c0_21, %c0_22], %33 {strides = array<i32>} : memref<16x768xf32, #tpu.memory_space<vmem>>, vector<16x768xf32>,
    return
  }
  func.func @transform_0(%arg0: i32) -> (i32, i32) {
    %c0_i32 = arith.constant 0 : i32
    %c0_i32_0 = arith.constant 0 : i32
    return %arg0, %c0_i32 : i32, i32
  }
  func.func @transform_1(%arg0: i32) -> (i32, i32) {
    %c0_i32 = arith.constant 0 : i32
    %c0_i32_0 = arith.constant 0 : i32
    %c0_i32_1 = arith.constant 0 : i32
    return %c0_i32, %c0_i32_0 : i32, i32
  }
  func.func @transform_2(%arg0: i32) -> (i32, i32) {
    %c0_i32 = arith.constant 0 : i32
    %c0_i32_0 = arith.constant 0 : i32
    %c0_i32_1 = arith.constant 0 : i32
    return %c0_i32, %c0_i32_0 : i32, i32
  }
  func.func @transform_3(%arg0: i32) -> (i32, i32) {
    %c0_i32 = arith.constant 0 : i32
    %c0_i32_0 = arith.constant 0 : i32
    %c0_i32_1 = arith.constant 0 : i32
    return %c0_i32, %c0_i32_0 : i32, i32
  }
  func.func @transform_4(%arg0: i32) -> (i32, i32) {
    %c0_i32 = arith.constant 0 : i32
    %c0_i32_0 = arith.constant 0 : i32
    %c0_i32_1 = arith.constant 0 : i32
    return %c0_i32, %c0_i32_0 : i32, i32
  }
  func.func @transform_5(%arg0: i32) -> (i32, i32) {
    %c0_i32 = arith.constant 0 : i32
    %c0_i32_0 = arith.constant 0 : i32
    %c0_i32_1 = arith.constant 0 : i32
    return %c0_i32, %c0_i32_0 : i32, i32
  }
  func.func @transform_6(%arg0: i32) -> (i32, i32) {
    %c0_i32 = arith.constant 0 : i32
    %c0_i32_0 = arith.constant 0 : i32
    %c0_i32_1 = arith.constant 0 : i32
    return %c0_i32, %c0_i32_0 : i32, i32
  }
  func.func @transform_7(%arg0: i32) -> (i32, i32) {
    %c0_i32 = arith.constant 0 : i32
    %c0_i32_0 = arith.constant 0 : i32
    return %arg0, %c0_i32 : i32, i32
  }
}

</mosaic_0001>

<bundles_post_ra>
// kernel: tpu_custom_call.1
= control target key start
LH: loop header
LB: loop body
LE: loop exit
PB: predicated region body
PF: predicated region fallthrough
CT: control target
= control target key end

     0   :  { %12 = vsyncpa [#allocation3], 0  ;;  %s9513_s0 = inlined_call_operand.hbm [shape: f32[16,768], index: 0, kind: input, shape index: {}]   ;;  %s9514_s1 = inlined_call_operand.hbm [shape: bf16[768,768], index: 1, kind: input, shape index: {}]   ;;  %s9515_s2 = inlined_call_operand.hbm [shape: f32[1,768], index: 2, kind: input, shape index: {}]   ;;  %s9516_s3 = inlined_call_operand.hbm [shape: bf16[768,768], index: 3, kind: input, shape index: {}]   ;;  %s9517_s4 = inlined_call_operand.hbm [shape: f32[1,768], index: 4, kind: input, shape index: {}]   ;;  %s9518_s5 = inlined_call_operand.hbm [shape: bf16[768,768], index: 5, kind: input, shape index: {}]   ;;  %s9519_s6 = inlined_call_operand.hbm [shape: f32[1,768], index: 6, kind: input, shape index: {}]   ;;  %s9520_s7 = inlined_call_operand.hbm [shape: f32[16,768], index: 7, kind: output, shape index: {}]  }
   0x1   :  { %13 = vsyncpa [#allocation6], 0 }
   0x2   :  { %14 = vsyncpa [#allocation9], 0 }
   0x3   :  { %15 = vsyncpa [#allocation12], 0 }
   0x4   :  { %16 = vsyncpa [#allocation4], 0  ;;  %s9194_s24 = smov [#allocation5]   ;;  %s9008_s28 = scalar_lea.hbm %s9514_s1, 36864 }
   0x5   :  { %s34_s25 = sshll.u32 %s9194_s24, 4  ;;  %p9009_p0 = scmp.ne.s32.totalorder %s9514_s1, %s9008_s28  ;;  %s35_s25 = int_to_ptr.vmem [resolvable:$true] %s34_s25 }
   0x6   :  { %p9012_p1 = scmp.lt.u32.totalorder %s9008_s28, %s9514_s1 }
   0x8   :  { %p9014_p2 = pnand %p9012_p1, %p9009_p0 }
   0xa   :  { %9017 = shalt.err (!%p9014_p2)
}
   0xb   :  { %s9018_s10 = scalar_lea.vmem %s35_s25, 36864  ;;  %p9023_p4 = scmp.lt.s32.totalorder %s35_s25, %s35_s25 }
   0xc   :  { %p9019_p3 = scmp.ne.s32.totalorder %s35_s25, %s9018_s10  ;;  %p9024_p5 = scmp.lt.s32.totalorder %s9018_s10, %s9018_s10 }
   0xe   :  { %p9025_p6 = por %p9024_p5, %p9023_p4 }
  0x10   :  { %p9026_p7 = pnand %p9025_p6, %p9019_p3 }
  0x12   :  { %9029 = shalt.err (!%p9026_p7)
}
  0x13   :  { %s9195_s11 = smov 384   ;;  %s9196_s12 = smov 24  }
  0x14   :  { %40 = dma.hbm_to_vmem [thread:$0]  %s9514_s1, 36864, %s35_s25, [#allocation6], %s9195_s11, %s9195_s11, %s9196_s12  }
  0x15   :  { %s9197_s15 = smov [#allocation8]   ;;  %s9198_s17 = smov [#allocation11]  }
  0x16   :  { %s56_s16 = sshll.u32 %s9197_s15, 4  ;;  %s78_s18 = sshll.u32 %s9198_s17, 4  ;;  %s57_s16 = int_to_ptr.vmem [resolvable:$true] %s56_s16  ;;  %s79_s18 = int_to_ptr.vmem [resolvable:$true] %s78_s18 }
  0x17   :  { %s9030_s21 = scalar_lea.hbm %s9516_s3, 36864 }
  0x18   :  { %p9031_p8 = scmp.ne.s32.totalorder %s9516_s3, %s9030_s21  ;;  %p9034_p9 = scmp.lt.u32.totalorder %s9030_s21, %s9516_s3 }
  0x1a   :  { %p9036_p10 = pnand %p9034_p9, %p9031_p8 }
  0x1c   :  { %9039 = shalt.err (!%p9036_p10)
}
  0x1d   :  { %s9040_s1 = scalar_lea.vmem %s57_s16, 36864  ;;  %p9045_p12 = scmp.lt.s32.totalorder %s57_s16, %s57_s16 }
  0x1e   :  { %p9041_p11 = scmp.ne.s32.totalorder %s57_s16, %s9040_s1  ;;  %p9046_p13 = scmp.lt.s32.totalorder %s9040_s1, %s9040_s1 }
  0x20   :  { %p9047_p0 = por %p9046_p13, %p9045_p12 }
  0x22   :  { %p9048_p1 = pnand %p9047_p0, %p9041_p11 }
  0x24   :  { %9051 = shalt.err (!%p9048_p1)
}
  0x25   :  { %62 = dma.hbm_to_vmem [thread:$0]  %s9516_s3, 36864, %s57_s16, [#allocation9], %s9195_s11, %s9195_s11, %s9196_s12  }
  0x26   :  { %s9052_s30 = scalar_lea.hbm %s9518_s5, 36864 }
  0x27   :  { %p9053_p2 = scmp.ne.s32.totalorder %s9518_s5, %s9052_s30  ;;  %p9056_p3 = scmp.lt.u32.totalorder %s9052_s30, %s9518_s5 }
  0x29   :  { %p9058_p4 = pnand %p9056_p3, %p9053_p2 }
  0x2b   :  { %9061 = shalt.err (!%p9058_p4)
}
  0x2c   :  { %s9062_s14 = scalar_lea.vmem %s79_s18, 36864  ;;  %p9067_p6 = scmp.lt.s32.totalorder %s79_s18, %s79_s18 }
  0x2d   :  { %p9063_p5 = scmp.ne.s32.totalorder %s79_s18, %s9062_s14  ;;  %p9068_p7 = scmp.lt.s32.totalorder %s9062_s14, %s9062_s14 }
  0x2f   :  { %p9069_p8 = por %p9068_p7, %p9067_p6 }
  0x31   :  { %p9070_p9 = pnand %p9069_p8, %p9063_p5 }
  0x33   :  { %9073 = shalt.err (!%p9070_p9)
}
  0x34   :  { %84 = dma.hbm_to_vmem [thread:$0]  %s9518_s5, 36864, %s79_s18, [#allocation12], %s9195_s11, %s9195_s11, %s9196_s12  }
  0x35   :  { %s9199_s16 = smov [#allocation2]   ;;  %s9074_s21 = scalar_lea.hbm %s9513_s0, 1536 }
  0x36   :  { %s22_s17 = sshll.u32 %s9199_s16, 4  ;;  %p9075_p10 = scmp.ne.s32.totalorder %s9513_s0, %s9074_s21  ;;  %s23_s17 = int_to_ptr.vmem [resolvable:$true] %s22_s17 }
  0x37   :  { %p9078_p11 = scmp.lt.u32.totalorder %s9074_s21, %s9513_s0 }
  0x39   :  { %p9080_p12 = pnand %p9078_p11, %p9075_p10 }
  0x3b   :  { %9083 = shalt.err (!%p9080_p12)
}
  0x3c   :  { %s9084_s1 = scalar_lea.vmem %s23_s17, 1536  ;;  %p9089_p0 = scmp.lt.s32.totalorder %s23_s17, %s23_s17 }
  0x3d   :  { %p9085_p13 = scmp.ne.s32.totalorder %s23_s17, %s9084_s1  ;;  %p9090_p1 = scmp.lt.s32.totalorder %s9084_s1, %s9084_s1 }
  0x3f   :  { %p9091_p2 = por %p9090_p1, %p9089_p0 }
  0x41   :  { %p9092_p3 = pnand %p9091_p2, %p9085_p13 }
  0x43   :  { %9095 = shalt.err (!%p9092_p3)
}
  0x44   :  { %s9200_s5 = smov 768   ;;  %s9201_s11 = smov 48  }
  0x45   :  { %28 = dma.hbm_to_vmem [thread:$0]  %s9513_s0, 1536, %s23_s17, [#allocation3], %s9200_s5, %s9200_s5, %s9201_s11  }
  0x46   :  { %s9202_s25 = smov [#allocation7]   ;;  %s9203_s28 = smov [#allocation10]  }
  0x47   :  { %s47_s27 = sshll.u32 %s9202_s25, 4  ;;  %s69_s29 = sshll.u32 %s9203_s28, 4  ;;  %s48_s27 = int_to_ptr.vmem [resolvable:$true] %s47_s27  ;;  %s70_s29 = int_to_ptr.vmem [resolvable:$true] %s69_s29 }
  0x48   :  { %s9096_s9 = scalar_lea.hbm %s9515_s2, 96 }
  0x49   :  { %p9097_p4 = scmp.ne.s32.totalorder %s9515_s2, %s9096_s9  ;;  %p9100_p5 = scmp.lt.u32.totalorder %s9096_s9, %s9515_s2 }
  0x4b   :  { %p9102_p6 = pnand %p9100_p5, %p9097_p4 }
  0x4d   :  { %9105 = shalt.err (!%p9102_p6)
}
  0x4e   :  { %s9106_s0 = scalar_lea.vmem %s48_s27, 96  ;;  %p9111_p8 = scmp.lt.s32.totalorder %s48_s27, %s48_s27 }
  0x4f   :  { %p9107_p7 = scmp.ne.s32.totalorder %s48_s27, %s9106_s0  ;;  %p9112_p9 = scmp.lt.s32.totalorder %s9106_s0, %s9106_s0 }
  0x51   :  { %p9113_p10 = por %p9112_p9, %p9111_p8 }
  0x53   :  { %p9114_p11 = pnand %p9113_p10, %p9107_p7 }
  0x55   :  { %9117 = shalt.err (!%p9114_p11)
}
  0x56   :  { %50 = dma.hbm_to_vmem [thread:$0]  %s9515_s2, 96, %s48_s27, [#allocation6]  }
  0x57   :  { %s9118_s20 = scalar_lea.hbm %s9517_s4, 96 }
  0x58   :  { %p9119_p12 = scmp.ne.s32.totalorder %s9517_s4, %s9118_s20  ;;  %p9122_p13 = scmp.lt.u32.totalorder %s9118_s20, %s9517_s4 }
  0x5a   :  { %p9124_p0 = pnand %p9122_p13, %p9119_p12 }
  0x5c   :  { %9127 = shalt.err (!%p9124_p0)
}
  0x5d   :  { %s9128_s26 = scalar_lea.vmem %s70_s29, 96  ;;  %p9133_p2 = scmp.lt.s32.totalorder %s70_s29, %s70_s29 }
  0x5e   :  { %p9129_p1 = scmp.ne.s32.totalorder %s70_s29, %s9128_s26  ;;  %p9134_p3 = scmp.lt.s32.totalorder %s9128_s26, %s9128_s26 }
  0x60   :  { %p9135_p4 = por %p9134_p3, %p9133_p2 }
  0x62   :  { %p9136_p5 = pnand %p9135_p4, %p9129_p1 }
  0x64   :  { %9139 = shalt.err (!%p9136_p5)
}
  0x65   :  { %72 = dma.hbm_to_vmem [thread:$0]  %s9517_s4, 96, %s70_s29, [#allocation9]  }
  0x66   :  { %s9204_s12 = smov [#allocation13]   ;;  %s9140_s28 = scalar_lea.hbm %s9519_s6, 96 }
  0x67   :  { %s91_s18 = sshll.u32 %s9204_s12, 4  ;;  %p9141_p6 = scmp.ne.s32.totalorder %s9519_s6, %s9140_s28  ;;  %s92_s18 = int_to_ptr.vmem [resolvable:$true] %s91_s18 }
  0x68   :  { %p9144_p7 = scmp.lt.u32.totalorder %s9140_s28, %s9519_s6 }
  0x6a   :  { %p9146_p8 = pnand %p9144_p7, %p9141_p6 }
  0x6c   :  { %9149 = shalt.err (!%p9146_p8)
}
  0x6d   :  { %s9150_s13 = scalar_lea.vmem %s92_s18, 96  ;;  %p9155_p10 = scmp.lt.s32.totalorder %s92_s18, %s92_s18 }
  0x6e   :  { %p9151_p9 = scmp.ne.s32.totalorder %s92_s18, %s9150_s13  ;;  %p9156_p11 = scmp.lt.s32.totalorder %s9150_s13, %s9150_s13 }
  0x70   :  { %p9157_p12 = por %p9156_p11, %p9155_p10 }
  0x72   :  { %p9158_p13 = pnand %p9157_p12, %p9151_p9 }
  0x74   :  { %9161 = shalt.err (!%p9158_p13)
}
  0x75   :  { %94 = dma.hbm_to_vmem [thread:$0]  %s9519_s6, 96, %s92_s18, [#allocation12]  }
  0x76   :  { %9184 = dma.done.wait [#allocation3], 1536  }
  0x77   :  { %9185 = vsyncadd [#allocation3], 4294965760 }
  0x78   :  { %9186 = dma.done.wait [#allocation6], 36960  }
  0x79   :  { %9187 = vsyncadd [#allocation6], 4294930336 }
  0x7a   :  { %9188 = dma.done.wait [#allocation9], 36960  }
  0x7b   :  { %9189 = vsyncadd [#allocation9], 4294930336 }
  0x7c   :  { %9190 = dma.done.wait [#allocation12], 36960  }
  0x7d   :  { %9191 = vsyncadd [#allocation12], 4294930336  ;;  %v7711_v0 = vld [vmem:[#allocation5 + $0x4] ss:$24 sps:$4 sm:$0xff]   ;;  %v7715_v2 = vld [vmem:[#allocation5] ss:$24 sps:$4 sm:$0xff]  }
  0x7e   :  { %v7713_v1 = vld [vmem:[#allocation5 + $0x304] ss:$24 sps:$4 sm:$0xff]   ;;  %1894 = vmatprep.subr.bf16.mxu1 %v7711_v0  ;;  %v7716_v3 = vld [vmem:[#allocation5 + $0x300] ss:$24 sps:$4 sm:$0xff]   ;;  %v7717_v4 = vld [vmem:[#allocation5 + $0x34] ss:$24 sps:$4 sm:$0xff]  }
  0x7f   :  { %1937 = vmatprep.subr.bf16.mxu0 %v7713_v1  ;;  %1895 = vmatpush1.bf16.msra.mxu1 %v7715_v2  ;;  %v7719_v5 = vld [vmem:[#allocation5 + $0x334] ss:$24 sps:$4 sm:$0xff]   ;;  %v7721_v6 = vld [vmem:[#allocation5 + $0x30] ss:$24 sps:$4 sm:$0xff]   ;;  %v7723_v8 = vld [vmem:[#allocation5 + $0x64] ss:$24 sps:$4 sm:$0xff]  }
  0x80   :  { %1938 = vmatpush1.bf16.msra.mxu0 %v7716_v3  ;;  %1896 = vmatprep.subr.bf16.mxu1 %v7717_v4  ;;  %v7722_v7 = vld [vmem:[#allocation5 + $0x330] ss:$24 sps:$4 sm:$0xff]   ;;  %v7725_v9 = vld [vmem:[#allocation5 + $0x364] ss:$24 sps:$4 sm:$0xff]   ;;  %v7727_v10 = vld [vmem:[#allocation5 + $0x60] ss:$24 sps:$4 sm:$0xff]  }
  0x81   :  { %1939 = vmatprep.subr.bf16.mxu0 %v7719_v5  ;;  %v7728_v11 = vld [vmem:[#allocation5 + $0x360] ss:$24 sps:$4 sm:$0xff]   ;;  %v7729_v12 = vld [vmem:[#allocation5 + $0x94] ss:$24 sps:$4 sm:$0xff]   ;;  %v7733_v14 = vld [vmem:[#allocation5 + $0x90] ss:$24 sps:$4 sm:$0xff]  }
  0x82   :  { %v7731_v13 = vld [vmem:[#allocation5 + $0x394] ss:$24 sps:$4 sm:$0xff]   ;;  %v7734_v15 = vld [vmem:[#allocation5 + $0x390] ss:$24 sps:$4 sm:$0xff]   ;;  %v7735_v16 = vld [vmem:[#allocation5 + $0xc4] ss:$24 sps:$4 sm:$0xff]  }
  0x83   :  { %1897 = vmatpush1.bf16.msra.mxu1 %v7721_v6  ;;  %v7737_v17 = vld [vmem:[#allocation5 + $0x3c4] ss:$24 sps:$4 sm:$0xff]   ;;  %v7739_v18 = vld [vmem:[#allocation5 + $0xc0] ss:$24 sps:$4 sm:$0xff]   ;;  %v7741_v20 = vld [vmem:[#allocation5 + $0xf4] ss:$24 sps:$4 sm:$0xff]  }
  0x84   :  { %1940 = vmatpush1.bf16.msra.mxu0 %v7722_v7  ;;  %1898 = vmatprep.subr.bf16.mxu1 %v7723_v8  ;;  %v7740_v19 = vld [vmem:[#allocation5 + $0x3c0] ss:$24 sps:$4 sm:$0xff]   ;;  %v7743_v21 = vld [vmem:[#allocation5 + $0x3f4] ss:$24 sps:$4 sm:$0xff]   ;;  %v7745_v22 = vld [vmem:[#allocation5 + $0xf0] ss:$24 sps:$4 sm:$0xff]  }
  0x85   :  { %1941 = vmatprep.subr.bf16.mxu0 %v7725_v9  ;;  %v7746_v23 = vld [vmem:[#allocation5 + $0x3f0] ss:$24 sps:$4 sm:$0xff]   ;;  %v7747_v24 = vld [vmem:[#allocation5 + $0x124] ss:$24 sps:$4 sm:$0xff]   ;;  %v7751_v26 = vld [vmem:[#allocation5 + $0x120] ss:$24 sps:$4 sm:$0xff]  }
  0x86   :  { %v7749_v25 = vld [vmem:[#allocation5 + $0x424] ss:$24 sps:$4 sm:$0xff]   ;;  %v7752_v27 = vld [vmem:[#allocation5 + $0x420] ss:$24 sps:$4 sm:$0xff]   ;;  %v7753_v28 = vld [vmem:[#allocation5 + $0x154] ss:$24 sps:$4 sm:$0xff]  }
  0x87   :  { %1899 = vmatpush1.bf16.msra.mxu1 %v7727_v10  ;;  %v7755_v29 = vld [vmem:[#allocation5 + $0x454] ss:$24 sps:$4 sm:$0xff]   ;;  %v7757_v30 = vld [vmem:[#allocation5 + $0x150] ss:$24 sps:$4 sm:$0xff]   ;;  %v7759_v32 = vld [vmem:[#allocation5 + $0x184] ss:$24 sps:$4 sm:$0xff]  }
  0x88   :  { %1942 = vmatpush1.bf16.msra.mxu0 %v7728_v11  ;;  %1900 = vmatprep.subr.bf16.mxu1 %v7729_v12  ;;  %v7758_v31 = vld [vmem:[#allocation5 + $0x450] ss:$24 sps:$4 sm:$0xff]   ;;  %v7761_v33 = vld [vmem:[#allocation5 + $0x484] ss:$24 sps:$4 sm:$0xff]   ;;  %v7763_v34 = vld [vmem:[#allocation5 + $0x180] ss:$24 sps:$4 sm:$0xff]  }
  0x89   :  { %1943 = vmatprep.subr.bf16.mxu0 %v7731_v13  ;;  %v7764_v35 = vld [vmem:[#allocation5 + $0x480] ss:$24 sps:$4 sm:$0xff]   ;;  %v7765_v36 = vld [vmem:[#allocation5 + $0x1b4] ss:$24 sps:$4 sm:$0xff]   ;;  %v7769_v38 = vld [vmem:[#allocation5 + $0x1b0] ss:$24 sps:$4 sm:$0xff]  }
  0x8a   :  { %v7767_v37 = vld [vmem:[#allocation5 + $0x4b4] ss:$24 sps:$4 sm:$0xff]   ;;  %v7770_v39 = vld [vmem:[#allocation5 + $0x4b0] ss:$24 sps:$4 sm:$0xff]   ;;  %v7771_v40 = vld [vmem:[#allocation5 + $0x1e4] ss:$24 sps:$4 sm:$0xff]  }
  0x8b   :  { %1901 = vmatpush1.bf16.msra.mxu1 %v7733_v14  ;;  %v7773_v41 = vld [vmem:[#allocation5 + $0x4e4] ss:$24 sps:$4 sm:$0xff]   ;;  %v7775_v42 = vld [vmem:[#allocation5 + $0x1e0] ss:$24 sps:$4 sm:$0xff]   ;;  %v7777_v44 = vld [vmem:[#allocation5 + $0x214] ss:$24 sps:$4 sm:$0xff]  }
  0x8c   :  { %1944 = vmatpush1.bf16.msra.mxu0 %v7734_v15  ;;  %1902 = vmatprep.subr.bf16.mxu1 %v7735_v16  ;;  %v7776_v43 = vld [vmem:[#allocation5 + $0x4e0] ss:$24 sps:$4 sm:$0xff]   ;;  %v7779_v45 = vld [vmem:[#allocation5 + $0x514] ss:$24 sps:$4 sm:$0xff]   ;;  %v7781_v47 = vld [vmem:[#allocation5 + $0x210] ss:$24 sps:$4 sm:$0xff]  }
  0x8d   :  { %1945 = vmatprep.subr.bf16.mxu0 %v7737_v17  ;;  %v117_v46 = vld [vmem:[#allocation2 + $0x8] sm:$0xff]  ;;  %v123_v49 = vld [vmem:[#allocation2 + $0x38] sm:$0xff]  ;;  %v116_v6 = vld [vmem:[#allocation2] sm:$0xff]  ;;  %s9205_s6 = smov [#allocation14]  }
  0x8e   :  { %v7782_v48 = vld [vmem:[#allocation5 + $0x510] ss:$24 sps:$4 sm:$0xff]   ;;  %v9342_v50 = vpack.c.bf16 %v123_v49, %v117_v46  ;;  %v119_v51 = vld [vmem:[#allocation2 + $0x18] sm:$0xff]  ;;  %v7789_v58 = vld [vmem:[#allocation5 + $0x274] ss:$24 sps:$4 sm:$0xff]   ;;  %s6712_s14 = sshll.u32 %s9205_s6, 4  ;;  %s6713_s14 = int_to_ptr.vmem [resolvable:$true] %s6712_s14 }
  0x8f   :  { %1903 = vmatpush1.bf16.msra.mxu1 %v7739_v18  ;;  %v125_v52 = vld [vmem:[#allocation2 + $0x48] sm:$0xff]  ;;  %v7783_v53 = vld [vmem:[#allocation5 + $0x244] ss:$24 sps:$4 sm:$0xff]   ;;  %v7787_v56 = vld [vmem:[#allocation5 + $0x240] ss:$24 sps:$4 sm:$0xff]   ;;  %s9162_s3 = scalar_lea.vmem %s6713_s14, 1536  ;;  %p9167_p1 = scmp.lt.s32.totalorder %s6713_s14, %s6713_s14 }
  0x90   :  { %1946 = vmatpush1.bf16.msra.mxu0 %v7740_v19  ;;  %1904 = vmatprep.subr.bf16.mxu1 %v7741_v20  ;;  %v7785_v54 = vld [vmem:[#allocation5 + $0x544] ss:$24 sps:$4 sm:$0xff]   ;;  %v9344_v55 = vpack.c.bf16 %v125_v52, %v119_v51  ;;  %v7788_v57 = vld [vmem:[#allocation5 + $0x540] ss:$24 sps:$4 sm:$0xff]   ;;  %v7791_v59 = vld [vmem:[#allocation5 + $0x574] ss:$24 sps:$4 sm:$0xff]   ;;  %p9163_p0 = scmp.ne.s32.totalorder %s6713_s14, %s9162_s3  ;;  %p9168_p2 = scmp.lt.s32.totalorder %s9162_s3, %s9162_s3 }
  0x91   :  { %1947 = vmatprep.subr.bf16.mxu0 %v7743_v21  ;;  %1926 = vmatprep.mubr.bf16.mxu1 %v9342_v50  ;;  %v7793_v60 = vld [vmem:[#allocation5 + $0x270] ss:$24 sps:$4 sm:$0xff]   ;;  %v7795_v62 = vld [vmem:[#allocation5 + $0x2a4] ss:$24 sps:$4 sm:$0xff]   ;;  %v7799_v0 = vld [vmem:[#allocation5 + $0x2a0] ss:$24 sps:$4 sm:$0xff]  }
  0x92   :  { %1969 = vmatprep.mubr.bf16.mxu0 %v9344_v55  ;;  %v7794_v61 = vld [vmem:[#allocation5 + $0x570] ss:$24 sps:$4 sm:$0xff]   ;;  %v7797_v63 = vld [vmem:[#allocation5 + $0x5a4] ss:$24 sps:$4 sm:$0xff]   ;;  %v7800_v1 = vld [vmem:[#allocation5 + $0x5a0] ss:$24 sps:$4 sm:$0xff]   ;;  %p9169_p3 = por %p9168_p2, %p9167_p1 }
  0x93   :  { %1905 = vmatpush1.bf16.msra.mxu1 %v7745_v22  ;;  %v7801_v2 = vld [vmem:[#allocation5 + $0x2d4] ss:$24 sps:$4 sm:$0xff]   ;;  %v7805_v4 = vld [vmem:[#allocation5 + $0x2d0] ss:$24 sps:$4 sm:$0xff]   ;;  %v7809_v8 = vld [vmem:[#allocation5 + $0x604] ss:$24 sps:$4 sm:$0xff]  }
  0x94   :  { %1948 = vmatpush1.bf16.msra.mxu0 %v7746_v23  ;;  %1906 = vmatprep.subr.bf16.mxu1 %v7747_v24  ;;  %v7803_v3 = vld [vmem:[#allocation5 + $0x5d4] ss:$24 sps:$4 sm:$0xff]   ;;  %v7806_v5 = vld [vmem:[#allocation5 + $0x5d0] ss:$24 sps:$4 sm:$0xff]   ;;  %v124_v10 = vld [vmem:[#allocation2 + $0x40] sm:$0xff]  ;;  %p9170_p4 = pnand %p9169_p3, %p9163_p0 }
  0x95   :  { %1949 = vmatprep.subr.bf16.mxu0 %v7749_v25  ;;  %v122_v7 = vld [vmem:[#allocation2 + $0x30] sm:$0xff]  ;;  %v7812_v11 = vld [vmem:[#allocation5 + $0xc] ss:$24 sps:$4 sm:$0xff]   ;;  %v7807_v13 = vld [vmem:[#allocation5 + $0x600] ss:$24 sps:$4 sm:$0xff]  }
  0x96   :  { %v118_v9 = vld [vmem:[#allocation2 + $0x10] sm:$0xff]  ;;  %v9348_v12 = vpack.c.bf16 %v122_v7, %v116_v6  ;;  %v7810_v14 = vld [vmem:[#allocation5 + $0x8] ss:$24 sps:$4 sm:$0xff]   ;;  %v7821_v20 = vld [vmem:[#allocation5 + $0x664] ss:$24 sps:$4 sm:$0xff]  }
  0x97   :  { %1907 = vmatpush1.bf16.msra.mxu1 %v7751_v26  ;;  %v9350_v15 = vpack.c.bf16 %v124_v10, %v118_v9  ;;  %v7815_v16 = vld [vmem:[#allocation5 + $0x634] ss:$24 sps:$4 sm:$0xff]   ;;  %v7813_v18 = vld [vmem:[#allocation5 + $0x630] ss:$24 sps:$4 sm:$0xff]   ;;  %v7819_v22 = vld [vmem:[#allocation5 + $0x660] ss:$24 sps:$4 sm:$0xff]  }
  0x98   :  { %1950 = vmatpush1.bf16.msra.mxu0 %v7752_v27  ;;  %1908 = vmatprep.subr.bf16.mxu1 %v7753_v28  ;;  %v7818_v17 = vld [vmem:[#allocation5 + $0x3c] ss:$24 sps:$4 sm:$0xff]   ;;  %v7816_v19 = vld [vmem:[#allocation5 + $0x38] ss:$24 sps:$4 sm:$0xff]   ;;  %v7824_v21 = vld [vmem:[#allocation5 + $0x6c] ss:$24 sps:$4 sm:$0xff]  }
  0x99   :  { %1951 = vmatprep.subr.bf16.mxu0 %v7755_v29  ;;  %v7822_v23 = vld [vmem:[#allocation5 + $0x68] ss:$24 sps:$4 sm:$0xff]   ;;  %v7827_v24 = vld [vmem:[#allocation5 + $0x694] ss:$24 sps:$4 sm:$0xff]   ;;  %v7828_v27 = vld [vmem:[#allocation5 + $0x98] ss:$24 sps:$4 sm:$0xff]  }
  0x9a   :  { %v7830_v25 = vld [vmem:[#allocation5 + $0x9c] ss:$24 sps:$4 sm:$0xff]   ;;  %v7825_v26 = vld [vmem:[#allocation5 + $0x690] ss:$24 sps:$4 sm:$0xff]   ;;  %v7836_v29 = vld [vmem:[#allocation5 + $0xcc] ss:$24 sps:$4 sm:$0xff]  }
  0x9b   :  { %1909 = vmatpush1.bf16.msra.mxu1 %v7757_v30  ;;  %v7833_v28 = vld [vmem:[#allocation5 + $0x6c4] ss:$24 sps:$4 sm:$0xff]   ;;  %v7831_v30 = vld [vmem:[#allocation5 + $0x6c0] ss:$24 sps:$4 sm:$0xff]   ;;  %v7863_v52 = vld [vmem:[#allocation5 + $0x7b4] ss:$24 sps:$4 sm:$0xff]  }
  0x9c   :  { %1952 = vmatpush1.bf16.msra.mxu0 %v7758_v31  ;;  %1910 = vmatprep.subr.bf16.mxu1 %v7759_v32  ;;  %v7834_v31 = vld [vmem:[#allocation5 + $0xc8] ss:$24 sps:$4 sm:$0xff]   ;;  %v7839_v32 = vld [vmem:[#allocation5 + $0x6f4] ss:$24 sps:$4 sm:$0xff]   ;;  %v7852_v46 = vld [vmem:[#allocation5 + $0x158] ss:$24 sps:$4 sm:$0xff]  }
  0x9d   :  { %1953 = vmatprep.subr.bf16.mxu0 %v7761_v33  ;;  %v7842_v33 = vld [vmem:[#allocation5 + $0xfc] ss:$24 sps:$4 sm:$0xff]   ;;  %v7855_v49 = vld [vmem:[#allocation5 + $0x780] ss:$24 sps:$4 sm:$0xff]   ;;  %v7885_v7 = vld [vmem:[#allocation5 + $0x870] ss:$24 sps:$4 sm:$0xff]  }
  0x9e   :  { %v7858_v51 = vld [vmem:[#allocation5 + $0x188] ss:$24 sps:$4 sm:$0xff]   ;;  %v7890_v6 = vld [vmem:[#allocation5 + $0x27c] ss:$24 sps:$4 sm:$0xff]   ;;  %v7896_v10 = vld [vmem:[#allocation5 + $0x2ac] ss:$24 sps:$4 sm:$0xff]  }
  0x9f   :  { %1911 = vmatpush1.bf16.msra.mxu1 %v7763_v34  ;;  %v7837_v34 = vld [vmem:[#allocation5 + $0x6f0] ss:$24 sps:$4 sm:$0xff]   ;;  %v7893_v9 = vld [vmem:[#allocation5 + $0x8a4] ss:$24 sps:$4 sm:$0xff]  }
  0xa0   :  { %1954 = vmatpush1.bf16.msra.mxu0 %v7764_v35  ;;  %1912 = vmatprep.subr.bf16.mxu1 %v7765_v36  ;;  %v7840_v35 = vld [vmem:[#allocation5 + $0xf8] ss:$24 sps:$4 sm:$0xff]   ;;  %v7845_v36 = vld [vmem:[#allocation5 + $0x724] ss:$24 sps:$4 sm:$0xff]  }
  0xa1   :  { %1955 = vmatprep.subr.bf16.mxu0 %v7767_v37  ;;  %v7848_v37 = vld [vmem:[#allocation5 + $0x12c] ss:$24 sps:$4 sm:$0xff]  }
  0xa3   :  { %1913 = vmatpush1.bf16.msra.mxu1 %v7769_v38  ;;  %v7843_v38 = vld [vmem:[#allocation5 + $0x720] ss:$24 sps:$4 sm:$0xff]  }
  0xa4   :  { %1956 = vmatpush1.bf16.msra.mxu0 %v7770_v39  ;;  %1914 = vmatprep.subr.bf16.mxu1 %v7771_v40  ;;  %v7846_v39 = vld [vmem:[#allocation5 + $0x128] ss:$24 sps:$4 sm:$0xff]   ;;  %v7851_v40 = vld [vmem:[#allocation5 + $0x754] ss:$24 sps:$4 sm:$0xff]  }
  0xa5   :  { %1957 = vmatprep.subr.bf16.mxu0 %v7773_v41  ;;  %v121_v41 = vld [vmem:[#allocation2 + $0x28] sm:$0xff] }
  0xa7   :  { %1915 = vmatpush1.bf16.msra.mxu1 %v7775_v42  ;;  %v127_v42 = vld [vmem:[#allocation2 + $0x58] sm:$0xff] }
  0xa8   :  { %1958 = vmatpush1.bf16.msra.mxu0 %v7776_v43  ;;  %1916 = vmatprep.subr.bf16.mxu1 %v7777_v44  ;;  %v7854_v43 = vld [vmem:[#allocation5 + $0x15c] ss:$24 sps:$4 sm:$0xff]   ;;  %v9355_v44 = vpack.c.bf16 %v127_v42, %v121_v41  ;;  %v7930_v41 = vld [vmem:[#allocation5 + $0xd0] ss:$24 sps:$4 sm:$0xff]  }
  0xa9   :  { %1959 = vmatprep.subr.bf16.mxu0 %v7779_v45  ;;  %v7849_v45 = vld [vmem:[#allocation5 + $0x750] ss:$24 sps:$4 sm:$0xff]   ;;  %v7938_v42 = vld [vmem:[#allocation5 + $0x104] ss:$24 sps:$4 sm:$0xff]  }
  0xab   :  { %1917 = vmatpush1.bf16.msra.mxu1 %v7781_v47  ;;  %v7857_v47 = vld [vmem:[#allocation5 + $0x784] ss:$24 sps:$4 sm:$0xff]  }
  0xac   :  { %1960 = vmatpush1.bf16.msra.mxu0 %v7782_v48  ;;  %1918 = vmatprep.subr.bf16.mxu1 %v7783_v53  ;;  %v7860_v48 = vld [vmem:[#allocation5 + $0x18c] ss:$24 sps:$4 sm:$0xff]   ;;  %v7866_v53 = vld [vmem:[#allocation5 + $0x1bc] ss:$24 sps:$4 sm:$0xff]  }
  0xad   :  { %1961 = vmatprep.subr.bf16.mxu0 %v7785_v54  ;;  %v7861_v54 = vld [vmem:[#allocation5 + $0x7b0] ss:$24 sps:$4 sm:$0xff]  }
  0xaf   :  { %1919 = vmatpush1.bf16.msra.mxu1 %v7787_v56  ;;  %v7864_v56 = vld [vmem:[#allocation5 + $0x1b8] ss:$24 sps:$4 sm:$0xff]  }
  0xb0   :  { %1962 = vmatpush1.bf16.msra.mxu0 %v7788_v57  ;;  %1920 = vmatprep.subr.bf16.mxu1 %v7789_v58  ;;  %v7869_v57 = vld [vmem:[#allocation5 + $0x7e4] ss:$24 sps:$4 sm:$0xff]  }
  0xb1   :  { %1963 = vmatprep.subr.bf16.mxu0 %v7791_v59  ;;  %v7872_v58 = vld [vmem:[#allocation5 + $0x1ec] ss:$24 sps:$4 sm:$0xff]   ;;  %v7867_v59 = vld [vmem:[#allocation5 + $0x7e0] ss:$24 sps:$4 sm:$0xff]  }
  0xb3   :  { %1921 = vmatpush1.bf16.msra.mxu1 %v7793_v60  ;;  %v7870_v60 = vld [vmem:[#allocation5 + $0x1e8] ss:$24 sps:$4 sm:$0xff]  }
  0xb4   :  { %1964 = vmatpush1.bf16.msra.mxu0 %v7794_v61  ;;  %1922 = vmatprep.subr.bf16.mxu1 %v7795_v62  ;;  %v7875_v61 = vld [vmem:[#allocation5 + $0x814] ss:$24 sps:$4 sm:$0xff]  }
  0xb5   :  { %1965 = vmatprep.subr.bf16.mxu0 %v7797_v63  ;;  %v7878_v62 = vld [vmem:[#allocation5 + $0x21c] ss:$24 sps:$4 sm:$0xff]   ;;  %v7873_v63 = vld [vmem:[#allocation5 + $0x810] ss:$24 sps:$4 sm:$0xff]  }
  0xb7   :  { %1923 = vmatpush1.bf16.msra.mxu1 %v7799_v0  ;;  %v7876_v0 = vld [vmem:[#allocation5 + $0x218] ss:$24 sps:$4 sm:$0xff]  }
  0xb8   :  { %1966 = vmatpush1.bf16.msra.mxu0 %v7800_v1  ;;  %1924 = vmatprep.subr.bf16.mxu1 %v7801_v2  ;;  %v7881_v1 = vld [vmem:[#allocation5 + $0x844] ss:$24 sps:$4 sm:$0xff]  }
  0xb9   :  { %1967 = vmatprep.subr.bf16.mxu0 %v7803_v3  ;;  %v7884_v2 = vld [vmem:[#allocation5 + $0x24c] ss:$24 sps:$4 sm:$0xff]   ;;  %v7879_v3 = vld [vmem:[#allocation5 + $0x840] ss:$24 sps:$4 sm:$0xff]  }
  0xbb   :  { %1925 = vmatpush1.bf16.msra.mxu1 %v7805_v4  ;;  %v7882_v4 = vld [vmem:[#allocation5 + $0x248] ss:$24 sps:$4 sm:$0xff]  }
  0xbc   :  { %1968 = vmatpush1.bf16.msra.mxu0 %v7806_v5  ;;  %2023 = vmatprep.subr.bf16.mxu1 %v7812_v11  ;;  %v7887_v5 = vld [vmem:[#allocation5 + $0x874] ss:$24 sps:$4 sm:$0xff]   ;;  %v7891_v11 = vld [vmem:[#allocation5 + $0x8a0] ss:$24 sps:$4 sm:$0xff]  }
  0xbd   :  { %1980 = vmatprep.subr.bf16.mxu0 %v7809_v8  ;;  %v7888_v8 = vld [vmem:[#allocation5 + $0x278] ss:$24 sps:$4 sm:$0xff]  }
  0xbe   :  { %1927 = vmatmul.mubr.bf16.vlgmr.msra.gmra.mrb[0].mxu1 %v9348_v12 }
  0xbf   :  { %1970 = vmatmul.mubr.bf16.vlgmr.msra.gmra.mrb[0].mxu0 %v9350_v15  ;;  %2024 = vmatpush1.bf16.msra.mxu1 %v7810_v14  ;;  %v7899_v14 = vld [vmem:[#allocation5 + $0x8d4] ss:$24 sps:$4 sm:$0xff]  }
  0xc0   :  { %1981 = vmatpush1.bf16.msra.mxu0 %v7807_v13  ;;  %2025 = vmatprep.subr.bf16.mxu1 %v7818_v17  ;;  %v7894_v13 = vld [vmem:[#allocation5 + $0x2a8] ss:$24 sps:$4 sm:$0xff]  }
  0xc1   :  { %1982 = vmatprep.subr.bf16.mxu0 %v7815_v16  ;;  %2055 = vmatprep.mubr.bf16.mxu1 %v9342_v50  ;;  %v7902_v16 = vld [vmem:[#allocation5 + $0x2dc] ss:$24 sps:$4 sm:$0xff]   ;;  %v7897_v17 = vld [vmem:[#allocation5 + $0x8d0] ss:$24 sps:$4 sm:$0xff]  }
  0xc2   :  { %2012 = vmatprep.mubr.bf16.mxu0 %v9355_v44 }
  0xc3   :  { %2026 = vmatpush1.bf16.msra.mxu1 %v7816_v19  ;;  %v120_v19 = vld [vmem:[#allocation2 + $0x20] sm:$0xff] }
  0xc4   :  { %1983 = vmatpush1.bf16.msra.mxu0 %v7813_v18  ;;  %2027 = vmatprep.subr.bf16.mxu1 %v7824_v21  ;;  %v7900_v18 = vld [vmem:[#allocation5 + $0x2d8] ss:$24 sps:$4 sm:$0xff]   ;;  %v7905_v21 = vld [vmem:[#allocation5 + $0x30c] ss:$24 sps:$4 sm:$0xff]  }
  0xc5   :  { %1984 = vmatprep.subr.bf16.mxu0 %v7821_v20  ;;  %v126_v20 = vld [vmem:[#allocation2 + $0x50] sm:$0xff] }
  0xc7   :  { %2028 = vmatpush1.bf16.msra.mxu1 %v7822_v23  ;;  %v9358_v23 = vpack.c.bf16 %v126_v20, %v120_v19  ;;  %v7992_v19 = vld [vmem:[#allocation5 + $0x2b4] ss:$24 sps:$4 sm:$0xff]   ;;  %v7987_v20 = vld [vmem:[#allocation5 + $0x5a8] ss:$24 sps:$4 sm:$0xff]  }
  0xc8   :  { %1985 = vmatpush1.bf16.msra.mxu0 %v7819_v22  ;;  %2029 = vmatprep.subr.bf16.mxu1 %v7830_v25  ;;  %v7908_v22 = vld [vmem:[#allocation5 + $0x14] ss:$24 sps:$4 sm:$0xff]   ;;  %v7906_v25 = vld [vmem:[#allocation5 + $0x10] ss:$24 sps:$4 sm:$0xff]  }
  0xc9   :  { %1986 = vmatprep.subr.bf16.mxu0 %v7827_v24  ;;  %v7903_v24 = vld [vmem:[#allocation5 + $0x308] ss:$24 sps:$4 sm:$0xff]  }
  0xcb   :  { %2030 = vmatpush1.bf16.msra.mxu1 %v7828_v27  ;;  %v7914_v27 = vld [vmem:[#allocation5 + $0x44] ss:$24 sps:$4 sm:$0xff]  }
  0xcc   :  { %1987 = vmatpush1.bf16.msra.mxu0 %v7825_v26  ;;  %2031 = vmatprep.subr.bf16.mxu1 %v7836_v29  ;;  %v7911_v26 = vld [vmem:[#allocation5 + $0x33c] ss:$24 sps:$4 sm:$0xff]   ;;  %v7912_v29 = vld [vmem:[#allocation5 + $0x40] ss:$24 sps:$4 sm:$0xff]  }
  0xcd   :  { %1988 = vmatprep.subr.bf16.mxu0 %v7833_v28  ;;  %v7909_v28 = vld [vmem:[#allocation5 + $0x338] ss:$24 sps:$4 sm:$0xff]  }
  0xcf   :  { %2032 = vmatpush1.bf16.msra.mxu1 %v7834_v31  ;;  %v7920_v31 = vld [vmem:[#allocation5 + $0x74] ss:$24 sps:$4 sm:$0xff]  }
  0xd0   :  { %1989 = vmatpush1.bf16.msra.mxu0 %v7831_v30  ;;  %2033 = vmatprep.subr.bf16.mxu1 %v7842_v33  ;;  %v7917_v30 = vld [vmem:[#allocation5 + $0x36c] ss:$24 sps:$4 sm:$0xff]   ;;  %v7918_v33 = vld [vmem:[#allocation5 + $0x70] ss:$24 sps:$4 sm:$0xff]  }
  0xd1   :  { %1990 = vmatprep.subr.bf16.mxu0 %v7839_v32  ;;  %v7915_v32 = vld [vmem:[#allocation5 + $0x368] ss:$24 sps:$4 sm:$0xff]  }
  0xd3   :  { %2034 = vmatpush1.bf16.msra.mxu1 %v7840_v35  ;;  %v7926_v35 = vld [vmem:[#allocation5 + $0xa4] ss:$24 sps:$4 sm:$0xff]  }
  0xd4   :  { %1991 = vmatpush1.bf16.msra.mxu0 %v7837_v34  ;;  %2035 = vmatprep.subr.bf16.mxu1 %v7848_v37  ;;  %v7923_v34 = vld [vmem:[#allocation5 + $0x39c] ss:$24 sps:$4 sm:$0xff]   ;;  %v7924_v37 = vld [vmem:[#allocation5 + $0xa0] ss:$24 sps:$4 sm:$0xff]  }
  0xd5   :  { %1992 = vmatprep.subr.bf16.mxu0 %v7845_v36  ;;  %v7921_v36 = vld [vmem:[#allocation5 + $0x398] ss:$24 sps:$4 sm:$0xff]  }
  0xd7   :  { %2036 = vmatpush1.bf16.msra.mxu1 %v7846_v39  ;;  %v7932_v39 = vld [vmem:[#allocation5 + $0xd4] ss:$24 sps:$4 sm:$0xff]  }
  0xd8   :  { %1993 = vmatpush1.bf16.msra.mxu0 %v7843_v38  ;;  %2037 = vmatprep.subr.bf16.mxu1 %v7854_v43  ;;  %v7929_v38 = vld [vmem:[#allocation5 + $0x3cc] ss:$24 sps:$4 sm:$0xff]   ;;  %v7933_v43 = vld [vmem:[#allocation5 + $0x3f8] ss:$24 sps:$4 sm:$0xff]  }
  0xd9   :  { %1994 = vmatprep.subr.bf16.mxu0 %v7851_v40  ;;  %v7927_v40 = vld [vmem:[#allocation5 + $0x3c8] ss:$24 sps:$4 sm:$0xff]  }
  0xdb   :  { %2038 = vmatpush1.bf16.msra.mxu1 %v7852_v46  ;;  %v7941_v46 = vld [vmem:[#allocation5 + $0x42c] ss:$24 sps:$4 sm:$0xff]  }
  0xdc   :  { %1995 = vmatpush1.bf16.msra.mxu0 %v7849_v45  ;;  %2039 = vmatprep.subr.bf16.mxu1 %v7860_v48  ;;  %v7936_v45 = vld [vmem:[#allocation5 + $0x100] ss:$24 sps:$4 sm:$0xff]  }
  0xdd   :  { %1996 = vmatprep.subr.bf16.mxu0 %v7857_v47  ;;  %v7944_v47 = vld [vmem:[#allocation5 + $0x134] ss:$24 sps:$4 sm:$0xff]   ;;  %v7939_v48 = vld [vmem:[#allocation5 + $0x428] ss:$24 sps:$4 sm:$0xff]  }
  0xdf   :  { %2040 = vmatpush1.bf16.msra.mxu1 %v7858_v51  ;;  %v7947_v51 = vld [vmem:[#allocation5 + $0x45c] ss:$24 sps:$4 sm:$0xff]  }
  0xe0   :  { %1997 = vmatpush1.bf16.msra.mxu0 %v7855_v49  ;;  %2041 = vmatprep.subr.bf16.mxu1 %v7866_v53  ;;  %v7942_v49 = vld [vmem:[#allocation5 + $0x130] ss:$24 sps:$4 sm:$0xff]  }
  0xe1   :  { %1998 = vmatprep.subr.bf16.mxu0 %v7863_v52  ;;  %v7950_v52 = vld [vmem:[#allocation5 + $0x164] ss:$24 sps:$4 sm:$0xff]   ;;  %v7945_v53 = vld [vmem:[#allocation5 + $0x458] ss:$24 sps:$4 sm:$0xff]  }
  0xe3   :  { %2042 = vmatpush1.bf16.msra.mxu1 %v7864_v56  ;;  %v7953_v56 = vld [vmem:[#allocation5 + $0x48c] ss:$24 sps:$4 sm:$0xff]  }
  0xe4   :  { %1999 = vmatpush1.bf16.msra.mxu0 %v7861_v54  ;;  %2043 = vmatprep.subr.bf16.mxu1 %v7872_v58  ;;  %v7948_v54 = vld [vmem:[#allocation5 + $0x160] ss:$24 sps:$4 sm:$0xff]  }
  0xe5   :  { %2000 = vmatprep.subr.bf16.mxu0 %v7869_v57  ;;  %v7956_v57 = vld [vmem:[#allocation5 + $0x194] ss:$24 sps:$4 sm:$0xff]   ;;  %v7951_v58 = vld [vmem:[#allocation5 + $0x488] ss:$24 sps:$4 sm:$0xff]  }
  0xe7   :  { %2044 = vmatpush1.bf16.msra.mxu1 %v7870_v60  ;;  %v7959_v60 = vld [vmem:[#allocation5 + $0x4bc] ss:$24 sps:$4 sm:$0xff]  }
  0xe8   :  { %2001 = vmatpush1.bf16.msra.mxu0 %v7867_v59  ;;  %2045 = vmatprep.subr.bf16.mxu1 %v7878_v62  ;;  %v7954_v59 = vld [vmem:[#allocation5 + $0x190] ss:$24 sps:$4 sm:$0xff]  }
  0xe9   :  { %2002 = vmatprep.subr.bf16.mxu0 %v7875_v61  ;;  %v7962_v61 = vld [vmem:[#allocation5 + $0x1c4] ss:$24 sps:$4 sm:$0xff]   ;;  %v7957_v62 = vld [vmem:[#allocation5 + $0x4b8] ss:$24 sps:$4 sm:$0xff]  }
  0xeb   :  { %2046 = vmatpush1.bf16.msra.mxu1 %v7876_v0  ;;  %v7965_v0 = vld [vmem:[#allocation5 + $0x4ec] ss:$24 sps:$4 sm:$0xff]  }
  0xec   :  { %2003 = vmatpush1.bf16.msra.mxu0 %v7873_v63  ;;  %2047 = vmatprep.subr.bf16.mxu1 %v7884_v2  ;;  %v7960_v63 = vld [vmem:[#allocation5 + $0x1c0] ss:$24 sps:$4 sm:$0xff]  }
  0xed   :  { %2004 = vmatprep.subr.bf16.mxu0 %v7881_v1  ;;  %v7968_v1 = vld [vmem:[#allocation5 + $0x1f4] ss:$24 sps:$4 sm:$0xff]   ;;  %v7963_v2 = vld [vmem:[#allocation5 + $0x4e8] ss:$24 sps:$4 sm:$0xff]  }
  0xef   :  { %2048 = vmatpush1.bf16.msra.mxu1 %v7882_v4  ;;  %v7971_v4 = vld [vmem:[#allocation5 + $0x51c] ss:$24 sps:$4 sm:$0xff]  }
  0xf0   :  { %2005 = vmatpush1.bf16.msra.mxu0 %v7879_v3  ;;  %2049 = vmatprep.subr.bf16.mxu1 %v7890_v6  ;;  %v7966_v3 = vld [vmem:[#allocation5 + $0x1f0] ss:$24 sps:$4 sm:$0xff]  }
  0xf1   :  { %2006 = vmatprep.subr.bf16.mxu0 %v7887_v5  ;;  %v7974_v5 = vld [vmem:[#allocation5 + $0x224] ss:$24 sps:$4 sm:$0xff]   ;;  %v7969_v6 = vld [vmem:[#allocation5 + $0x518] ss:$24 sps:$4 sm:$0xff]  }
  0xf3   :  { %2050 = vmatpush1.bf16.msra.mxu1 %v7888_v8  ;;  %v7977_v8 = vld [vmem:[#allocation5 + $0x54c] ss:$24 sps:$4 sm:$0xff]  }
  0xf4   :  { %2007 = vmatpush1.bf16.msra.mxu0 %v7885_v7  ;;  %2051 = vmatprep.subr.bf16.mxu1 %v7896_v10  ;;  %v7972_v7 = vld [vmem:[#allocation5 + $0x220] ss:$24 sps:$4 sm:$0xff]  }
  0xf5   :  { %2008 = vmatprep.subr.bf16.mxu0 %v7893_v9  ;;  %v7980_v9 = vld [vmem:[#allocation5 + $0x254] ss:$24 sps:$4 sm:$0xff]   ;;  %v7975_v10 = vld [vmem:[#allocation5 + $0x548] ss:$24 sps:$4 sm:$0xff]  }
  0xf7   :  { %2052 = vmatpush1.bf16.msra.mxu1 %v7894_v13  ;;  %v7983_v13 = vld [vmem:[#allocation5 + $0x57c] ss:$24 sps:$4 sm:$0xff]  }
  0xf8   :  { %2009 = vmatpush1.bf16.msra.mxu0 %v7891_v11  ;;  %2053 = vmatprep.subr.bf16.mxu1 %v7902_v16  ;;  %v7978_v11 = vld [vmem:[#allocation5 + $0x250] ss:$24 sps:$4 sm:$0xff]  }
  0xf9   :  { %2010 = vmatprep.subr.bf16.mxu0 %v7899_v14  ;;  %v7986_v14 = vld [vmem:[#allocation5 + $0x284] ss:$24 sps:$4 sm:$0xff]   ;;  %v7981_v16 = vld [vmem:[#allocation5 + $0x578] ss:$24 sps:$4 sm:$0xff]  }
  0xfb   :  { %2054 = vmatpush1.bf16.msra.mxu1 %v7900_v18  ;;  %v7989_v18 = vld [vmem:[#allocation5 + $0x5ac] ss:$24 sps:$4 sm:$0xff]  }
  0xfc   :  { %2011 = vmatpush1.bf16.msra.mxu0 %v7897_v17  ;;  %2066 = vmatprep.subr.bf16.mxu1 %v7905_v21  ;;  %v7984_v17 = vld [vmem:[#allocation5 + $0x280] ss:$24 sps:$4 sm:$0xff]   ;;  %v7990_v21 = vld [vmem:[#allocation5 + $0x2b0] ss:$24 sps:$4 sm:$0xff]  }
  0xfd   :  { %2152 = vmatprep.subr.bf16.mxu0 %v7908_v22  ;;  %v7995_v22 = vld [vmem:[#allocation5 + $0x5dc] ss:$24 sps:$4 sm:$0xff]  }
  0xfe   :  { %2056 = vmatmul.mubr.bf16.vlgmr.msra.gmra.mrb[4].mxu1 %v9348_v12 }
  0xff   :  { %2013 = vmatmul.mubr.bf16.vlgmr.msra.gmra.mrb[0].mxu0 %v9358_v23  ;;  %2067 = vmatpush1.bf16.msra.mxu1 %v7903_v24  ;;  %v7998_v24 = vld [vmem:[#allocation5 + $0x2e4] ss:$24 sps:$4 sm:$0xff]  }
 0x100   :  { %2153 = vmatpush1.bf16.msra.mxu0 %v7906_v25  ;;  %2068 = vmatprep.subr.bf16.mxu1 %v7911_v26  ;;  %v7993_v25 = vld [vmem:[#allocation5 + $0x5d8] ss:$24 sps:$4 sm:$0xff]  }
 0x101   :  { %2154 = vmatprep.subr.bf16.mxu0 %v7914_v27  ;;  %2098 = vmatprep.mubr.bf16.mxu1 %v9344_v55  ;;  %v7996_v26 = vld [vmem:[#allocation5 + $0x2e0] ss:$24 sps:$4 sm:$0xff]   ;;  %v8001_v27 = vld [vmem:[#allocation5 + $0x60c] ss:$24 sps:$4 sm:$0xff]  }
 0x102   :  { %2184 = vmatprep.mubr.bf16.mxu0 %v9342_v50  ;;  %v7935_v50 = vld [vmem:[#allocation5 + $0x3fc] ss:$24 sps:$4 sm:$0xff]  }
 0x103   :  { %2069 = vmatpush1.bf16.msra.mxu1 %v7909_v28  ;;  %v8004_v28 = vld [vmem:[#allocation5 + $0x314] ss:$24 sps:$4 sm:$0xff]  }
 0x104   :  { %2155 = vmatpush1.bf16.msra.mxu0 %v7912_v29  ;;  %2070 = vmatprep.subr.bf16.mxu1 %v7917_v30  ;;  %v7999_v29 = vld [vmem:[#allocation5 + $0x608] ss:$24 sps:$4 sm:$0xff]  }
 0x105   :  { %2156 = vmatprep.subr.bf16.mxu0 %v7920_v31  ;;  %v8002_v30 = vld [vmem:[#allocation5 + $0x310] ss:$24 sps:$4 sm:$0xff]   ;;  %v8007_v31 = vld [vmem:[#allocation5 + $0x63c] ss:$24 sps:$4 sm:$0xff]  }
 0x107   :  { %2071 = vmatpush1.bf16.msra.mxu1 %v7915_v32  ;;  %v8010_v32 = vld [vmem:[#allocation5 + $0x344] ss:$24 sps:$4 sm:$0xff]  }
 0x108   :  { %2157 = vmatpush1.bf16.msra.mxu0 %v7918_v33  ;;  %2072 = vmatprep.subr.bf16.mxu1 %v7923_v34  ;;  %v8005_v33 = vld [vmem:[#allocation5 + $0x638] ss:$24 sps:$4 sm:$0xff]  }
 0x109   :  { %2158 = vmatprep.subr.bf16.mxu0 %v7926_v35  ;;  %v8008_v34 = vld [vmem:[#allocation5 + $0x340] ss:$24 sps:$4 sm:$0xff]   ;;  %v8013_v35 = vld [vmem:[#allocation5 + $0x66c] ss:$24 sps:$4 sm:$0xff]  }
 0x10b   :  { %2073 = vmatpush1.bf16.msra.mxu1 %v7921_v36  ;;  %v8016_v36 = vld [vmem:[#allocation5 + $0x374] ss:$24 sps:$4 sm:$0xff]  }
 0x10c   :  { %2159 = vmatpush1.bf16.msra.mxu0 %v7924_v37  ;;  %2074 = vmatprep.subr.bf16.mxu1 %v7929_v38  ;;  %v8011_v37 = vld [vmem:[#allocation5 + $0x668] ss:$24 sps:$4 sm:$0xff]  }
 0x10d   :  { %2160 = vmatprep.subr.bf16.mxu0 %v7932_v39  ;;  %v8014_v38 = vld [vmem:[#allocation5 + $0x370] ss:$24 sps:$4 sm:$0xff]   ;;  %v8019_v39 = vld [vmem:[#allocation5 + $0x69c] ss:$24 sps:$4 sm:$0xff]  }
 0x10f   :  { %2075 = vmatpush1.bf16.msra.mxu1 %v7927_v40  ;;  %v8017_v40 = vld [vmem:[#allocation5 + $0x698] ss:$24 sps:$4 sm:$0xff]  }
 0x110   :  { %2161 = vmatpush1.bf16.msra.mxu0 %v7930_v41  ;;  %2076 = vmatprep.subr.bf16.mxu1 %v7935_v50  ;;  %v8020_v41 = vld [vmem:[#allocation5 + $0x3a0] ss:$24 sps:$4 sm:$0xff]   ;;  %v8025_v50 = vld [vmem:[#allocation5 + $0x6cc] ss:$24 sps:$4 sm:$0xff]  }
 0x111   :  { %2162 = vmatprep.subr.bf16.mxu0 %v7938_v42  ;;  %v8028_v42 = vld [vmem:[#allocation5 + $0x3d4] ss:$24 sps:$4 sm:$0xff]  }
 0x113   :  { %2077 = vmatpush1.bf16.msra.mxu1 %v7933_v43  ;;  %v8023_v43 = vld [vmem:[#allocation5 + $0x6c8] ss:$24 sps:$4 sm:$0xff]  }
 0x114   :  { %2163 = vmatpush1.bf16.msra.mxu0 %v7936_v45  ;;  %2078 = vmatprep.subr.bf16.mxu1 %v7941_v46  ;;  %v8031_v45 = vld [vmem:[#allocation5 + $0x6fc] ss:$24 sps:$4 sm:$0xff]  }
 0x115   :  { %2164 = vmatprep.subr.bf16.mxu0 %v7944_v47  ;;  %v8034_v46 = vld [vmem:[#allocation5 + $0x404] ss:$24 sps:$4 sm:$0xff]   ;;  %v8029_v47 = vld [vmem:[#allocation5 + $0x6f8] ss:$24 sps:$4 sm:$0xff]  }
 0x117   :  { %2079 = vmatpush1.bf16.msra.mxu1 %v7939_v48  ;;  %v8032_v48 = vld [vmem:[#allocation5 + $0x400] ss:$24 sps:$4 sm:$0xff]  }
 0x118   :  { %2165 = vmatpush1.bf16.msra.mxu0 %v7942_v49  ;;  %2080 = vmatprep.subr.bf16.mxu1 %v7947_v51  ;;  %v8037_v49 = vld [vmem:[#allocation5 + $0x72c] ss:$24 sps:$4 sm:$0xff]  }
 0x119   :  { %2166 = vmatprep.subr.bf16.mxu0 %v7950_v52  ;;  %v8040_v51 = vld [vmem:[#allocation5 + $0x434] ss:$24 sps:$4 sm:$0xff]   ;;  %v8035_v52 = vld [vmem:[#allocation5 + $0x728] ss:$24 sps:$4 sm:$0xff]  }
 0x11b   :  { %2081 = vmatpush1.bf16.msra.mxu1 %v7945_v53  ;;  %v8038_v53 = vld [vmem:[#allocation5 + $0x430] ss:$24 sps:$4 sm:$0xff]  }
 0x11c   :  { %2167 = vmatpush1.bf16.msra.mxu0 %v7948_v54  ;;  %2082 = vmatprep.subr.bf16.mxu1 %v7953_v56  ;;  %v8043_v54 = vld [vmem:[#allocation5 + $0x75c] ss:$24 sps:$4 sm:$0xff]  }
 0x11d   :  { %2168 = vmatprep.subr.bf16.mxu0 %v7956_v57  ;;  %v8046_v56 = vld [vmem:[#allocation5 + $0x464] ss:$24 sps:$4 sm:$0xff]   ;;  %v8041_v57 = vld [vmem:[#allocation5 + $0x758] ss:$24 sps:$4 sm:$0xff]  }
 0x11f   :  { %2083 = vmatpush1.bf16.msra.mxu1 %v7951_v58  ;;  %v8044_v58 = vld [vmem:[#allocation5 + $0x460] ss:$24 sps:$4 sm:$0xff]  }
 0x120   :  { %2169 = vmatpush1.bf16.msra.mxu0 %v7954_v59  ;;  %2084 = vmatprep.subr.bf16.mxu1 %v7959_v60  ;;  %v8049_v59 = vld [vmem:[#allocation5 + $0x78c] ss:$24 sps:$4 sm:$0xff]  }
 0x121   :  { %2170 = vmatprep.subr.bf16.mxu0 %v7962_v61  ;;  %v8052_v60 = vld [vmem:[#allocation5 + $0x494] ss:$24 sps:$4 sm:$0xff]   ;;  %v8047_v61 = vld [vmem:[#allocation5 + $0x788] ss:$24 sps:$4 sm:$0xff]  }
 0x123   :  { %2085 = vmatpush1.bf16.msra.mxu1 %v7957_v62  ;;  %v8050_v62 = vld [vmem:[#allocation5 + $0x490] ss:$24 sps:$4 sm:$0xff]  }
 0x124   :  { %2171 = vmatpush1.bf16.msra.mxu0 %v7960_v63  ;;  %2086 = vmatprep.subr.bf16.mxu1 %v7965_v0  ;;  %v8055_v63 = vld [vmem:[#allocation5 + $0x7bc] ss:$24 sps:$4 sm:$0xff]  }
 0x125   :  { %2172 = vmatprep.subr.bf16.mxu0 %v7968_v1  ;;  %v8058_v0 = vld [vmem:[#allocation5 + $0x4c4] ss:$24 sps:$4 sm:$0xff]   ;;  %v8053_v1 = vld [vmem:[#allocation5 + $0x7b8] ss:$24 sps:$4 sm:$0xff]  }
 0x127   :  { %2087 = vmatpush1.bf16.msra.mxu1 %v7963_v2  ;;  %v8056_v2 = vld [vmem:[#allocation5 + $0x4c0] ss:$24 sps:$4 sm:$0xff]  }
 0x128   :  { %2173 = vmatpush1.bf16.msra.mxu0 %v7966_v3  ;;  %2088 = vmatprep.subr.bf16.mxu1 %v7971_v4  ;;  %v8061_v3 = vld [vmem:[#allocation5 + $0x7ec] ss:$24 sps:$4 sm:$0xff]  }
 0x129   :  { %2174 = vmatprep.subr.bf16.mxu0 %v7974_v5  ;;  %v8064_v4 = vld [vmem:[#allocation5 + $0x4f4] ss:$24 sps:$4 sm:$0xff]   ;;  %v8059_v5 = vld [vmem:[#allocation5 + $0x7e8] ss:$24 sps:$4 sm:$0xff]  }
 0x12b   :  { %2089 = vmatpush1.bf16.msra.mxu1 %v7969_v6  ;;  %v8062_v6 = vld [vmem:[#allocation5 + $0x4f0] ss:$24 sps:$4 sm:$0xff]  }
 0x12c   :  { %2175 = vmatpush1.bf16.msra.mxu0 %v7972_v7  ;;  %2090 = vmatprep.subr.bf16.mxu1 %v7977_v8  ;;  %v8067_v7 = vld [vmem:[#allocation5 + $0x81c] ss:$24 sps:$4 sm:$0xff]  }
 0x12d   :  { %2176 = vmatprep.subr.bf16.mxu0 %v7980_v9  ;;  %v8070_v8 = vld [vmem:[#allocation5 + $0x524] ss:$24 sps:$4 sm:$0xff]   ;;  %v8065_v9 = vld [vmem:[#allocation5 + $0x818] ss:$24 sps:$4 sm:$0xff]  }
 0x12f   :  { %2091 = vmatpush1.bf16.msra.mxu1 %v7975_v10  ;;  %v8068_v10 = vld [vmem:[#allocation5 + $0x520] ss:$24 sps:$4 sm:$0xff]  }
 0x130   :  { %2177 = vmatpush1.bf16.msra.mxu0 %v7978_v11  ;;  %2092 = vmatprep.subr.bf16.mxu1 %v7983_v13  ;;  %v8073_v11 = vld [vmem:[#allocation5 + $0x84c] ss:$24 sps:$4 sm:$0xff]  }
 0x131   :  { %2178 = vmatprep.subr.bf16.mxu0 %v7986_v14  ;;  %v8076_v13 = vld [vmem:[#allocation5 + $0x554] ss:$24 sps:$4 sm:$0xff]   ;;  %v8071_v14 = vld [vmem:[#allocation5 + $0x848] ss:$24 sps:$4 sm:$0xff]  }
 0x133   :  { %2093 = vmatpush1.bf16.msra.mxu1 %v7981_v16  ;;  %v8074_v16 = vld [vmem:[#allocation5 + $0x550] ss:$24 sps:$4 sm:$0xff]  }
 0x134   :  { %2179 = vmatpush1.bf16.msra.mxu0 %v7984_v17  ;;  %2094 = vmatprep.subr.bf16.mxu1 %v7989_v18  ;;  %v8079_v17 = vld [vmem:[#allocation5 + $0x87c] ss:$24 sps:$4 sm:$0xff]  }
 0x135   :  { %2180 = vmatprep.subr.bf16.mxu0 %v7992_v19  ;;  %v8082_v18 = vld [vmem:[#allocation5 + $0x584] ss:$24 sps:$4 sm:$0xff]   ;;  %v8077_v19 = vld [vmem:[#allocation5 + $0x878] ss:$24 sps:$4 sm:$0xff]  }
 0x137   :  { %2095 = vmatpush1.bf16.msra.mxu1 %v7987_v20  ;;  %v8080_v20 = vld [vmem:[#allocation5 + $0x580] ss:$24 sps:$4 sm:$0xff]  }
 0x138   :  { %2181 = vmatpush1.bf16.msra.mxu0 %v7990_v21  ;;  %2096 = vmatprep.subr.bf16.mxu1 %v7995_v22  ;;  %v8085_v21 = vld [vmem:[#allocation5 + $0x8ac] ss:$24 sps:$4 sm:$0xff]  }
 0x139   :  { %2182 = vmatprep.subr.bf16.mxu0 %v7998_v24  ;;  %v8088_v22 = vld [vmem:[#allocation5 + $0x5b4] ss:$24 sps:$4 sm:$0xff]   ;;  %v8083_v24 = vld [vmem:[#allocation5 + $0x8a8] ss:$24 sps:$4 sm:$0xff]  }
 0x13b   :  { %2097 = vmatpush1.bf16.msra.mxu1 %v7993_v25  ;;  %v8086_v25 = vld [vmem:[#allocation5 + $0x5b0] ss:$24 sps:$4 sm:$0xff]  }
 0x13c   :  { %2183 = vmatpush1.bf16.msra.mxu0 %v7996_v26  ;;  %2109 = vmatprep.subr.bf16.mxu1 %v8001_v27  ;;  %v8091_v26 = vld [vmem:[#allocation5 + $0x8dc] ss:$24 sps:$4 sm:$0xff]  }
 0x13d   :  { %2195 = vmatprep.subr.bf16.mxu0 %v8004_v28  ;;  %v8094_v27 = vld [vmem:[#allocation5 + $0x5e4] ss:$24 sps:$4 sm:$0xff]   ;;  %v8089_v28 = vld [vmem:[#allocation5 + $0x8d8] ss:$24 sps:$4 sm:$0xff]  }
 0x13e   :  { %2099 = vmatmul.mubr.bf16.vlgmr.msra.gmra.mrb[4].mxu1 %v9350_v15 }
 0x13f   :  { %2185 = vmatmul.mubr.bf16.vlgmr.msra.gmra.mrb[4].mxu0 %v9348_v12  ;;  %2110 = vmatpush1.bf16.msra.mxu1 %v7999_v29  ;;  %v8022_v12 = vld [vmem:[#allocation5 + $0x3a4] ss:$24 sps:$4 sm:$0xff]   ;;  %v8092_v29 = vld [vmem:[#allocation5 + $0x5e0] ss:$24 sps:$4 sm:$0xff]  }
 0x140   :  { %2196 = vmatpush1.bf16.msra.mxu0 %v8002_v30  ;;  %2111 = vmatprep.subr.bf16.mxu1 %v8007_v31  ;;  %v8097_v30 = vld [vmem:[#allocation5 + $0x614] ss:$24 sps:$4 sm:$0xff]  }
 0x141   :  { %2197 = vmatprep.subr.bf16.mxu0 %v8010_v32  ;;  %2141 = vmatprep.mubr.bf16.mxu1 %v9355_v44  ;;  %v8121_v31 = vld [vmem:[#allocation8 + $0x4] ss:$24 sps:$4 sm:$0xff]  }
 0x142   :  { %2227 = vmatprep.mubr.bf16.mxu0 %v9344_v55  ;;  %v8026_v55 = vld [vmem:[#allocation5 + $0x3d0] ss:$24 sps:$4 sm:$0xff]  }
 0x143   :  { %2112 = vmatpush1.bf16.msra.mxu1 %v8005_v33  ;;  %v8095_v32 = vld [vmem:[#allocation5 + $0x610] ss:$24 sps:$4 sm:$0xff]  }
 0x144   :  { %2198 = vmatpush1.bf16.msra.mxu0 %v8008_v34  ;;  %2113 = vmatprep.subr.bf16.mxu1 %v8013_v35  ;;  %v8119_v33 = vld [vmem:[#allocation8] ss:$24 sps:$4 sm:$0xff]   ;;  %v8127_v35 = vld [vmem:[#allocation8 + $0x34] ss:$24 sps:$4 sm:$0xff]  }
 0x145   :  { %2199 = vmatprep.subr.bf16.mxu0 %v8016_v36  ;;  %v8100_v34 = vld [vmem:[#allocation5 + $0x644] ss:$24 sps:$4 sm:$0xff]   ;;  %v8098_v36 = vld [vmem:[#allocation5 + $0x640] ss:$24 sps:$4 sm:$0xff]  }
 0x147   :  { %2114 = vmatpush1.bf16.msra.mxu1 %v8011_v37  ;;  %v8125_v37 = vld [vmem:[#allocation8 + $0x30] ss:$24 sps:$4 sm:$0xff]  }
 0x148   :  { %2200 = vmatpush1.bf16.msra.mxu0 %v8014_v38  ;;  %2115 = vmatprep.subr.bf16.mxu1 %v8019_v39  ;;  %v8103_v38 = vld [vmem:[#allocation5 + $0x674] ss:$24 sps:$4 sm:$0xff]  }
 0x149   :  { %2201 = vmatprep.subr.bf16.mxu0 %v8022_v12  ;;  %v8133_v39 = vld [vmem:[#allocation8 + $0x64] ss:$24 sps:$4 sm:$0xff]  }
 0x14a   :  { %v8101_v12 = vld [vmem:[#allocation5 + $0x670] ss:$24 sps:$4 sm:$0xff]  }
 0x14b   :  { %2116 = vmatpush1.bf16.msra.mxu1 %v8017_v40  ;;  %v8106_v40 = vld [vmem:[#allocation5 + $0x6a4] ss:$24 sps:$4 sm:$0xff]  }
 0x14c   :  { %2202 = vmatpush1.bf16.msra.mxu0 %v8020_v41  ;;  %2117 = vmatprep.subr.bf16.mxu1 %v8025_v50  ;;  %v8131_v41 = vld [vmem:[#allocation8 + $0x60] ss:$24 sps:$4 sm:$0xff]   ;;  %v8139_v50 = vld [vmem:[#allocation8 + $0x94] ss:$24 sps:$4 sm:$0xff]  }
 0x14d   :  { %2203 = vmatprep.subr.bf16.mxu0 %v8028_v42  ;;  %v8109_v42 = vld [vmem:[#allocation5 + $0x6d4] ss:$24 sps:$4 sm:$0xff]  }
 0x14f   :  { %2118 = vmatpush1.bf16.msra.mxu1 %v8023_v43  ;;  %v8137_v43 = vld [vmem:[#allocation8 + $0x90] ss:$24 sps:$4 sm:$0xff]  }
 0x150   :  { %2204 = vmatpush1.bf16.msra.mxu0 %v8026_v55  ;;  %2119 = vmatprep.subr.bf16.mxu1 %v8031_v45  ;;  %v8145_v55 = vld [vmem:[#allocation8 + $0xc4] ss:$24 sps:$4 sm:$0xff]  }
 0x151   :  { %2205 = vmatprep.subr.bf16.mxu0 %v8034_v46  ;;  %v8107_v45 = vld [vmem:[#allocation5 + $0x6d0] ss:$24 sps:$4 sm:$0xff]   ;;  %v8112_v46 = vld [vmem:[#allocation5 + $0x704] ss:$24 sps:$4 sm:$0xff]  }
 0x153   :  { %2120 = vmatpush1.bf16.msra.mxu1 %v8029_v47  ;;  %v8151_v47 = vld [vmem:[#allocation8 + $0xf4] ss:$24 sps:$4 sm:$0xff]  }
 0x154   :  { %2206 = vmatpush1.bf16.msra.mxu0 %v8032_v48  ;;  %2121 = vmatprep.subr.bf16.mxu1 %v8037_v49  ;;  %v8110_v48 = vld [vmem:[#allocation5 + $0x700] ss:$24 sps:$4 sm:$0xff]   ;;  %v8115_v49 = vld [vmem:[#allocation5 + $0x734] ss:$24 sps:$4 sm:$0xff]  }
 0x155   :  { %2207 = vmatprep.subr.bf16.mxu0 %v8040_v51  ;;  %v8149_v51 = vld [vmem:[#allocation8 + $0xf0] ss:$24 sps:$4 sm:$0xff]  }
 0x157   :  { %2122 = vmatpush1.bf16.msra.mxu1 %v8035_v52  ;;  %v8157_v52 = vld [vmem:[#allocation8 + $0x124] ss:$24 sps:$4 sm:$0xff]  }
 0x158   :  { %2208 = vmatpush1.bf16.msra.mxu0 %v8038_v53  ;;  %2123 = vmatprep.subr.bf16.mxu1 %v8043_v54 }
 0x159   :  { %2209 = vmatprep.subr.bf16.mxu0 %v8046_v56 }
 0x15b   :  { %2124 = vmatpush1.bf16.msra.mxu1 %v8041_v57  ;;  %v8113_v57 = vld [vmem:[#allocation5 + $0x730] ss:$24 sps:$4 sm:$0xff]  }
 0x15c   :  { %2210 = vmatpush1.bf16.msra.mxu0 %v8044_v58  ;;  %2125 = vmatprep.subr.bf16.mxu1 %v8049_v59  ;;  %v8155_v58 = vld [vmem:[#allocation8 + $0x120] ss:$24 sps:$4 sm:$0xff]  }
 0x15d   :  { %2211 = vmatprep.subr.bf16.mxu0 %v8052_v60  ;;  %v8118_v60 = vld [vmem:[#allocation5 + $0x764] ss:$24 sps:$4 sm:$0xff]  }
 0x15f   :  { %2126 = vmatpush1.bf16.msra.mxu1 %v8047_v61  ;;  %v8163_v61 = vld [vmem:[#allocation8 + $0x154] ss:$24 sps:$4 sm:$0xff]  }
 0x160   :  { %2212 = vmatpush1.bf16.msra.mxu0 %v8050_v62  ;;  %2127 = vmatprep.subr.bf16.mxu1 %v8055_v63  ;;  %v8116_v62 = vld [vmem:[#allocation5 + $0x760] ss:$24 sps:$4 sm:$0xff]   ;;  %v8124_v63 = vld [vmem:[#allocation5 + $0x794] ss:$24 sps:$4 sm:$0xff]  }
 0x161   :  { %2213 = vmatprep.subr.bf16.mxu0 %v8058_v0  ;;  %v8161_v0 = vld [vmem:[#allocation8 + $0x150] ss:$24 sps:$4 sm:$0xff]  }
 0x163   :  { %2128 = vmatpush1.bf16.msra.mxu1 %v8053_v1  ;;  %v8169_v1 = vld [vmem:[#allocation8 + $0x184] ss:$24 sps:$4 sm:$0xff]  }
 0x164   :  { %2214 = vmatpush1.bf16.msra.mxu0 %v8056_v2  ;;  %2129 = vmatprep.subr.bf16.mxu1 %v8061_v3  ;;  %v8122_v2 = vld [vmem:[#allocation5 + $0x790] ss:$24 sps:$4 sm:$0xff]   ;;  %v8130_v3 = vld [vmem:[#allocation5 + $0x7c4] ss:$24 sps:$4 sm:$0xff]  }
 0x165   :  { %2215 = vmatprep.subr.bf16.mxu0 %v8064_v4  ;;  %v8167_v4 = vld [vmem:[#allocation8 + $0x180] ss:$24 sps:$4 sm:$0xff]  }
 0x167   :  { %2130 = vmatpush1.bf16.msra.mxu1 %v8059_v5  ;;  %v8175_v5 = vld [vmem:[#allocation8 + $0x1b4] ss:$24 sps:$4 sm:$0xff]  }
 0x168   :  { %2216 = vmatpush1.bf16.msra.mxu0 %v8062_v6  ;;  %2131 = vmatprep.subr.bf16.mxu1 %v8067_v7  ;;  %v8128_v6 = vld [vmem:[#allocation5 + $0x7c0] ss:$24 sps:$4 sm:$0xff]   ;;  %v8136_v7 = vld [vmem:[#allocation5 + $0x7f4] ss:$24 sps:$4 sm:$0xff]  }
 0x169   :  { %2217 = vmatprep.subr.bf16.mxu0 %v8070_v8  ;;  %v8173_v8 = vld [vmem:[#allocation8 + $0x1b0] ss:$24 sps:$4 sm:$0xff]  }
 0x16b   :  { %2132 = vmatpush1.bf16.msra.mxu1 %v8065_v9  ;;  %v8181_v9 = vld [vmem:[#allocation8 + $0x1e4] ss:$24 sps:$4 sm:$0xff]  }
 0x16c   :  { %2218 = vmatpush1.bf16.msra.mxu0 %v8068_v10  ;;  %2133 = vmatprep.subr.bf16.mxu1 %v8073_v11  ;;  %v8134_v10 = vld [vmem:[#allocation5 + $0x7f0] ss:$24 sps:$4 sm:$0xff]   ;;  %v8142_v11 = vld [vmem:[#allocation5 + $0x824] ss:$24 sps:$4 sm:$0xff]  }
 0x16d   :  { %2219 = vmatprep.subr.bf16.mxu0 %v8076_v13  ;;  %v8179_v13 = vld [vmem:[#allocation8 + $0x1e0] ss:$24 sps:$4 sm:$0xff]  }
 0x16f   :  { %2134 = vmatpush1.bf16.msra.mxu1 %v8071_v14  ;;  %v8187_v14 = vld [vmem:[#allocation8 + $0x214] ss:$24 sps:$4 sm:$0xff]  }
 0x170   :  { %2220 = vmatpush1.bf16.msra.mxu0 %v8074_v16  ;;  %2135 = vmatprep.subr.bf16.mxu1 %v8079_v17  ;;  %v8140_v16 = vld [vmem:[#allocation5 + $0x820] ss:$24 sps:$4 sm:$0xff]   ;;  %v8148_v17 = vld [vmem:[#allocation5 + $0x854] ss:$24 sps:$4 sm:$0xff]  }
 0x171   :  { %2221 = vmatprep.subr.bf16.mxu0 %v8082_v18  ;;  %v8185_v18 = vld [vmem:[#allocation8 + $0x210] ss:$24 sps:$4 sm:$0xff]  }
 0x173   :  { %2136 = vmatpush1.bf16.msra.mxu1 %v8077_v19  ;;  %v8193_v19 = vld [vmem:[#allocation8 + $0x244] ss:$24 sps:$4 sm:$0xff]  }
 0x174   :  { %2222 = vmatpush1.bf16.msra.mxu0 %v8080_v20  ;;  %2137 = vmatprep.subr.bf16.mxu1 %v8085_v21  ;;  %v8146_v20 = vld [vmem:[#allocation5 + $0x850] ss:$24 sps:$4 sm:$0xff]   ;;  %v8154_v21 = vld [vmem:[#allocation5 + $0x884] ss:$24 sps:$4 sm:$0xff]  }
 0x175   :  { %2223 = vmatprep.subr.bf16.mxu0 %v8088_v22  ;;  %v8191_v22 = vld [vmem:[#allocation8 + $0x240] ss:$24 sps:$4 sm:$0xff]  }
 0x177   :  { %2138 = vmatpush1.bf16.msra.mxu1 %v8083_v24  ;;  %v8199_v24 = vld [vmem:[#allocation8 + $0x274] ss:$24 sps:$4 sm:$0xff]  }
 0x178   :  { %2224 = vmatpush1.bf16.msra.mxu0 %v8086_v25  ;;  %2139 = vmatprep.subr.bf16.mxu1 %v8091_v26  ;;  %v8152_v25 = vld [vmem:[#allocation5 + $0x880] ss:$24 sps:$4 sm:$0xff]   ;;  %v8160_v26 = vld [vmem:[#allocation5 + $0x8b4] ss:$24 sps:$4 sm:$0xff]  }
 0x179   :  { %2225 = vmatprep.subr.bf16.mxu0 %v8094_v27  ;;  %v8197_v27 = vld [vmem:[#allocation8 + $0x270] ss:$24 sps:$4 sm:$0xff]  }
 0x17b   :  { %2140 = vmatpush1.bf16.msra.mxu1 %v8089_v28  ;;  %v8205_v28 = vld [vmem:[#allocation8 + $0x2a4] ss:$24 sps:$4 sm:$0xff]  }
 0x17c   :  { %2226 = vmatpush1.bf16.msra.mxu0 %v8092_v29  ;;  %4083 = vmatprep.subr.bf16.mxu1 %v8121_v31  ;;  %v8158_v29 = vld [vmem:[#allocation5 + $0x8b0] ss:$24 sps:$4 sm:$0xff]   ;;  %v8166_v31 = vld [vmem:[#allocation5 + $0x8e4] ss:$24 sps:$4 sm:$0xff]  }
 0x17d   :  { %2238 = vmatprep.subr.bf16.mxu0 %v8097_v30  ;;  %v8203_v30 = vld [vmem:[#allocation8 + $0x2a0] ss:$24 sps:$4 sm:$0xff]  }
 0x17e   :  { %2142 = vmatmul.mubr.bf16.vlgmr.msra.gmra.mrb[4].mxu1 %v9358_v23 }
 0x17f   :  { %2228 = vmatmul.mubr.bf16.vlgmr.msra.gmra.mrb[4].mxu0 %v9350_v15  ;;  %4084 = vmatpush1.bf16.msra.mxu1 %v8119_v33  ;;  %v8104_v15 = vld [vmem:[#allocation5 + $0x6a0] ss:$24 sps:$4 sm:$0xff]  }
 0x180   :  { %2239 = vmatpush1.bf16.msra.mxu0 %v8095_v32  ;;  %4085 = vmatprep.subr.bf16.mxu1 %v8127_v35  ;;  %v8211_v32 = vld [vmem:[#allocation8 + $0x2d4] ss:$24 sps:$4 sm:$0xff]  }
 0x181   :  { %2240 = vmatprep.subr.bf16.mxu0 %v8100_v34  ;;  %2270 = vmatprep.mubr.bf16.mxu0 %v9355_v44  ;;  %v8143_v44 = vld [vmem:[#allocation8 + $0xc0] ss:$24 sps:$4 sm:$0xff]   ;;  %v8209_v34 = vld [vmem:[#allocation8 + $0x2d0] ss:$24 sps:$4 sm:$0xff]   ;;  %v8172_v35 = vld [vmem:[#allocation8 + $0xc] ss:$24 sps:$4 sm:$0xff]  }
 0x182   :  { %v8164_v33 = vld [vmem:[#allocation5 + $0x8e0] ss:$24 sps:$4 sm:$0xff]  }
 0x183   :  { %4086 = vmatpush1.bf16.msra.mxu1 %v8125_v37  ;;  %v8170_v37 = vld [vmem:[#allocation8 + $0x8] ss:$24 sps:$4 sm:$0xff]  }
 0x184   :  { %2241 = vmatpush1.bf16.msra.mxu0 %v8098_v36  ;;  %4087 = vmatprep.subr.bf16.mxu1 %v8133_v39  ;;  %v8241_v36 = vld [vmem:[#allocation8 + $0x304] ss:$24 sps:$4 sm:$0xff]   ;;  %v8176_v39 = vld [vmem:[#allocation8 + $0x38] ss:$24 sps:$4 sm:$0xff]  }
 0x185   :  { %2242 = vmatprep.subr.bf16.mxu0 %v8103_v38  ;;  %v8178_v38 = vld [vmem:[#allocation8 + $0x3c] ss:$24 sps:$4 sm:$0xff]  }
 0x187   :  { %4088 = vmatpush1.bf16.msra.mxu1 %v8131_v41  ;;  %v8182_v41 = vld [vmem:[#allocation8 + $0x68] ss:$24 sps:$4 sm:$0xff]  }
 0x188   :  { %2243 = vmatpush1.bf16.msra.mxu0 %v8101_v12  ;;  %4089 = vmatprep.subr.bf16.mxu1 %v8139_v50  ;;  %v8184_v12 = vld [vmem:[#allocation8 + $0x6c] ss:$24 sps:$4 sm:$0xff]   ;;  %v8190_v50 = vld [vmem:[#allocation8 + $0x9c] ss:$24 sps:$4 sm:$0xff]  }
 0x189   :  { %2244 = vmatprep.subr.bf16.mxu0 %v8106_v40  ;;  %v424_v40 = vlaneseq }
 0x18b   :  { %4090 = vmatpush1.bf16.msra.mxu1 %v8137_v43  ;;  %v8196_v43 = vld [vmem:[#allocation8 + $0xcc] ss:$24 sps:$4 sm:$0xff]  }
 0x18c   :  { %2245 = vmatpush1.bf16.msra.mxu0 %v8104_v15  ;;  %4091 = vmatprep.subr.bf16.mxu1 %v8145_v55  ;;  %v9380_v15 = vshrl.u32 %v424_v40, 7  ;;  %v9382_v55 = vld [vmem:[#allocation7] sm:$0x3f]  ;;  %v8235_v40 = vld [vmem:[#allocation8 + $0x2ac] ss:$24 sps:$4 sm:$0xff]  }
 0x18d   :  { %2246 = vmatprep.subr.bf16.mxu0 %v8109_v42  ;;  %v8188_v42 = vld [vmem:[#allocation8 + $0x98] ss:$24 sps:$4 sm:$0xff]  }
 0x18f   :  { %4092 = vmatpush1.bf16.msra.mxu1 %v8143_v44  ;;  %v8202_v44 = vld [vmem:[#allocation8 + $0xfc] ss:$24 sps:$4 sm:$0xff]  }
 0x190   :  { %2247 = vmatpush1.bf16.msra.mxu0 %v8107_v45  ;;  %4093 = vmatprep.subr.bf16.mxu1 %v8151_v47  ;;  %v9385_v45 = vsub.s32 0, %v9380_v15 }
 0x191   :  { %2248 = vmatprep.subr.bf16.mxu0 %v8112_v46  ;;  %v9371_v53 = vpop.f32.mrb[0].mxu1  ;;  %v8194_v46 = vld [vmem:[#allocation8 + $0xc8] ss:$24 sps:$4 sm:$0xff]  }
 0x192   :  { %v9373_v54 = vpop.f32.mrb[1].mxu1  ;;  %v427_v47 = vrot.slane %v9382_v55, %v9385_v45 }
 0x193   :  { %v9375_v56 = vpop.f32.mrb[2].mxu1  ;;  %4094 = vmatpush1.bf16.msra.mxu1 %v8149_v51 }
 0x194   :  { %2249 = vmatpush1.bf16.msra.mxu0 %v8110_v48  ;;  %v9377_v59 = vpop.f32.mrb[3].mxu1  ;;  %4095 = vmatprep.subr.bf16.mxu1 %v8157_v52  ;;  %v1929_v51 = vadd.f32 %v9371_v53, %v427_v47  ;;  %v8208_v52 = vld [vmem:[#allocation8 + $0x12c] ss:$24 sps:$4 sm:$0xff]   ;;  %v8214_v53 = vld [vmem:[#allocation8 + $0x15c] ss:$24 sps:$4 sm:$0xff]  }
 0x195   :  { %2250 = vmatprep.subr.bf16.mxu0 %v8115_v49  ;;  %v8200_v49 = vld [vmem:[#allocation8 + $0xf8] ss:$24 sps:$4 sm:$0xff]  }
 0x197   :  { %4096 = vmatpush1.bf16.msra.mxu1 %v8155_v58 }
 0x198   :  { %2251 = vmatpush1.bf16.msra.mxu0 %v8113_v57  ;;  %4097 = vmatprep.subr.bf16.mxu1 %v8163_v61 }
 0x199   :  { %2252 = vmatprep.subr.bf16.mxu0 %v8118_v60  ;;  %v1933_v60 = vadd.f32 %v9375_v56, %v427_v47  ;;  %v8289_v47 = vld [vmem:[#allocation8 + $0x484] ss:$24 sps:$4 sm:$0xff]  }
 0x19b   :  { %4098 = vmatpush1.bf16.msra.mxu1 %v8161_v0 }
 0x19c   :  { %2253 = vmatpush1.bf16.msra.mxu0 %v8116_v62  ;;  %4099 = vmatprep.subr.bf16.mxu1 %v8169_v1 }
 0x19d   :  { %2254 = vmatprep.subr.bf16.mxu0 %v8124_v63 }
 0x19f   :  { %4100 = vmatpush1.bf16.msra.mxu1 %v8167_v4 }
 0x1a0   :  { %2255 = vmatpush1.bf16.msra.mxu0 %v8122_v2  ;;  %4101 = vmatprep.subr.bf16.mxu1 %v8175_v5  ;;  %v8206_v2 = vld [vmem:[#allocation8 + $0x128] ss:$24 sps:$4 sm:$0xff]  }
 0x1a1   :  { %2256 = vmatprep.subr.bf16.mxu0 %v8130_v3 }
 0x1a3   :  { %4102 = vmatpush1.bf16.msra.mxu1 %v8173_v8  ;;  %v8212_v8 = vld [vmem:[#allocation8 + $0x158] ss:$24 sps:$4 sm:$0xff]  }
 0x1a4   :  { %2257 = vmatpush1.bf16.msra.mxu0 %v8128_v6  ;;  %4103 = vmatprep.subr.bf16.mxu1 %v8181_v9 }
 0x1a5   :  { %2258 = vmatprep.subr.bf16.mxu0 %v8136_v7 }
 0x1a7   :  { %4104 = vmatpush1.bf16.msra.mxu1 %v8179_v13 }
 0x1a8   :  { %2259 = vmatpush1.bf16.msra.mxu0 %v8134_v10  ;;  %4105 = vmatprep.subr.bf16.mxu1 %v8187_v14  ;;  %v8217_v10 = vld [vmem:[#allocation8 + $0x18c] ss:$24 sps:$4 sm:$0xff]  }
 0x1a9   :  { %2260 = vmatprep.subr.bf16.mxu0 %v8142_v11 }
 0x1ab   :  { %4106 = vmatpush1.bf16.msra.mxu1 %v8185_v18  ;;  %v8239_v18 = vld [vmem:[#allocation8 + $0x300] ss:$24 sps:$4 sm:$0xff]  }
 0x1ac   :  { %2261 = vmatpush1.bf16.msra.mxu0 %v8140_v16  ;;  %4107 = vmatprep.subr.bf16.mxu1 %v8193_v19  ;;  %v8215_v16 = vld [vmem:[#allocation8 + $0x188] ss:$24 sps:$4 sm:$0xff]   ;;  %v8247_v19 = vld [vmem:[#allocation8 + $0x334] ss:$24 sps:$4 sm:$0xff]  }
 0x1ad   :  { %2262 = vmatprep.subr.bf16.mxu0 %v8148_v17 }
 0x1af   :  { %4108 = vmatpush1.bf16.msra.mxu1 %v8191_v22  ;;  %v8245_v22 = vld [vmem:[#allocation8 + $0x330] ss:$24 sps:$4 sm:$0xff]  }
 0x1b0   :  { %2263 = vmatpush1.bf16.msra.mxu0 %v8146_v20  ;;  %4109 = vmatprep.subr.bf16.mxu1 %v8199_v24  ;;  %v8220_v20 = vld [vmem:[#allocation8 + $0x1bc] ss:$24 sps:$4 sm:$0xff]  }
 0x1b1   :  { %2264 = vmatprep.subr.bf16.mxu0 %v8154_v21  ;;  %v8218_v21 = vld [vmem:[#allocation8 + $0x1b8] ss:$24 sps:$4 sm:$0xff]   ;;  %v8253_v24 = vld [vmem:[#allocation8 + $0x364] ss:$24 sps:$4 sm:$0xff]  }
 0x1b3   :  { %4110 = vmatpush1.bf16.msra.mxu1 %v8197_v27  ;;  %v8251_v27 = vld [vmem:[#allocation8 + $0x360] ss:$24 sps:$4 sm:$0xff]  }
 0x1b4   :  { %2265 = vmatpush1.bf16.msra.mxu0 %v8152_v25  ;;  %4111 = vmatprep.subr.bf16.mxu1 %v8205_v28  ;;  %v8223_v25 = vld [vmem:[#allocation8 + $0x1ec] ss:$24 sps:$4 sm:$0xff]  }
 0x1b5   :  { %2266 = vmatprep.subr.bf16.mxu0 %v8160_v26  ;;  %v8221_v26 = vld [vmem:[#allocation8 + $0x1e8] ss:$24 sps:$4 sm:$0xff]   ;;  %v8259_v28 = vld [vmem:[#allocation8 + $0x394] ss:$24 sps:$4 sm:$0xff]  }
 0x1b7   :  { %4112 = vmatpush1.bf16.msra.mxu1 %v8203_v30  ;;  %v8224_v30 = vld [vmem:[#allocation8 + $0x218] ss:$24 sps:$4 sm:$0xff]  }
 0x1b8   :  { %2267 = vmatpush1.bf16.msra.mxu0 %v8158_v29  ;;  %4113 = vmatprep.subr.bf16.mxu1 %v8211_v32  ;;  %v8226_v29 = vld [vmem:[#allocation8 + $0x21c] ss:$24 sps:$4 sm:$0xff]  }
 0x1b9   :  { %2268 = vmatprep.subr.bf16.mxu0 %v8166_v31  ;;  %v8257_v31 = vld [vmem:[#allocation8 + $0x390] ss:$24 sps:$4 sm:$0xff]   ;;  %v8265_v32 = vld [vmem:[#allocation8 + $0x3c4] ss:$24 sps:$4 sm:$0xff]  }
 0x1bb   :  { %4114 = vmatpush1.bf16.msra.mxu1 %v8209_v34  ;;  %v8227_v34 = vld [vmem:[#allocation8 + $0x248] ss:$24 sps:$4 sm:$0xff]  }
 0x1bc   :  { %2269 = vmatpush1.bf16.msra.mxu0 %v8164_v33  ;;  %4126 = vmatprep.subr.bf16.mxu1 %v8241_v36  ;;  %v8229_v33 = vld [vmem:[#allocation8 + $0x24c] ss:$24 sps:$4 sm:$0xff]  }
 0x1bd   :  { %4212 = vmatprep.subr.bf16.mxu0 %v8172_v35  ;;  %v8263_v35 = vld [vmem:[#allocation8 + $0x3c0] ss:$24 sps:$4 sm:$0xff]   ;;  %v8271_v36 = vld [vmem:[#allocation8 + $0x3f4] ss:$24 sps:$4 sm:$0xff]  }
 0x1bf   :  { %2271 = vmatmul.mubr.bf16.vlgmr.msra.gmra.mrb[4].mxu0 %v9358_v23  ;;  %v9388_v23 = vsub.s32 1, %v9380_v15 }
 0x1c0   :  { %4213 = vmatpush1.bf16.msra.mxu0 %v8170_v37  ;;  %v8232_v37 = vld [vmem:[#allocation8 + $0x27c] ss:$24 sps:$4 sm:$0xff]  }
 0x1c1   :  { %4214 = vmatprep.subr.bf16.mxu0 %v8178_v38  ;;  %v431_v48 = vrot.slane %v9382_v55, %v9388_v23  ;;  %v8230_v38 = vld [vmem:[#allocation8 + $0x278] ss:$24 sps:$4 sm:$0xff]  }
 0x1c3   :  { %v1931_v57 = vadd.f32 %v9373_v54, %v431_v48  ;;  %v1935_v63 = vadd.f32 %v9377_v59, %v431_v48  ;;  %v8244_v48 = vld [vmem:[#allocation8 + $0x30c] ss:$24 sps:$4 sm:$0xff]  }
 0x1c4   :  { %4215 = vmatpush1.bf16.msra.mxu0 %v8176_v39  ;;  %v8269_v39 = vld [vmem:[#allocation8 + $0x3f0] ss:$24 sps:$4 sm:$0xff]  }
 0x1c5   :  { %4216 = vmatprep.subr.bf16.mxu0 %v8184_v12  ;;  %v8277_v12 = vld [vmem:[#allocation8 + $0x424] ss:$24 sps:$4 sm:$0xff]  }
 0x1c8   :  { %4217 = vmatpush1.bf16.msra.mxu0 %v8182_v41  ;;  %v8233_v41 = vld [vmem:[#allocation8 + $0x2a8] ss:$24 sps:$4 sm:$0xff]  }
 0x1c9   :  { %4218 = vmatprep.subr.bf16.mxu0 %v8190_v50  ;;  %v8275_v50 = vld [vmem:[#allocation8 + $0x420] ss:$24 sps:$4 sm:$0xff]  }
 0x1cc   :  { %4219 = vmatpush1.bf16.msra.mxu0 %v8188_v42  ;;  %v8283_v42 = vld [vmem:[#allocation8 + $0x454] ss:$24 sps:$4 sm:$0xff]  }
 0x1cd   :  { %4220 = vmatprep.subr.bf16.mxu0 %v8196_v43  ;;  %v8238_v43 = vld [vmem:[#allocation8 + $0x2dc] ss:$24 sps:$4 sm:$0xff]  }
 0x1d0   :  { %4221 = vmatpush1.bf16.msra.mxu0 %v8194_v46  ;;  %v8236_v46 = vld [vmem:[#allocation8 + $0x2d8] ss:$24 sps:$4 sm:$0xff]  }
 0x1d1   :  { %4222 = vmatprep.subr.bf16.mxu0 %v8202_v44  ;;  %v8281_v44 = vld [vmem:[#allocation8 + $0x450] ss:$24 sps:$4 sm:$0xff]  }
 0x1d2   :  { %v2014_v58 = vpop.f32.mrb[0].mxu0 }
 0x1d3   :  { %v7592_v61 = vadd.f32 %v2014_v58, %v1929_v51  ;;  %v2016_v62 = vpop.f32.mrb[1].mxu0  ;;  %v8287_v51 = vld [vmem:[#allocation8 + $0x480] ss:$24 sps:$4 sm:$0xff]  }
 0x1d4   :  { %v7594_v0 = vadd.f32 %v2016_v62, %v1931_v57  ;;  %v2018_v1 = vpop.f32.mrb[2].mxu0  ;;  %4223 = vmatpush1.bf16.msra.mxu0 %v8200_v49  ;;  %v8242_v49 = vld [vmem:[#allocation8 + $0x308] ss:$24 sps:$4 sm:$0xff]   ;;  %v8250_v57 = vld [vmem:[#allocation8 + $0x33c] ss:$24 sps:$4 sm:$0xff]  }
 0x1d5   :  { %v2293_v3 = vmul.f32 0.01, %v7592_v61  ;;  %v7596_v4 = vadd.f32 %v2018_v1, %v1933_v60  ;;  %v2020_v5 = vpop.f32.mrb[3].mxu0  ;;  %4224 = vmatprep.subr.bf16.mxu0 %v8208_v52  ;;  %vm2281_vm0 = vcmp.gt.f32.partialorder %v7592_v61, 0.0  ;;  %v8295_v52 = vld [vmem:[#allocation8 + $0x4b4] ss:$24 sps:$4 sm:$0xff]  }
 0x1d6   :  { %v2294_v6 = vmul.f32 0.01, %v7594_v0  ;;  %v7598_v7 = vadd.f32 %v2020_v5, %v1935_v63  ;;  %vm2282_vm1 = vcmp.gt.f32.partialorder %v7594_v0, 0.0  ;;  %v8248_v58 = vld [vmem:[#allocation8 + $0x338] ss:$24 sps:$4 sm:$0xff]  }
 0x1d7   :  { %vm2287_vm2 = vcmp.gt.f32.partialorder %v7596_v4, 0.0  ;;  %v2299_v54 = vmul.f32 0.01, %v7596_v4  ;;  %v2305_v59 = vsel %vm2281_vm0, %v7592_v61, %v2293_v3  ;;  %v8293_v60 = vld [vmem:[#allocation8 + $0x4b0] ss:$24 sps:$4 sm:$0xff]  }
 0x1d8   :  { %vm2288_vm3 = vcmp.gt.f32.partialorder %v7598_v7, 0.0  ;;  %v2300_v56 = vmul.f32 0.01, %v7598_v7  ;;  %4225 = vmatpush1.bf16.msra.mxu0 %v8206_v2  ;;  %v2306_v13 = vsel %vm2282_vm1, %v7594_v0, %v2294_v6  ;;  %v8301_v61 = vld [vmem:[#allocation8 + $0x4e4] ss:$24 sps:$4 sm:$0xff]  }
 0x1d9   :  { %v2311_v9 = vsel %vm2287_vm2, %v7596_v4, %v2299_v54  ;;  %4226 = vmatprep.subr.bf16.mxu0 %v8214_v53  ;;  %v8256_v62 = vld [vmem:[#allocation8 + $0x36c] ss:$24 sps:$4 sm:$0xff]   ;;  %v8254_v63 = vld [vmem:[#allocation8 + $0x368] ss:$24 sps:$4 sm:$0xff]   ;;  %v8262_v2 = vld [vmem:[#allocation8 + $0x39c] ss:$24 sps:$4 sm:$0xff]  }
 0x1da   :  { %v9398_v11 = vpack.c.bf16 %v2311_v9, %v2305_v59  ;;  %v2312_v14 = vsel %vm2288_vm3, %v7598_v7, %v2300_v56  ;;  %v8299_v0 = vld [vmem:[#allocation8 + $0x4e0] ss:$24 sps:$4 sm:$0xff]   ;;  %v8307_v1 = vld [vmem:[#allocation8 + $0x514] ss:$24 sps:$4 sm:$0xff]   ;;  %v8305_v4 = vld [vmem:[#allocation8 + $0x510] ss:$24 sps:$4 sm:$0xff]  }
 0x1db   :  { %v9400_v17 = vpack.c.bf16 %v2312_v14, %v2306_v13  ;;  %v8260_v3 = vld [vmem:[#allocation8 + $0x398] ss:$24 sps:$4 sm:$0xff]   ;;  %v8313_v5 = vld [vmem:[#allocation8 + $0x544] ss:$24 sps:$4 sm:$0xff]   ;;  %v8266_v6 = vld [vmem:[#allocation8 + $0x3c8] ss:$24 sps:$4 sm:$0xff]  }
 0x1dc   :  { %4227 = vmatpush1.bf16.msra.mxu0 %v8212_v8  ;;  %v8268_v53 = vld [vmem:[#allocation8 + $0x3cc] ss:$24 sps:$4 sm:$0xff]   ;;  %v8311_v7 = vld [vmem:[#allocation8 + $0x540] ss:$24 sps:$4 sm:$0xff]   ;;  %v8274_v56 = vld [vmem:[#allocation8 + $0x3fc] ss:$24 sps:$4 sm:$0xff]  }
 0x1dd   :  { %4115 = vmatprep.mubr.bf16.mxu1 %v9400_v17  ;;  %4244 = vmatprep.mubr.bf16.mxu0 %v9400_v17  ;;  %v8319_v54 = vld [vmem:[#allocation8 + $0x574] ss:$24 sps:$4 sm:$0xff]   ;;  %v8272_v8 = vld [vmem:[#allocation8 + $0x3f8] ss:$24 sps:$4 sm:$0xff]   ;;  %v8325_v9 = vld [vmem:[#allocation8 + $0x5a4] ss:$24 sps:$4 sm:$0xff]  }
 0x1de   :  { %4116 = vmatmul.mubr.bf16.vlgmr.msra.gmra.mrb[8].mxu1 %v9398_v11  ;;  %4228 = vmatprep.subr.bf16.mxu0 %v8217_v10  ;;  %v8317_v59 = vld [vmem:[#allocation8 + $0x570] ss:$24 sps:$4 sm:$0xff]   ;;  %v8280_v10 = vld [vmem:[#allocation8 + $0x42c] ss:$24 sps:$4 sm:$0xff]   ;;  %v8323_v14 = vld [vmem:[#allocation8 + $0x5a0] ss:$24 sps:$4 sm:$0xff]  }
 0x1df   :  { %4127 = vmatpush1.bf16.msra.mxu1 %v8239_v18  ;;  %v8278_v13 = vld [vmem:[#allocation8 + $0x428] ss:$24 sps:$4 sm:$0xff]   ;;  %v8286_v18 = vld [vmem:[#allocation8 + $0x45c] ss:$24 sps:$4 sm:$0xff]  }
 0x1e0   :  { %4229 = vmatpush1.bf16.msra.mxu0 %v8215_v16  ;;  %4128 = vmatprep.subr.bf16.mxu1 %v8247_v19  ;;  %v8331_v16 = vld [vmem:[#allocation8 + $0x5d4] ss:$24 sps:$4 sm:$0xff]   ;;  %v8284_v19 = vld [vmem:[#allocation8 + $0x458] ss:$24 sps:$4 sm:$0xff]  }
 0x1e1   :  { %4230 = vmatprep.subr.bf16.mxu0 %v8220_v20  ;;  %v8329_v20 = vld [vmem:[#allocation8 + $0x5d0] ss:$24 sps:$4 sm:$0xff]  }
 0x1e3   :  { %4129 = vmatpush1.bf16.msra.mxu1 %v8245_v22  ;;  %v8292_v22 = vld [vmem:[#allocation8 + $0x48c] ss:$24 sps:$4 sm:$0xff]  }
 0x1e4   :  { %4231 = vmatpush1.bf16.msra.mxu0 %v8218_v21  ;;  %4130 = vmatprep.subr.bf16.mxu1 %v8253_v24  ;;  %v8337_v21 = vld [vmem:[#allocation8 + $0x604] ss:$24 sps:$4 sm:$0xff]   ;;  %v8290_v24 = vld [vmem:[#allocation8 + $0x488] ss:$24 sps:$4 sm:$0xff]  }
 0x1e5   :  { %4232 = vmatprep.subr.bf16.mxu0 %v8223_v25  ;;  %v8298_v25 = vld [vmem:[#allocation8 + $0x4bc] ss:$24 sps:$4 sm:$0xff]  }
 0x1e7   :  { %4131 = vmatpush1.bf16.msra.mxu1 %v8251_v27  ;;  %v8304_v27 = vld [vmem:[#allocation8 + $0x4ec] ss:$24 sps:$4 sm:$0xff]  }
 0x1e8   :  { %4233 = vmatpush1.bf16.msra.mxu0 %v8221_v26  ;;  %4132 = vmatprep.subr.bf16.mxu1 %v8259_v28  ;;  %v8296_v26 = vld [vmem:[#allocation8 + $0x4b8] ss:$24 sps:$4 sm:$0xff]   ;;  %v8302_v28 = vld [vmem:[#allocation8 + $0x4e8] ss:$24 sps:$4 sm:$0xff]  }
 0x1e9   :  { %4234 = vmatprep.subr.bf16.mxu0 %v8226_v29  ;;  %v8310_v29 = vld [vmem:[#allocation8 + $0x51c] ss:$24 sps:$4 sm:$0xff]  }
 0x1eb   :  { %4133 = vmatpush1.bf16.msra.mxu1 %v8257_v31  ;;  %v8316_v31 = vld [vmem:[#allocation8 + $0x54c] ss:$24 sps:$4 sm:$0xff]  }
 0x1ec   :  { %4235 = vmatpush1.bf16.msra.mxu0 %v8224_v30  ;;  %4134 = vmatprep.subr.bf16.mxu1 %v8265_v32  ;;  %v8308_v30 = vld [vmem:[#allocation8 + $0x518] ss:$24 sps:$4 sm:$0xff]   ;;  %v8314_v32 = vld [vmem:[#allocation8 + $0x548] ss:$24 sps:$4 sm:$0xff]  }
 0x1ed   :  { %4236 = vmatprep.subr.bf16.mxu0 %v8229_v33  ;;  %v8322_v33 = vld [vmem:[#allocation8 + $0x57c] ss:$24 sps:$4 sm:$0xff]  }
 0x1ef   :  { %4135 = vmatpush1.bf16.msra.mxu1 %v8263_v35  ;;  %v8328_v35 = vld [vmem:[#allocation8 + $0x5ac] ss:$24 sps:$4 sm:$0xff]  }
 0x1f0   :  { %4237 = vmatpush1.bf16.msra.mxu0 %v8227_v34  ;;  %4136 = vmatprep.subr.bf16.mxu1 %v8271_v36  ;;  %v8320_v34 = vld [vmem:[#allocation8 + $0x578] ss:$24 sps:$4 sm:$0xff]   ;;  %v8326_v36 = vld [vmem:[#allocation8 + $0x5a8] ss:$24 sps:$4 sm:$0xff]  }
 0x1f1   :  { %4238 = vmatprep.subr.bf16.mxu0 %v8232_v37  ;;  %v8334_v37 = vld [vmem:[#allocation8 + $0x5dc] ss:$24 sps:$4 sm:$0xff]  }
 0x1f3   :  { %4137 = vmatpush1.bf16.msra.mxu1 %v8269_v39  ;;  %v8340_v39 = vld [vmem:[#allocation8 + $0x60c] ss:$24 sps:$4 sm:$0xff]  }
 0x1f4   :  { %4239 = vmatpush1.bf16.msra.mxu0 %v8230_v38  ;;  %4138 = vmatprep.subr.bf16.mxu1 %v8277_v12  ;;  %v8332_v38 = vld [vmem:[#allocation8 + $0x5d8] ss:$24 sps:$4 sm:$0xff]   ;;  %v9407_v12 = vsub.s32 2, %v9380_v15 }
 0x1f5   :  { %4240 = vmatprep.subr.bf16.mxu0 %v8235_v40  ;;  %v9410_v40 = vsub.s32 3, %v9380_v15 }
 0x1f7   :  { %4139 = vmatpush1.bf16.msra.mxu1 %v8275_v50  ;;  %v439_v50 = vrot.slane %v9382_v55, %v9410_v40 }
 0x1f8   :  { %4241 = vmatpush1.bf16.msra.mxu0 %v8233_v41  ;;  %4140 = vmatprep.subr.bf16.mxu1 %v8283_v42  ;;  %v435_v41 = vrot.slane %v9382_v55, %v9407_v12 }
 0x1f9   :  { %4242 = vmatprep.subr.bf16.mxu0 %v8238_v43 }
 0x1fb   :  { %4141 = vmatpush1.bf16.msra.mxu1 %v8281_v44 }
 0x1fc   :  { %4243 = vmatpush1.bf16.msra.mxu0 %v8236_v46  ;;  %4142 = vmatprep.subr.bf16.mxu1 %v8289_v47 }
 0x1fd   :  { %4255 = vmatprep.subr.bf16.mxu0 %v8244_v48 }
 0x1ff   :  { %4245 = vmatmul.mubr.bf16.vlgmr.msra.gmra.mrb[8].mxu0 %v9398_v11  ;;  %4143 = vmatpush1.bf16.msra.mxu1 %v8287_v51 }
 0x200   :  { %4256 = vmatpush1.bf16.msra.mxu0 %v8242_v49  ;;  %4144 = vmatprep.subr.bf16.mxu1 %v8295_v52 }
 0x201   :  { %4257 = vmatprep.subr.bf16.mxu0 %v8250_v57 }
 0x203   :  { %4145 = vmatpush1.bf16.msra.mxu1 %v8293_v60 }
 0x204   :  { %4258 = vmatpush1.bf16.msra.mxu0 %v8248_v58  ;;  %4146 = vmatprep.subr.bf16.mxu1 %v8301_v61 }
 0x205   :  { %4259 = vmatprep.subr.bf16.mxu0 %v8256_v62 }
 0x207   :  { %4147 = vmatpush1.bf16.msra.mxu1 %v8299_v0 }
 0x208   :  { %4260 = vmatpush1.bf16.msra.mxu0 %v8254_v63  ;;  %4148 = vmatprep.subr.bf16.mxu1 %v8307_v1 }
 0x209   :  { %4261 = vmatprep.subr.bf16.mxu0 %v8262_v2  ;;  %v8335_v2 = vld [vmem:[#allocation8 + $0x600] ss:$24 sps:$4 sm:$0xff]  }
 0x20b   :  { %4149 = vmatpush1.bf16.msra.mxu1 %v8305_v4  ;;  %v8343_v4 = vld [vmem:[#allocation8 + $0x634] ss:$24 sps:$4 sm:$0xff]  }
 0x20c   :  { %4262 = vmatpush1.bf16.msra.mxu0 %v8260_v3  ;;  %4150 = vmatprep.subr.bf16.mxu1 %v8313_v5  ;;  %v8338_v3 = vld [vmem:[#allocation8 + $0x608] ss:$24 sps:$4 sm:$0xff]   ;;  %v8346_v5 = vld [vmem:[#allocation8 + $0x63c] ss:$24 sps:$4 sm:$0xff]  }
 0x20d   :  { %4263 = vmatprep.subr.bf16.mxu0 %v8268_v53  ;;  %v8341_v53 = vld [vmem:[#allocation8 + $0x630] ss:$24 sps:$4 sm:$0xff]  }
 0x20f   :  { %4151 = vmatpush1.bf16.msra.mxu1 %v8311_v7  ;;  %v8349_v7 = vld [vmem:[#allocation8 + $0x664] ss:$24 sps:$4 sm:$0xff]  }
 0x210   :  { %4264 = vmatpush1.bf16.msra.mxu0 %v8266_v6  ;;  %4152 = vmatprep.subr.bf16.mxu1 %v8319_v54  ;;  %v8344_v6 = vld [vmem:[#allocation8 + $0x638] ss:$24 sps:$4 sm:$0xff]   ;;  %v8352_v54 = vld [vmem:[#allocation8 + $0x66c] ss:$24 sps:$4 sm:$0xff]  }
 0x211   :  { %4265 = vmatprep.subr.bf16.mxu0 %v8274_v56  ;;  %v8347_v56 = vld [vmem:[#allocation8 + $0x660] ss:$24 sps:$4 sm:$0xff]  }
 0x213   :  { %4153 = vmatpush1.bf16.msra.mxu1 %v8317_v59  ;;  %v8355_v59 = vld [vmem:[#allocation8 + $0x694] ss:$24 sps:$4 sm:$0xff]  }
 0x214   :  { %4266 = vmatpush1.bf16.msra.mxu0 %v8272_v8  ;;  %4154 = vmatprep.subr.bf16.mxu1 %v8325_v9  ;;  %v8350_v8 = vld [vmem:[#allocation8 + $0x668] ss:$24 sps:$4 sm:$0xff]   ;;  %v8358_v9 = vld [vmem:[#allocation8 + $0x69c] ss:$24 sps:$4 sm:$0xff]  }
 0x215   :  { %4267 = vmatprep.subr.bf16.mxu0 %v8280_v10  ;;  %v8353_v10 = vld [vmem:[#allocation8 + $0x690] ss:$24 sps:$4 sm:$0xff]  }
 0x217   :  { %4155 = vmatpush1.bf16.msra.mxu1 %v8323_v14  ;;  %v8361_v14 = vld [vmem:[#allocation8 + $0x6c4] ss:$24 sps:$4 sm:$0xff]  }
 0x218   :  { %4268 = vmatpush1.bf16.msra.mxu0 %v8278_v13  ;;  %4156 = vmatprep.subr.bf16.mxu1 %v8331_v16  ;;  %v8356_v13 = vld [vmem:[#allocation8 + $0x698] ss:$24 sps:$4 sm:$0xff]   ;;  %v8364_v16 = vld [vmem:[#allocation8 + $0x6cc] ss:$24 sps:$4 sm:$0xff]  }
 0x219   :  { %4269 = vmatprep.subr.bf16.mxu0 %v8286_v18  ;;  %v8359_v18 = vld [vmem:[#allocation8 + $0x6c0] ss:$24 sps:$4 sm:$0xff]  }
 0x21b   :  { %4157 = vmatpush1.bf16.msra.mxu1 %v8329_v20  ;;  %v8367_v20 = vld [vmem:[#allocation8 + $0x6f4] ss:$24 sps:$4 sm:$0xff]  }
 0x21c   :  { %4270 = vmatpush1.bf16.msra.mxu0 %v8284_v19  ;;  %4169 = vmatprep.subr.bf16.mxu1 %v8337_v21  ;;  %v8362_v19 = vld [vmem:[#allocation8 + $0x6c8] ss:$24 sps:$4 sm:$0xff]   ;;  %v8370_v21 = vld [vmem:[#allocation8 + $0x6fc] ss:$24 sps:$4 sm:$0xff]  }
 0x21d   :  { %4271 = vmatprep.subr.bf16.mxu0 %v8292_v22  ;;  %v8365_v22 = vld [vmem:[#allocation8 + $0x6f0] ss:$24 sps:$4 sm:$0xff]  }
 0x220   :  { %4272 = vmatpush1.bf16.msra.mxu0 %v8290_v24  ;;  %v8368_v24 = vld [vmem:[#allocation8 + $0x6f8] ss:$24 sps:$4 sm:$0xff]  }
 0x221   :  { %4273 = vmatprep.subr.bf16.mxu0 %v8298_v25  ;;  %v8373_v25 = vld [vmem:[#allocation8 + $0x724] ss:$24 sps:$4 sm:$0xff]  }
 0x224   :  { %4274 = vmatpush1.bf16.msra.mxu0 %v8296_v26  ;;  %v8376_v26 = vld [vmem:[#allocation8 + $0x72c] ss:$24 sps:$4 sm:$0xff]  }
 0x225   :  { %4275 = vmatprep.subr.bf16.mxu0 %v8304_v27  ;;  %v8371_v27 = vld [vmem:[#allocation8 + $0x720] ss:$24 sps:$4 sm:$0xff]  }
 0x228   :  { %4276 = vmatpush1.bf16.msra.mxu0 %v8302_v28  ;;  %v8374_v28 = vld [vmem:[#allocation8 + $0x728] ss:$24 sps:$4 sm:$0xff]  }
 0x229   :  { %4277 = vmatprep.subr.bf16.mxu0 %v8310_v29  ;;  %v8379_v29 = vld [vmem:[#allocation8 + $0x754] ss:$24 sps:$4 sm:$0xff]  }
 0x22c   :  { %4278 = vmatpush1.bf16.msra.mxu0 %v8308_v30  ;;  %v8382_v30 = vld [vmem:[#allocation8 + $0x75c] ss:$24 sps:$4 sm:$0xff]  }
 0x22d   :  { %4279 = vmatprep.subr.bf16.mxu0 %v8316_v31  ;;  %v8377_v31 = vld [vmem:[#allocation8 + $0x750] ss:$24 sps:$4 sm:$0xff]  }
 0x230   :  { %4280 = vmatpush1.bf16.msra.mxu0 %v8314_v32  ;;  %v8380_v32 = vld [vmem:[#allocation8 + $0x758] ss:$24 sps:$4 sm:$0xff]  }
 0x231   :  { %4281 = vmatprep.subr.bf16.mxu0 %v8322_v33  ;;  %v8385_v33 = vld [vmem:[#allocation8 + $0x784] ss:$24 sps:$4 sm:$0xff]  }
 0x234   :  { %4282 = vmatpush1.bf16.msra.mxu0 %v8320_v34  ;;  %v8388_v34 = vld [vmem:[#allocation8 + $0x78c] ss:$24 sps:$4 sm:$0xff]  }
 0x235   :  { %4283 = vmatprep.subr.bf16.mxu0 %v8328_v35  ;;  %v8383_v35 = vld [vmem:[#allocation8 + $0x780] ss:$24 sps:$4 sm:$0xff]  }
 0x238   :  { %4284 = vmatpush1.bf16.msra.mxu0 %v8326_v36  ;;  %v8386_v36 = vld [vmem:[#allocation8 + $0x788] ss:$24 sps:$4 sm:$0xff]  }
 0x239   :  { %4285 = vmatprep.subr.bf16.mxu0 %v8334_v37  ;;  %v8391_v37 = vld [vmem:[#allocation8 + $0x7b4] ss:$24 sps:$4 sm:$0xff]  }
 0x23c   :  { %4286 = vmatpush1.bf16.msra.mxu0 %v8332_v38  ;;  %v8394_v38 = vld [vmem:[#allocation8 + $0x7bc] ss:$24 sps:$4 sm:$0xff]  }
 0x23d   :  { %4298 = vmatprep.subr.bf16.mxu0 %v8340_v39  ;;  %v8389_v39 = vld [vmem:[#allocation8 + $0x7b0] ss:$24 sps:$4 sm:$0xff]  }
 0x251   :  { %v2143_v42 = vpop.f32.mrb[4].mxu1 }
 0x252   :  { %v7599_v43 = vadd.f32 %v2143_v42, %v435_v41  ;;  %v2145_v46 = vpop.f32.mrb[5].mxu1  ;;  %v8400_v42 = vld [vmem:[#allocation8 + $0x7ec] ss:$24 sps:$4 sm:$0xff]  }
 0x253   :  { %v7600_v44 = vadd.f32 %v2145_v46, %v439_v50  ;;  %v2147_v47 = vpop.f32.mrb[6].mxu1  ;;  %v8398_v46 = vld [vmem:[#allocation8 + $0x7e8] ss:$24 sps:$4 sm:$0xff]  }
 0x254   :  { %v2295_v48 = vmul.f32 0.01, %v7599_v43  ;;  %v7601_v49 = vadd.f32 %v2147_v47, %v435_v41  ;;  %v2149_v51 = vpop.f32.mrb[7].mxu1  ;;  %vm2283_vm4 = vcmp.gt.f32.partialorder %v7599_v43, 0.0  ;;  %v8392_v41 = vld [vmem:[#allocation8 + $0x7b8] ss:$24 sps:$4 sm:$0xff]  }
 0x255   :  { %v2296_v52 = vmul.f32 0.01, %v7600_v44  ;;  %v7602_v57 = vadd.f32 %v2149_v51, %v439_v50  ;;  %vm2284_vm5 = vcmp.gt.f32.partialorder %v7600_v44, 0.0  ;;  %v8397_v50 = vld [vmem:[#allocation8 + $0x7e4] ss:$24 sps:$4 sm:$0xff]  }
 0x256   :  { %vm2289_vm6 = vcmp.gt.f32.partialorder %v7601_v49, 0.0  ;;  %v2301_v58 = vmul.f32 0.01, %v7601_v49  ;;  %v2307_v61 = vsel %vm2283_vm4, %v7599_v43, %v2295_v48  ;;  %v8395_v43 = vld [vmem:[#allocation8 + $0x7e0] ss:$24 sps:$4 sm:$0xff]  }
 0x257   :  { %vm2290_vm7 = vcmp.gt.f32.partialorder %v7602_v57, 0.0  ;;  %v2302_v60 = vmul.f32 0.01, %v7602_v57  ;;  %v2308_v55 = vsel %vm2284_vm5, %v7600_v44, %v2296_v52  ;;  %v8403_v44 = vld [vmem:[#allocation8 + $0x814] ss:$24 sps:$4 sm:$0xff]  }
 0x258   :  { %v2313_v62 = vsel %vm2289_vm6, %v7601_v49, %v2301_v58  ;;  %v8406_v47 = vld [vmem:[#allocation8 + $0x81c] ss:$24 sps:$4 sm:$0xff]   ;;  %v8401_v48 = vld [vmem:[#allocation8 + $0x810] ss:$24 sps:$4 sm:$0xff]   ;;  %v8412_v52 = vld [vmem:[#allocation8 + $0x84c] ss:$24 sps:$4 sm:$0xff]  }
 0x259   :  { %v9416_v63 = vpack.c.bf16 %v2313_v62, %v2307_v61  ;;  %v2314_v0 = vsel %vm2290_vm7, %v7602_v57, %v2302_v60  ;;  %v8404_v49 = vld [vmem:[#allocation8 + $0x818] ss:$24 sps:$4 sm:$0xff]   ;;  %v8409_v51 = vld [vmem:[#allocation8 + $0x844] ss:$24 sps:$4 sm:$0xff]   ;;  %v8410_v58 = vld [vmem:[#allocation8 + $0x848] ss:$24 sps:$4 sm:$0xff]  }
 0x25a   :  { %v9418_v1 = vpack.c.bf16 %v2314_v0, %v2308_v55  ;;  %v8407_v57 = vld [vmem:[#allocation8 + $0x840] ss:$24 sps:$4 sm:$0xff]   ;;  %v9425_v60 = vsub.s32 4, %v9380_v15  ;;  %v8415_v61 = vld [vmem:[#allocation8 + $0x874] ss:$24 sps:$4 sm:$0xff]   ;;  %v9428_v55 = vsub.s32 5, %v9380_v15 }
 0x25b   :  { %v8418_v62 = vld [vmem:[#allocation8 + $0x87c] ss:$24 sps:$4 sm:$0xff]   ;;  %v8413_v0 = vld [vmem:[#allocation8 + $0x870] ss:$24 sps:$4 sm:$0xff]   ;;  %v8419_v15 = vld [vmem:[#allocation8 + $0x8a0] ss:$24 sps:$4 sm:$0xff]  }
 0x25c   :  { %4158 = vmatprep.mubr.bf16.mxu1 %v9418_v1  ;;  %4287 = vmatprep.mubr.bf16.mxu0 %v9418_v1 }
 0x25d   :  { %4159 = vmatmul.mubr.bf16.vlgmr.msra.gmra.mrb[8].mxu1 %v9416_v63  ;;  %4288 = vmatmul.mubr.bf16.vlgmr.msra.gmra.mrb[8].mxu0 %v9416_v63 }
 0x25e   :  { %4170 = vmatpush1.bf16.msra.mxu1 %v8335_v2  ;;  %4299 = vmatpush1.bf16.msra.mxu0 %v8338_v3  ;;  %v9007_v2 = vld [vmem:[#allocation7] sm:$0x3f] }
 0x25f   :  { %4171 = vmatprep.subr.bf16.mxu1 %v8343_v4  ;;  %4300 = vmatprep.subr.bf16.mxu0 %v8346_v5  ;;  %v443_v3 = vrot.slane %v9007_v2, %v9425_v60  ;;  %v8416_v4 = vld [vmem:[#allocation8 + $0x878] ss:$24 sps:$4 sm:$0xff]   ;;  %v447_v5 = vrot.slane %v9007_v2, %v9428_v55 }
 0x260   :  { %v8461_v2 = vld [vmem:[#allocation8 + $0x1f0] ss:$24 sps:$4 sm:$0xff]  }
 0x262   :  { %4172 = vmatpush1.bf16.msra.mxu1 %v8341_v53  ;;  %4301 = vmatpush1.bf16.msra.mxu0 %v8344_v6  ;;  %v8421_v53 = vld [vmem:[#allocation8 + $0x8a4] ss:$24 sps:$4 sm:$0xff]  }
 0x263   :  { %4173 = vmatprep.subr.bf16.mxu1 %v8349_v7  ;;  %4302 = vmatprep.subr.bf16.mxu0 %v8352_v54  ;;  %v8424_v6 = vld [vmem:[#allocation8 + $0x8ac] ss:$24 sps:$4 sm:$0xff]  }
 0x266   :  { %4174 = vmatpush1.bf16.msra.mxu1 %v8347_v56  ;;  %4303 = vmatpush1.bf16.msra.mxu0 %v8350_v8  ;;  %v8422_v8 = vld [vmem:[#allocation8 + $0x8a8] ss:$24 sps:$4 sm:$0xff]  }
 0x267   :  { %4175 = vmatprep.subr.bf16.mxu1 %v8355_v59  ;;  %4304 = vmatprep.subr.bf16.mxu0 %v8358_v9 }
 0x26a   :  { %4176 = vmatpush1.bf16.msra.mxu1 %v8353_v10  ;;  %4305 = vmatpush1.bf16.msra.mxu0 %v8356_v13  ;;  %v8427_v10 = vld [vmem:[#allocation8 + $0x8d4] ss:$24 sps:$4 sm:$0xff]  }
 0x26b   :  { %4177 = vmatprep.subr.bf16.mxu1 %v8361_v14  ;;  %4306 = vmatprep.subr.bf16.mxu0 %v8364_v16  ;;  %v8430_v13 = vld [vmem:[#allocation8 + $0x8dc] ss:$24 sps:$4 sm:$0xff]  }
 0x26e   :  { %4178 = vmatpush1.bf16.msra.mxu1 %v8359_v18  ;;  %4307 = vmatpush1.bf16.msra.mxu0 %v8362_v19 }
 0x26f   :  { %4179 = vmatprep.subr.bf16.mxu1 %v8367_v20  ;;  %4308 = vmatprep.subr.bf16.mxu0 %v8370_v21  ;;  %v8425_v21 = vld [vmem:[#allocation8 + $0x8d0] ss:$24 sps:$4 sm:$0xff]  }
 0x272   :  { %4180 = vmatpush1.bf16.msra.mxu1 %v8365_v22  ;;  %4309 = vmatpush1.bf16.msra.mxu0 %v8368_v24  ;;  %v8428_v24 = vld [vmem:[#allocation8 + $0x8d8] ss:$24 sps:$4 sm:$0xff]  }
 0x273   :  { %4181 = vmatprep.subr.bf16.mxu1 %v8373_v25  ;;  %4310 = vmatprep.subr.bf16.mxu0 %v8376_v26  ;;  %v8433_v26 = vld [vmem:[#allocation8 + $0x14] ss:$24 sps:$4 sm:$0xff]  }
 0x276   :  { %4182 = vmatpush1.bf16.msra.mxu1 %v8371_v27  ;;  %4311 = vmatpush1.bf16.msra.mxu0 %v8374_v28 }
 0x277   :  { %4183 = vmatprep.subr.bf16.mxu1 %v8379_v29  ;;  %4312 = vmatprep.subr.bf16.mxu0 %v8382_v30 }
 0x27a   :  { %4184 = vmatpush1.bf16.msra.mxu1 %v8377_v31  ;;  %4313 = vmatpush1.bf16.msra.mxu0 %v8380_v32 }
 0x27b   :  { %4185 = vmatprep.subr.bf16.mxu1 %v8385_v33  ;;  %4314 = vmatprep.subr.bf16.mxu0 %v8388_v34  ;;  %v8431_v33 = vld [vmem:[#allocation8 + $0x10] ss:$24 sps:$4 sm:$0xff]   ;;  %v8436_v34 = vld [vmem:[#allocation8 + $0x44] ss:$24 sps:$4 sm:$0xff]  }
 0x27e   :  { %4186 = vmatpush1.bf16.msra.mxu1 %v8383_v35  ;;  %4315 = vmatpush1.bf16.msra.mxu0 %v8386_v36  ;;  %v8434_v35 = vld [vmem:[#allocation8 + $0x40] ss:$24 sps:$4 sm:$0xff]   ;;  %v8439_v36 = vld [vmem:[#allocation8 + $0x74] ss:$24 sps:$4 sm:$0xff]  }
 0x27f   :  { %4187 = vmatprep.subr.bf16.mxu1 %v8391_v37  ;;  %4316 = vmatprep.subr.bf16.mxu0 %v8394_v38  ;;  %v8437_v37 = vld [vmem:[#allocation8 + $0x70] ss:$24 sps:$4 sm:$0xff]   ;;  %v8442_v38 = vld [vmem:[#allocation8 + $0xa4] ss:$24 sps:$4 sm:$0xff]  }
 0x282   :  { %4188 = vmatpush1.bf16.msra.mxu1 %v8389_v39  ;;  %4317 = vmatpush1.bf16.msra.mxu0 %v8392_v41  ;;  %v8440_v39 = vld [vmem:[#allocation8 + $0xa0] ss:$24 sps:$4 sm:$0xff]   ;;  %v8445_v41 = vld [vmem:[#allocation8 + $0xd4] ss:$24 sps:$4 sm:$0xff]  }
 0x283   :  { %4189 = vmatprep.subr.bf16.mxu1 %v8397_v50  ;;  %4318 = vmatprep.subr.bf16.mxu0 %v8400_v42  ;;  %v8443_v50 = vld [vmem:[#allocation8 + $0xd0] ss:$24 sps:$4 sm:$0xff]   ;;  %v8448_v42 = vld [vmem:[#allocation8 + $0x104] ss:$24 sps:$4 sm:$0xff]  }
 0x286   :  { %4190 = vmatpush1.bf16.msra.mxu1 %v8395_v43  ;;  %4319 = vmatpush1.bf16.msra.mxu0 %v8398_v46  ;;  %v8446_v43 = vld [vmem:[#allocation8 + $0x100] ss:$24 sps:$4 sm:$0xff]   ;;  %v8451_v46 = vld [vmem:[#allocation8 + $0x134] ss:$24 sps:$4 sm:$0xff]  }
 0x287   :  { %4191 = vmatprep.subr.bf16.mxu1 %v8403_v44  ;;  %4320 = vmatprep.subr.bf16.mxu0 %v8406_v47  ;;  %v8454_v44 = vld [vmem:[#allocation8 + $0x164] ss:$24 sps:$4 sm:$0xff]   ;;  %v8452_v47 = vld [vmem:[#allocation8 + $0x160] ss:$24 sps:$4 sm:$0xff]  }
 0x28a   :  { %4192 = vmatpush1.bf16.msra.mxu1 %v8401_v48  ;;  %4321 = vmatpush1.bf16.msra.mxu0 %v8404_v49  ;;  %v8457_v48 = vld [vmem:[#allocation8 + $0x194] ss:$24 sps:$4 sm:$0xff]   ;;  %v8455_v49 = vld [vmem:[#allocation8 + $0x190] ss:$24 sps:$4 sm:$0xff]  }
 0x28b   :  { %4193 = vmatprep.subr.bf16.mxu1 %v8409_v51  ;;  %4322 = vmatprep.subr.bf16.mxu0 %v8412_v52  ;;  %v8551_v51 = vld [vmem:[#allocation11] ss:$24 sps:$4 sm:$0xff]   ;;  %v8553_v52 = vld [vmem:[#allocation11 + $0x4] ss:$24 sps:$4 sm:$0xff]  }
 0x28e   :  { %4194 = vmatpush1.bf16.msra.mxu1 %v8407_v57  ;;  %4323 = vmatpush1.bf16.msra.mxu0 %v8410_v58  ;;  %v8460_v57 = vld [vmem:[#allocation8 + $0x1c4] ss:$24 sps:$4 sm:$0xff]   ;;  %v8458_v58 = vld [vmem:[#allocation8 + $0x1c0] ss:$24 sps:$4 sm:$0xff]  }
 0x28f   :  { %4195 = vmatprep.subr.bf16.mxu1 %v8415_v61  ;;  %4324 = vmatprep.subr.bf16.mxu0 %v8418_v62  ;;  %v8557_v61 = vld [vmem:[#allocation11 + $0x30] ss:$24 sps:$4 sm:$0xff]   ;;  %v8559_v62 = vld [vmem:[#allocation11 + $0x34] ss:$24 sps:$4 sm:$0xff]  }
 0x292   :  { %v2272_v7 = vpop.f32.mrb[4].mxu0  ;;  %4196 = vmatpush1.bf16.msra.mxu1 %v8413_v0  ;;  %4325 = vmatpush1.bf16.msra.mxu0 %v8416_v4  ;;  %v8463_v0 = vld [vmem:[#allocation8 + $0x1f4] ss:$24 sps:$4 sm:$0xff]  }
 0x293   :  { %v7603_v54 = vadd.f32 %v2272_v7, %v443_v3  ;;  %v2274_v56 = vpop.f32.mrb[5].mxu0  ;;  %4197 = vmatprep.subr.bf16.mxu1 %v8421_v53  ;;  %4326 = vmatprep.subr.bf16.mxu0 %v8424_v6  ;;  %v8565_v4 = vld [vmem:[#allocation11 + $0x64] ss:$24 sps:$4 sm:$0xff]   ;;  %v8569_v6 = vld [vmem:[#allocation11 + $0x90] ss:$24 sps:$4 sm:$0xff]  }
 0x294   :  { %v7604_v59 = vadd.f32 %v2274_v56, %v447_v5  ;;  %v2276_v9 = vpop.f32.mrb[6].mxu0  ;;  %v8464_v53 = vld [vmem:[#allocation8 + $0x220] ss:$24 sps:$4 sm:$0xff]   ;;  %v8467_v56 = vld [vmem:[#allocation8 + $0x250] ss:$24 sps:$4 sm:$0xff]  }
 0x295   :  { %v2297_v14 = vmul.f32 0.01, %v7603_v54  ;;  %v7605_v16 = vadd.f32 %v2276_v9, %v443_v3  ;;  %v2278_v18 = vpop.f32.mrb[7].mxu0  ;;  %vm2285_vm8 = vcmp.gt.f32.partialorder %v7603_v54, 0.0  ;;  %v8563_v3 = vld [vmem:[#allocation11 + $0x60] ss:$24 sps:$4 sm:$0xff]  }
 0x296   :  { %v2298_v19 = vmul.f32 0.01, %v7604_v59  ;;  %v7606_v20 = vadd.f32 %v2278_v18, %v447_v5  ;;  %vm2286_vm9 = vcmp.gt.f32.partialorder %v7604_v59, 0.0  ;;  %4198 = vmatpush1.bf16.msra.mxu1 %v8419_v15  ;;  %4327 = vmatpush1.bf16.msra.mxu0 %v8422_v8  ;;  %v8466_v5 = vld [vmem:[#allocation8 + $0x224] ss:$24 sps:$4 sm:$0xff]  }
 0x297   :  { %vm2291_vm10 = vcmp.gt.f32.partialorder %v7605_v16, 0.0  ;;  %v2303_v22 = vmul.f32 0.01, %v7605_v16  ;;  %4199 = vmatprep.subr.bf16.mxu1 %v8427_v10  ;;  %4328 = vmatprep.subr.bf16.mxu0 %v8430_v13  ;;  %v2309_v27 = vsel %vm2285_vm8, %v7603_v54, %v2297_v14  ;;  %v8571_v7 = vld [vmem:[#allocation11 + $0x94] ss:$24 sps:$4 sm:$0xff]  }
 0x298   :  { %vm2292_vm11 = vcmp.gt.f32.partialorder %v7606_v20, 0.0  ;;  %v2304_v25 = vmul.f32 0.01, %v7606_v20  ;;  %v2310_v30 = vsel %vm2286_vm9, %v7604_v59, %v2298_v19  ;;  %v8469_v54 = vld [vmem:[#allocation8 + $0x254] ss:$24 sps:$4 sm:$0xff]  }
 0x299   :  { %v2315_v28 = vsel %vm2291_vm10, %v7605_v16, %v2303_v22  ;;  %v8575_v15 = vld [vmem:[#allocation11 + $0xc0] ss:$24 sps:$4 sm:$0xff]   ;;  %v8577_v8 = vld [vmem:[#allocation11 + $0xc4] ss:$24 sps:$4 sm:$0xff]   ;;  %v8581_v10 = vld [vmem:[#allocation11 + $0xf0] ss:$24 sps:$4 sm:$0xff]  }
 0x29a   :  { %v9432_v29 = vpack.c.bf16 %v2315_v28, %v2309_v27  ;;  %v2316_v31 = vsel %vm2292_vm11, %v7606_v20, %v2304_v25  ;;  %4200 = vmatpush1.bf16.msra.mxu1 %v8425_v21  ;;  %4329 = vmatpush1.bf16.msra.mxu0 %v8428_v24  ;;  %v8472_v59 = vld [vmem:[#allocation8 + $0x284] ss:$24 sps:$4 sm:$0xff]   ;;  %v8470_v9 = vld [vmem:[#allocation8 + $0x280] ss:$24 sps:$4 sm:$0xff]   ;;  %v8475_v14 = vld [vmem:[#allocation8 + $0x2b4] ss:$24 sps:$4 sm:$0xff]  }
 0x29b   :  { %v9434_v32 = vpack.c.bf16 %v2316_v31, %v2310_v30  ;;  %4341 = vmatprep.subr.bf16.mxu1 %v8433_v26  ;;  %6272 = vmatprep.subr.bf16.mxu0 %v8553_v52  ;;  %v8583_v13 = vld [vmem:[#allocation11 + $0xf4] ss:$24 sps:$4 sm:$0xff]   ;;  %v8587_v18 = vld [vmem:[#allocation11 + $0x120] ss:$24 sps:$4 sm:$0xff]   ;;  %v8589_v19 = vld [vmem:[#allocation11 + $0x124] ss:$24 sps:$4 sm:$0xff]  }
 0x29c   :  { %v8473_v16 = vld [vmem:[#allocation8 + $0x2b0] ss:$24 sps:$4 sm:$0xff]   ;;  %v8478_v20 = vld [vmem:[#allocation8 + $0x2e4] ss:$24 sps:$4 sm:$0xff]   ;;  %v8476_v21 = vld [vmem:[#allocation8 + $0x2e0] ss:$24 sps:$4 sm:$0xff]  }
 0x29d   :  { %4201 = vmatprep.mubr.bf16.mxu1 %v9434_v32  ;;  %4330 = vmatprep.mubr.bf16.mxu0 %v9434_v32  ;;  %v8593_v22 = vld [vmem:[#allocation11 + $0x150] ss:$24 sps:$4 sm:$0xff]   ;;  %v8595_v24 = vld [vmem:[#allocation11 + $0x154] ss:$24 sps:$4 sm:$0xff]   ;;  %v8599_v27 = vld [vmem:[#allocation11 + $0x180] ss:$24 sps:$4 sm:$0xff]  }
 0x29e   :  { %4202 = vmatmul.mubr.bf16.vlgmr.msra.gmra.mrb[8].mxu1 %v9432_v29  ;;  %4331 = vmatmul.mubr.bf16.vlgmr.msra.gmra.mrb[8].mxu0 %v9432_v29  ;;  %v8481_v25 = vld [vmem:[#allocation8 + $0x314] ss:$24 sps:$4 sm:$0xff]   ;;  %v8479_v26 = vld [vmem:[#allocation8 + $0x310] ss:$24 sps:$4 sm:$0xff]   ;;  %v8484_v30 = vld [vmem:[#allocation8 + $0x344] ss:$24 sps:$4 sm:$0xff]  }
 0x29f   :  { %4342 = vmatpush1.bf16.msra.mxu1 %v8431_v33  ;;  %4373 = vmatprep.mubr.bf16.mxu1 %v9400_v17  ;;  %v8449_v17 = vld [vmem:[#allocation8 + $0x130] ss:$24 sps:$4 sm:$0xff]   ;;  %v8482_v31 = vld [vmem:[#allocation8 + $0x340] ss:$24 sps:$4 sm:$0xff]   ;;  %v8502_v52 = vld [vmem:[#allocation8 + $0x464] ss:$24 sps:$4 sm:$0xff]  }
 0x2a0   :  { %4343 = vmatprep.subr.bf16.mxu1 %v8436_v34  ;;  %6273 = vmatpush1.bf16.msra.mxu0 %v8551_v51  ;;  %v8601_v28 = vld [vmem:[#allocation11 + $0x184] ss:$24 sps:$4 sm:$0xff]   ;;  %v8605_v33 = vld [vmem:[#allocation11 + $0x1b0] ss:$24 sps:$4 sm:$0xff]   ;;  %v8607_v34 = vld [vmem:[#allocation11 + $0x1b4] ss:$24 sps:$4 sm:$0xff]  }
 0x2a1   :  { %6274 = vmatprep.subr.bf16.mxu0 %v8559_v62  ;;  %v8497_v51 = vld [vmem:[#allocation8 + $0x430] ss:$24 sps:$4 sm:$0xff]   ;;  %v8505_v62 = vld [vmem:[#allocation8 + $0x494] ss:$24 sps:$4 sm:$0xff]  }
 0x2a3   :  { %4344 = vmatpush1.bf16.msra.mxu1 %v8434_v35  ;;  %v8487_v35 = vld [vmem:[#allocation8 + $0x374] ss:$24 sps:$4 sm:$0xff]  }
 0x2a4   :  { %4345 = vmatprep.subr.bf16.mxu1 %v8439_v36  ;;  %6275 = vmatpush1.bf16.msra.mxu0 %v8557_v61  ;;  %v8485_v36 = vld [vmem:[#allocation8 + $0x370] ss:$24 sps:$4 sm:$0xff]   ;;  %v8500_v61 = vld [vmem:[#allocation8 + $0x460] ss:$24 sps:$4 sm:$0xff]  }
 0x2a5   :  { %6276 = vmatprep.subr.bf16.mxu0 %v8565_v4  ;;  %v8508_v4 = vld [vmem:[#allocation8 + $0x4c4] ss:$24 sps:$4 sm:$0xff]  }
 0x2a7   :  { %4346 = vmatpush1.bf16.msra.mxu1 %v8437_v37  ;;  %v8611_v37 = vld [vmem:[#allocation11 + $0x1e0] ss:$24 sps:$4 sm:$0xff]  }
 0x2a8   :  { %4347 = vmatprep.subr.bf16.mxu1 %v8442_v38  ;;  %6277 = vmatpush1.bf16.msra.mxu0 %v8563_v3  ;;  %v8613_v38 = vld [vmem:[#allocation11 + $0x1e4] ss:$24 sps:$4 sm:$0xff]  }
 0x2a9   :  { %6278 = vmatprep.subr.bf16.mxu0 %v8571_v7  ;;  %v8503_v3 = vld [vmem:[#allocation8 + $0x490] ss:$24 sps:$4 sm:$0xff]  }
 0x2aa   :  { %v8509_v7 = vld [vmem:[#allocation8 + $0x4f0] ss:$24 sps:$4 sm:$0xff]  }
 0x2ab   :  { %4348 = vmatpush1.bf16.msra.mxu1 %v8440_v39  ;;  %v8490_v39 = vld [vmem:[#allocation8 + $0x3a4] ss:$24 sps:$4 sm:$0xff]  }
 0x2ac   :  { %4349 = vmatprep.subr.bf16.mxu1 %v8445_v41  ;;  %6279 = vmatpush1.bf16.msra.mxu0 %v8569_v6  ;;  %v8617_v41 = vld [vmem:[#allocation11 + $0x210] ss:$24 sps:$4 sm:$0xff]  }
 0x2ad   :  { %6280 = vmatprep.subr.bf16.mxu0 %v8577_v8  ;;  %v8511_v6 = vld [vmem:[#allocation8 + $0x4f4] ss:$24 sps:$4 sm:$0xff]   ;;  %v8515_v8 = vld [vmem:[#allocation8 + $0x550] ss:$24 sps:$4 sm:$0xff]  }
 0x2af   :  { %4350 = vmatpush1.bf16.msra.mxu1 %v8443_v50  ;;  %v8619_v50 = vld [vmem:[#allocation11 + $0x214] ss:$24 sps:$4 sm:$0xff]  }
 0x2b0   :  { %4351 = vmatprep.subr.bf16.mxu1 %v8448_v42  ;;  %6281 = vmatpush1.bf16.msra.mxu0 %v8575_v15  ;;  %v8491_v42 = vld [vmem:[#allocation8 + $0x3d0] ss:$24 sps:$4 sm:$0xff]   ;;  %v8517_v15 = vld [vmem:[#allocation8 + $0x554] ss:$24 sps:$4 sm:$0xff]  }
 0x2b1   :  { %6282 = vmatprep.subr.bf16.mxu0 %v8583_v13  ;;  %v8521_v13 = vld [vmem:[#allocation8 + $0x5b0] ss:$24 sps:$4 sm:$0xff]  }
 0x2b3   :  { %4352 = vmatpush1.bf16.msra.mxu1 %v8446_v43  ;;  %v8623_v43 = vld [vmem:[#allocation11 + $0x240] ss:$24 sps:$4 sm:$0xff]  }
 0x2b4   :  { %4353 = vmatprep.subr.bf16.mxu1 %v8451_v46  ;;  %6283 = vmatpush1.bf16.msra.mxu0 %v8581_v10  ;;  %v8625_v46 = vld [vmem:[#allocation11 + $0x244] ss:$24 sps:$4 sm:$0xff]  }
 0x2b5   :  { %6284 = vmatprep.subr.bf16.mxu0 %v8589_v19  ;;  %v8523_v10 = vld [vmem:[#allocation8 + $0x5b4] ss:$24 sps:$4 sm:$0xff]   ;;  %v8527_v19 = vld [vmem:[#allocation8 + $0x610] ss:$24 sps:$4 sm:$0xff]  }
 0x2b7   :  { %4354 = vmatpush1.bf16.msra.mxu1 %v8449_v17  ;;  %v8496_v17 = vld [vmem:[#allocation8 + $0x404] ss:$24 sps:$4 sm:$0xff]  }
 0x2b8   :  { %4355 = vmatprep.subr.bf16.mxu1 %v8454_v44  ;;  %6285 = vmatpush1.bf16.msra.mxu0 %v8587_v18  ;;  %v8494_v44 = vld [vmem:[#allocation8 + $0x400] ss:$24 sps:$4 sm:$0xff]   ;;  %v8529_v18 = vld [vmem:[#allocation8 + $0x614] ss:$24 sps:$4 sm:$0xff]  }
 0x2b9   :  { %6286 = vmatprep.subr.bf16.mxu0 %v8595_v24  ;;  %v8533_v24 = vld [vmem:[#allocation8 + $0x670] ss:$24 sps:$4 sm:$0xff]  }
 0x2bb   :  { %4356 = vmatpush1.bf16.msra.mxu1 %v8452_v47  ;;  %v8629_v47 = vld [vmem:[#allocation11 + $0x270] ss:$24 sps:$4 sm:$0xff]  }
 0x2bc   :  { %4357 = vmatprep.subr.bf16.mxu1 %v8457_v48  ;;  %6287 = vmatpush1.bf16.msra.mxu0 %v8593_v22  ;;  %v8631_v48 = vld [vmem:[#allocation11 + $0x274] ss:$24 sps:$4 sm:$0xff]  }
 0x2bd   :  { %6288 = vmatprep.subr.bf16.mxu0 %v8601_v28  ;;  %v8535_v22 = vld [vmem:[#allocation8 + $0x674] ss:$24 sps:$4 sm:$0xff]   ;;  %v8539_v28 = vld [vmem:[#allocation8 + $0x6d0] ss:$24 sps:$4 sm:$0xff]  }
 0x2bf   :  { %4358 = vmatpush1.bf16.msra.mxu1 %v8455_v49  ;;  %v8499_v49 = vld [vmem:[#allocation8 + $0x434] ss:$24 sps:$4 sm:$0xff]  }
 0x2c0   :  { %4359 = vmatprep.subr.bf16.mxu1 %v8460_v57  ;;  %6289 = vmatpush1.bf16.msra.mxu0 %v8599_v27  ;;  %v8637_v57 = vld [vmem:[#allocation11 + $0x2a4] ss:$24 sps:$4 sm:$0xff]  }
 0x2c1   :  { %6290 = vmatprep.subr.bf16.mxu0 %v8607_v34  ;;  %v8541_v27 = vld [vmem:[#allocation8 + $0x6d4] ss:$24 sps:$4 sm:$0xff]   ;;  %v8548_v34 = vld [vmem:[#allocation8 + $0x760] ss:$24 sps:$4 sm:$0xff]  }
 0x2c3   :  { %4360 = vmatpush1.bf16.msra.mxu1 %v8458_v58  ;;  %v8635_v58 = vld [vmem:[#allocation11 + $0x2a0] ss:$24 sps:$4 sm:$0xff]  }
 0x2c4   :  { %4361 = vmatprep.subr.bf16.mxu1 %v8463_v0  ;;  %6291 = vmatpush1.bf16.msra.mxu0 %v8605_v33  ;;  %v8643_v0 = vld [vmem:[#allocation11 + $0x2d4] ss:$24 sps:$4 sm:$0xff]  }
 0x2c5   :  { %6292 = vmatprep.subr.bf16.mxu0 %v8613_v38  ;;  %v8550_v33 = vld [vmem:[#allocation8 + $0x764] ss:$24 sps:$4 sm:$0xff]   ;;  %v8560_v38 = vld [vmem:[#allocation8 + $0x7c0] ss:$24 sps:$4 sm:$0xff]  }
 0x2c7   :  { %4362 = vmatpush1.bf16.msra.mxu1 %v8461_v2  ;;  %v8641_v2 = vld [vmem:[#allocation11 + $0x2d0] ss:$24 sps:$4 sm:$0xff]  }
 0x2c8   :  { %4363 = vmatprep.subr.bf16.mxu1 %v8466_v5  ;;  %6293 = vmatpush1.bf16.msra.mxu0 %v8611_v37  ;;  %v8649_v5 = vld [vmem:[#allocation11 + $0x304] ss:$24 sps:$4 sm:$0xff]  }
 0x2c9   :  { %6294 = vmatprep.subr.bf16.mxu0 %v8619_v50  ;;  %v8562_v37 = vld [vmem:[#allocation8 + $0x7c4] ss:$24 sps:$4 sm:$0xff]   ;;  %v8572_v50 = vld [vmem:[#allocation8 + $0x820] ss:$24 sps:$4 sm:$0xff]  }
 0x2cb   :  { %4364 = vmatpush1.bf16.msra.mxu1 %v8464_v53  ;;  %v8506_v53 = vld [vmem:[#allocation8 + $0x4c0] ss:$24 sps:$4 sm:$0xff]  }
 0x2cc   :  { %4365 = vmatprep.subr.bf16.mxu1 %v8469_v54  ;;  %6295 = vmatpush1.bf16.msra.mxu0 %v8617_v41  ;;  %v8514_v54 = vld [vmem:[#allocation8 + $0x524] ss:$24 sps:$4 sm:$0xff]  }
 0x2cd   :  { %6296 = vmatprep.subr.bf16.mxu0 %v8625_v46  ;;  %v8574_v41 = vld [vmem:[#allocation8 + $0x824] ss:$24 sps:$4 sm:$0xff]   ;;  %v8584_v46 = vld [vmem:[#allocation8 + $0x880] ss:$24 sps:$4 sm:$0xff]  }
 0x2cf   :  { %4366 = vmatpush1.bf16.msra.mxu1 %v8467_v56  ;;  %v8512_v56 = vld [vmem:[#allocation8 + $0x520] ss:$24 sps:$4 sm:$0xff]  }
 0x2d0   :  { %4367 = vmatprep.subr.bf16.mxu1 %v8472_v59  ;;  %6297 = vmatpush1.bf16.msra.mxu0 %v8623_v43  ;;  %v8520_v59 = vld [vmem:[#allocation8 + $0x584] ss:$24 sps:$4 sm:$0xff]  }
 0x2d1   :  { %6298 = vmatprep.subr.bf16.mxu0 %v8631_v48  ;;  %v8586_v43 = vld [vmem:[#allocation8 + $0x884] ss:$24 sps:$4 sm:$0xff]   ;;  %v8596_v48 = vld [vmem:[#allocation8 + $0x8e0] ss:$24 sps:$4 sm:$0xff]  }
 0x2d3   :  { %4368 = vmatpush1.bf16.msra.mxu1 %v8470_v9  ;;  %v8518_v9 = vld [vmem:[#allocation8 + $0x580] ss:$24 sps:$4 sm:$0xff]  }
 0x2d4   :  { %4369 = vmatprep.subr.bf16.mxu1 %v8475_v14  ;;  %6299 = vmatpush1.bf16.msra.mxu0 %v8629_v47  ;;  %v8526_v14 = vld [vmem:[#allocation8 + $0x5e4] ss:$24 sps:$4 sm:$0xff]  }
 0x2d5   :  { %6300 = vmatprep.subr.bf16.mxu0 %v8637_v57  ;;  %v8598_v47 = vld [vmem:[#allocation8 + $0x8e4] ss:$24 sps:$4 sm:$0xff]  }
 0x2d6   :  { %v8608_v57 = vld [vmem:[#allocation11 + $0x38] ss:$24 sps:$4 sm:$0xff]  }
 0x2d7   :  { %4370 = vmatpush1.bf16.msra.mxu1 %v8473_v16  ;;  %v8524_v16 = vld [vmem:[#allocation8 + $0x5e0] ss:$24 sps:$4 sm:$0xff]  }
 0x2d8   :  { %4371 = vmatprep.subr.bf16.mxu1 %v8478_v20  ;;  %6301 = vmatpush1.bf16.msra.mxu0 %v8635_v58  ;;  %v8532_v20 = vld [vmem:[#allocation8 + $0x644] ss:$24 sps:$4 sm:$0xff]   ;;  %v8616_v58 = vld [vmem:[#allocation11 + $0x6c] ss:$24 sps:$4 sm:$0xff]  }
 0x2d9   :  { %6302 = vmatprep.subr.bf16.mxu0 %v8643_v0  ;;  %v8620_v0 = vld [vmem:[#allocation11 + $0x98] ss:$24 sps:$4 sm:$0xff]  }
 0x2db   :  { %4372 = vmatpush1.bf16.msra.mxu1 %v8476_v21  ;;  %v8530_v21 = vld [vmem:[#allocation8 + $0x640] ss:$24 sps:$4 sm:$0xff]  }
 0x2dc   :  { %4384 = vmatprep.subr.bf16.mxu1 %v8481_v25  ;;  %6303 = vmatpush1.bf16.msra.mxu0 %v8641_v2  ;;  %v8538_v25 = vld [vmem:[#allocation8 + $0x6a4] ss:$24 sps:$4 sm:$0xff]   ;;  %v8628_v2 = vld [vmem:[#allocation11 + $0xcc] ss:$24 sps:$4 sm:$0xff]  }
 0x2dd   :  { %6315 = vmatprep.subr.bf16.mxu0 %v8649_v5  ;;  %v8634_v5 = vld [vmem:[#allocation11 + $0xfc] ss:$24 sps:$4 sm:$0xff]  }
 0x2de   :  { %4374 = vmatmul.mubr.bf16.vlgmr.msra.gmra.mrb[12].mxu1 %v9398_v11  ;;  %v8488_v11 = vld [vmem:[#allocation8 + $0x3a0] ss:$24 sps:$4 sm:$0xff]  }
 0x2df   :  { %4385 = vmatpush1.bf16.msra.mxu1 %v8479_v26  ;;  %4416 = vmatprep.mubr.bf16.mxu1 %v9418_v1  ;;  %v8493_v1 = vld [vmem:[#allocation8 + $0x3d4] ss:$24 sps:$4 sm:$0xff]   ;;  %v8536_v26 = vld [vmem:[#allocation8 + $0x6a0] ss:$24 sps:$4 sm:$0xff]  }
 0x2e0   :  { %4386 = vmatprep.subr.bf16.mxu1 %v8484_v30  ;;  %v8544_v30 = vld [vmem:[#allocation8 + $0x704] ss:$24 sps:$4 sm:$0xff]  }
 0x2e3   :  { %4387 = vmatpush1.bf16.msra.mxu1 %v8482_v31  ;;  %v8547_v31 = vld [vmem:[#allocation8 + $0x734] ss:$24 sps:$4 sm:$0xff]  }
 0x2e4   :  { %4388 = vmatprep.subr.bf16.mxu1 %v8487_v35  ;;  %v8556_v35 = vld [vmem:[#allocation8 + $0x794] ss:$24 sps:$4 sm:$0xff]  }
 0x2e7   :  { %4389 = vmatpush1.bf16.msra.mxu1 %v8485_v36  ;;  %v8554_v36 = vld [vmem:[#allocation8 + $0x790] ss:$24 sps:$4 sm:$0xff]  }
 0x2e8   :  { %4390 = vmatprep.subr.bf16.mxu1 %v8490_v39  ;;  %v8568_v39 = vld [vmem:[#allocation8 + $0x7f4] ss:$24 sps:$4 sm:$0xff]  }
 0x2eb   :  { %4391 = vmatpush1.bf16.msra.mxu1 %v8488_v11  ;;  %v8566_v11 = vld [vmem:[#allocation8 + $0x7f0] ss:$24 sps:$4 sm:$0xff]  }
 0x2ec   :  { %4392 = vmatprep.subr.bf16.mxu1 %v8493_v1  ;;  %v8580_v1 = vld [vmem:[#allocation8 + $0x854] ss:$24 sps:$4 sm:$0xff]  }
 0x2ef   :  { %4393 = vmatpush1.bf16.msra.mxu1 %v8491_v42  ;;  %v8578_v42 = vld [vmem:[#allocation8 + $0x850] ss:$24 sps:$4 sm:$0xff]  }
 0x2f0   :  { %4394 = vmatprep.subr.bf16.mxu1 %v8496_v17  ;;  %v8592_v17 = vld [vmem:[#allocation8 + $0x8b4] ss:$24 sps:$4 sm:$0xff]  }
 0x2f3   :  { %4395 = vmatpush1.bf16.msra.mxu1 %v8494_v44  ;;  %v8590_v44 = vld [vmem:[#allocation8 + $0x8b0] ss:$24 sps:$4 sm:$0xff]  }
 0x2f4   :  { %4396 = vmatprep.subr.bf16.mxu1 %v8499_v49  ;;  %v8604_v49 = vld [vmem:[#allocation11 + $0xc] ss:$24 sps:$4 sm:$0xff]  }
 0x2f7   :  { %4397 = vmatpush1.bf16.msra.mxu1 %v8497_v51  ;;  %v8602_v51 = vld [vmem:[#allocation11 + $0x8] ss:$24 sps:$4 sm:$0xff]  }
 0x2f8   :  { %4398 = vmatprep.subr.bf16.mxu1 %v8502_v52  ;;  %v8610_v52 = vld [vmem:[#allocation11 + $0x3c] ss:$24 sps:$4 sm:$0xff]  }
 0x2fb   :  { %4399 = vmatpush1.bf16.msra.mxu1 %v8500_v61  ;;  %v8614_v61 = vld [vmem:[#allocation11 + $0x68] ss:$24 sps:$4 sm:$0xff]  }
 0x2fc   :  { %4400 = vmatprep.subr.bf16.mxu1 %v8505_v62  ;;  %v8622_v62 = vld [vmem:[#allocation11 + $0x9c] ss:$24 sps:$4 sm:$0xff]  }
 0x2ff   :  { %4401 = vmatpush1.bf16.msra.mxu1 %v8503_v3  ;;  %v8626_v3 = vld [vmem:[#allocation11 + $0xc8] ss:$24 sps:$4 sm:$0xff]  }
 0x300   :  { %4402 = vmatprep.subr.bf16.mxu1 %v8508_v4  ;;  %v9446_v4 = vld [vmem:[#allocation10] sm:$0x3f] }
 0x303   :  { %4403 = vmatpush1.bf16.msra.mxu1 %v8506_v53  ;;  %v2624_v53 = vrot.slane %v9446_v4, %v9407_v12 }
 0x304   :  { %4404 = vmatprep.subr.bf16.mxu1 %v8511_v6  ;;  %v8632_v6 = vld [vmem:[#allocation11 + $0xf8] ss:$24 sps:$4 sm:$0xff]  }
 0x307   :  { %4405 = vmatpush1.bf16.msra.mxu1 %v8509_v7  ;;  %v2620_v7 = vrot.slane %v9446_v4, %v9388_v23 }
 0x308   :  { %4406 = vmatprep.subr.bf16.mxu1 %v8514_v54  ;;  %v2628_v54 = vrot.slane %v9446_v4, %v9410_v40 }
 0x30b   :  { %4407 = vmatpush1.bf16.msra.mxu1 %v8512_v56  ;;  %v8640_v56 = vld [vmem:[#allocation11 + $0x12c] ss:$24 sps:$4 sm:$0xff]  }
 0x30c   :  { %4408 = vmatprep.subr.bf16.mxu1 %v8517_v15 }
 0x30f   :  { %4409 = vmatpush1.bf16.msra.mxu1 %v8515_v8 }
 0x310   :  { %4410 = vmatprep.subr.bf16.mxu1 %v8520_v59 }
 0x313   :  { %4411 = vmatpush1.bf16.msra.mxu1 %v8518_v9 }
 0x314   :  { %4412 = vmatprep.subr.bf16.mxu1 %v8523_v10 }
 0x317   :  { %4413 = vmatpush1.bf16.msra.mxu1 %v8521_v13 }
 0x318   :  { %4414 = vmatprep.subr.bf16.mxu1 %v8526_v14 }
 0x31b   :  { %4415 = vmatpush1.bf16.msra.mxu1 %v8524_v16 }
 0x31c   :  { %4427 = vmatprep.subr.bf16.mxu1 %v8529_v18 }
 0x31e   :  { %4417 = vmatmul.mubr.bf16.vlgmr.msra.gmra.mrb[12].mxu1 %v9416_v63  ;;  %v8542_v63 = vld [vmem:[#allocation8 + $0x700] ss:$24 sps:$4 sm:$0xff]  }
 0x31f   :  { %4428 = vmatpush1.bf16.msra.mxu1 %v8527_v19  ;;  %4459 = vmatprep.mubr.bf16.mxu1 %v9434_v32  ;;  %v8545_v32 = vld [vmem:[#allocation8 + $0x730] ss:$24 sps:$4 sm:$0xff]  }
 0x320   :  { %4429 = vmatprep.subr.bf16.mxu1 %v8532_v20  ;;  %v8638_v20 = vld [vmem:[#allocation11 + $0x128] ss:$24 sps:$4 sm:$0xff]  }
 0x323   :  { %4430 = vmatpush1.bf16.msra.mxu1 %v8530_v21  ;;  %v8646_v21 = vld [vmem:[#allocation11 + $0x15c] ss:$24 sps:$4 sm:$0xff]  }
 0x324   :  { %4431 = vmatprep.subr.bf16.mxu1 %v8535_v22 }
 0x327   :  { %4432 = vmatpush1.bf16.msra.mxu1 %v8533_v24 }
 0x328   :  { %4433 = vmatprep.subr.bf16.mxu1 %v8538_v25 }
 0x32b   :  { %4434 = vmatpush1.bf16.msra.mxu1 %v8536_v26 }
 0x32c   :  { %4435 = vmatprep.subr.bf16.mxu1 %v8541_v27 }
 0x32f   :  { %4436 = vmatpush1.bf16.msra.mxu1 %v8539_v28 }
 0x330   :  { %4437 = vmatprep.subr.bf16.mxu1 %v8544_v30 }
 0x333   :  { %4438 = vmatpush1.bf16.msra.mxu1 %v8542_v63 }
 0x334   :  { %4439 = vmatprep.subr.bf16.mxu1 %v8547_v31 }
 0x337   :  { %4440 = vmatpush1.bf16.msra.mxu1 %v8545_v32 }
 0x338   :  { %4441 = vmatprep.subr.bf16.mxu1 %v8550_v33 }
 0x33b   :  { %4442 = vmatpush1.bf16.msra.mxu1 %v8548_v34 }
 0x33c   :  { %4443 = vmatprep.subr.bf16.mxu1 %v8556_v35  ;;  %v8644_v35 = vld [vmem:[#allocation11 + $0x158] ss:$24 sps:$4 sm:$0xff]  }
 0x33f   :  { %4444 = vmatpush1.bf16.msra.mxu1 %v8554_v36  ;;  %v8652_v36 = vld [vmem:[#allocation11 + $0x18c] ss:$24 sps:$4 sm:$0xff]  }
 0x340   :  { %4445 = vmatprep.subr.bf16.mxu1 %v8562_v37 }
 0x343   :  { %4446 = vmatpush1.bf16.msra.mxu1 %v8560_v38 }
 0x344   :  { %4447 = vmatprep.subr.bf16.mxu1 %v8568_v39 }
 0x347   :  { %4448 = vmatpush1.bf16.msra.mxu1 %v8566_v11 }
 0x348   :  { %4449 = vmatprep.subr.bf16.mxu1 %v8574_v41 }
 0x34b   :  { %4450 = vmatpush1.bf16.msra.mxu1 %v8572_v50 }
 0x34c   :  { %4451 = vmatprep.subr.bf16.mxu1 %v8580_v1 }
 0x34f   :  { %4452 = vmatpush1.bf16.msra.mxu1 %v8578_v42 }
 0x350   :  { %4453 = vmatprep.subr.bf16.mxu1 %v8586_v43 }
 0x353   :  { %4454 = vmatpush1.bf16.msra.mxu1 %v8584_v46 }
 0x354   :  { %4455 = vmatprep.subr.bf16.mxu1 %v8592_v17 }
 0x357   :  { %4456 = vmatpush1.bf16.msra.mxu1 %v8590_v44  ;;  %v8650_v44 = vld [vmem:[#allocation11 + $0x188] ss:$24 sps:$4 sm:$0xff]  }
 0x358   :  { %4457 = vmatprep.subr.bf16.mxu1 %v8598_v47 }
 0x35b   :  { %4458 = vmatpush1.bf16.msra.mxu1 %v8596_v48 }
 0x35c   :  { %6401 = vmatprep.subr.bf16.mxu1 %v8604_v49  ;;  %v8647_v49 = vld [vmem:[#allocation11 + $0x300] ss:$24 sps:$4 sm:$0xff]  }
 0x35e   :  { %4460 = vmatmul.mubr.bf16.vlgmr.msra.gmra.mrb[12].mxu1 %v9432_v29  ;;  %v2616_v29 = vrot.slane %v9446_v4, %v9385_v45 }
 0x35f   :  { %6402 = vmatpush1.bf16.msra.mxu1 %v8602_v51 }
 0x360   :  { %6403 = vmatprep.subr.bf16.mxu1 %v8610_v52  ;;  %v8655_v52 = vld [vmem:[#allocation11 + $0x334] ss:$24 sps:$4 sm:$0xff]  }
 0x363   :  { %6404 = vmatpush1.bf16.msra.mxu1 %v8608_v57  ;;  %v8658_v57 = vld [vmem:[#allocation11 + $0x1bc] ss:$24 sps:$4 sm:$0xff]  }
 0x364   :  { %6405 = vmatprep.subr.bf16.mxu1 %v8616_v58  ;;  %v8656_v58 = vld [vmem:[#allocation11 + $0x1b8] ss:$24 sps:$4 sm:$0xff]  }
 0x367   :  { %6406 = vmatpush1.bf16.msra.mxu1 %v8614_v61  ;;  %v8653_v61 = vld [vmem:[#allocation11 + $0x330] ss:$24 sps:$4 sm:$0xff]  }
 0x368   :  { %6407 = vmatprep.subr.bf16.mxu1 %v8622_v62  ;;  %v8664_v62 = vld [vmem:[#allocation11 + $0x1ec] ss:$24 sps:$4 sm:$0xff]  }
 0x36b   :  { %6408 = vmatpush1.bf16.msra.mxu1 %v8620_v0  ;;  %v8661_v0 = vld [vmem:[#allocation11 + $0x364] ss:$24 sps:$4 sm:$0xff]  }
 0x36c   :  { %6409 = vmatprep.subr.bf16.mxu1 %v8628_v2  ;;  %v8662_v2 = vld [vmem:[#allocation11 + $0x1e8] ss:$24 sps:$4 sm:$0xff]  }
 0x36f   :  { %6410 = vmatpush1.bf16.msra.mxu1 %v8626_v3  ;;  %v8659_v3 = vld [vmem:[#allocation11 + $0x360] ss:$24 sps:$4 sm:$0xff]  }
 0x370   :  { %6411 = vmatprep.subr.bf16.mxu1 %v8634_v5  ;;  %v8670_v5 = vld [vmem:[#allocation11 + $0x21c] ss:$24 sps:$4 sm:$0xff]  }
 0x371   :  { %v4203_v15 = vpop.f32.mrb[8].mxu1  ;;  %v4332_v8 = vpop.f32.mrb[8].mxu0 }
 0x372   :  { %v7607_v59 = vadd.f32 %v4203_v15, %v2616_v29  ;;  %v7611_v9 = vadd.f32 %v4332_v8, %v2624_v53  ;;  %v4205_v10 = vpop.f32.mrb[9].mxu1  ;;  %v4334_v13 = vpop.f32.mrb[9].mxu0  ;;  %v8671_v15 = vld [vmem:[#allocation11 + $0x3c0] ss:$24 sps:$4 sm:$0xff]   ;;  %v8682_v8 = vld [vmem:[#allocation11 + $0x27c] ss:$24 sps:$4 sm:$0xff]  }
 0x373   :  { %v7608_v14 = vadd.f32 %v4205_v10, %v2620_v7  ;;  %v7612_v16 = vadd.f32 %v4334_v13, %v2628_v54  ;;  %6412 = vmatpush1.bf16.msra.mxu1 %v8632_v6  ;;  %v4207_v18 = vpop.f32.mrb[10].mxu1  ;;  %v4336_v19 = vpop.f32.mrb[10].mxu0  ;;  %v8665_v6 = vld [vmem:[#allocation11 + $0x390] ss:$24 sps:$4 sm:$0xff]   ;;  %v8688_v13 = vld [vmem:[#allocation11 + $0x2ac] ss:$24 sps:$4 sm:$0xff]  }
 0x374   :  { %vm4470_vm12 = vcmp.gt.f32.partialorder %v7607_v59, 0.0  ;;  %v4482_v22 = vmul.f32 0.01, %v7607_v59  ;;  %vm4472_vm13 = vcmp.gt.f32.partialorder %v7611_v9, 0.0  ;;  %v4484_v24 = vmul.f32 0.01, %v7611_v9  ;;  %6413 = vmatprep.subr.bf16.mxu1 %v8640_v56 }
 0x375   :  { %vm4471_vm14 = vcmp.gt.f32.partialorder %v7608_v14, 0.0  ;;  %v4483_v25 = vmul.f32 0.01, %v7608_v14  ;;  %vm4473_vm15 = vcmp.gt.f32.partialorder %v7612_v16, 0.0  ;;  %v4485_v26 = vmul.f32 0.01, %v7612_v16 }
 0x376   :  { %v7609_v27 = vadd.f32 %v4207_v18, %v2616_v29  ;;  %v7613_v28 = vadd.f32 %v4336_v19, %v2624_v53  ;;  %v4209_v30 = vpop.f32.mrb[11].mxu1  ;;  %v4338_v63 = vpop.f32.mrb[11].mxu0  ;;  %v4494_v31 = vsel %vm4470_vm12, %v7607_v59, %v4482_v22  ;;  %v4496_v32 = vsel %vm4472_vm13, %v7611_v9, %v4484_v24  ;;  %v8667_v29 = vld [vmem:[#allocation11 + $0x394] ss:$24 sps:$4 sm:$0xff]   ;;  %v8668_v53 = vld [vmem:[#allocation11 + $0x218] ss:$24 sps:$4 sm:$0xff]  }
 0x377   :  { %v7610_v33 = vadd.f32 %v4209_v30, %v2620_v7  ;;  %v7614_v34 = vadd.f32 %v4338_v63, %v2628_v54  ;;  %6414 = vmatpush1.bf16.msra.mxu1 %v8638_v20  ;;  %v4495_v1 = vsel %vm4471_vm14, %v7608_v14, %v4483_v25  ;;  %v4497_v42 = vsel %vm4473_vm15, %v7612_v16, %v4485_v26  ;;  %v8676_v7 = vld [vmem:[#allocation11 + $0x24c] ss:$24 sps:$4 sm:$0xff]   ;;  %v8674_v56 = vld [vmem:[#allocation11 + $0x248] ss:$24 sps:$4 sm:$0xff]   ;;  %v8680_v9 = vld [vmem:[#allocation11 + $0x278] ss:$24 sps:$4 sm:$0xff]  }
 0x378   :  { %vm4476_vm0 = vcmp.gt.f32.partialorder %v7609_v27, 0.0  ;;  %v4488_v37 = vmul.f32 0.01, %v7609_v27  ;;  %vm4478_vm1 = vcmp.gt.f32.partialorder %v7613_v28, 0.0  ;;  %v4490_v38 = vmul.f32 0.01, %v7613_v28  ;;  %6415 = vmatprep.subr.bf16.mxu1 %v8646_v21 }
 0x379   :  { %vm4477_vm2 = vcmp.gt.f32.partialorder %v7610_v33, 0.0  ;;  %v4489_v39 = vmul.f32 0.01, %v7610_v33  ;;  %vm4479_vm3 = vcmp.gt.f32.partialorder %v7614_v34, 0.0  ;;  %v4491_v11 = vmul.f32 0.01, %v7614_v34 }
 0x37a   :  { %v4500_v41 = vsel %vm4476_vm0, %v7609_v27, %v4488_v37  ;;  %v4502_v50 = vsel %vm4478_vm1, %v7613_v28, %v4490_v38  ;;  %v8673_v54 = vld [vmem:[#allocation11 + $0x3c4] ss:$24 sps:$4 sm:$0xff]   ;;  %v8679_v59 = vld [vmem:[#allocation11 + $0x3f4] ss:$24 sps:$4 sm:$0xff]   ;;  %v8677_v10 = vld [vmem:[#allocation11 + $0x3f0] ss:$24 sps:$4 sm:$0xff]  }
 0x37b   :  { %v9458_v43 = vpack.c.bf16 %v4500_v41, %v4494_v31  ;;  %v9460_v46 = vpack.c.bf16 %v4502_v50, %v4496_v32  ;;  %6416 = vmatpush1.bf16.msra.mxu1 %v8644_v35  ;;  %v4501_v17 = vsel %vm4477_vm2, %v7610_v33, %v4489_v39  ;;  %v4503_v47 = vsel %vm4479_vm3, %v7614_v34, %v4491_v11  ;;  %v8685_v14 = vld [vmem:[#allocation11 + $0x424] ss:$24 sps:$4 sm:$0xff]   ;;  %v8686_v16 = vld [vmem:[#allocation11 + $0x2a8] ss:$24 sps:$4 sm:$0xff]   ;;  %v8691_v20 = vld [vmem:[#allocation11 + $0x454] ss:$24 sps:$4 sm:$0xff]  }
 0x37c   :  { %v9462_v48 = vpack.c.bf16 %v4501_v17, %v4495_v1  ;;  %6417 = vmatprep.subr.bf16.mxu1 %v8652_v36  ;;  %v9464_v51 = vpack.c.bf16 %v4503_v47, %v4497_v42  ;;  %v8683_v18 = vld [vmem:[#allocation11 + $0x420] ss:$24 sps:$4 sm:$0xff]   ;;  %v8694_v19 = vld [vmem:[#allocation11 + $0x2dc] ss:$24 sps:$4 sm:$0xff]   ;;  %v8689_v22 = vld [vmem:[#allocation11 + $0x450] ss:$24 sps:$4 sm:$0xff]  }
 0x37d   :  { %v8692_v21 = vld [vmem:[#allocation11 + $0x2d8] ss:$24 sps:$4 sm:$0xff]   ;;  %v8700_v24 = vld [vmem:[#allocation11 + $0x30c] ss:$24 sps:$4 sm:$0xff]   ;;  %v8698_v26 = vld [vmem:[#allocation11 + $0x308] ss:$24 sps:$4 sm:$0xff]  }
 0x37e   :  { %6304 = vmatprep.mubr.bf16.mxu0 %v9462_v48  ;;  %6433 = vmatprep.mubr.bf16.mxu1 %v9462_v48  ;;  %v8697_v25 = vld [vmem:[#allocation11 + $0x484] ss:$24 sps:$4 sm:$0xff]   ;;  %v8695_v27 = vld [vmem:[#allocation11 + $0x480] ss:$24 sps:$4 sm:$0xff]   ;;  %v8703_v30 = vld [vmem:[#allocation11 + $0x4b4] ss:$24 sps:$4 sm:$0xff]  }
 0x37f   :  { %6305 = vmatmul.mubr.bf16.vlgmr.msra.gmra.mrb[12].mxu0 %v9458_v43  ;;  %6418 = vmatpush1.bf16.msra.mxu1 %v8650_v44  ;;  %v8706_v28 = vld [vmem:[#allocation11 + $0x33c] ss:$24 sps:$4 sm:$0xff]   ;;  %v8704_v63 = vld [vmem:[#allocation11 + $0x338] ss:$24 sps:$4 sm:$0xff]   ;;  %v8712_v32 = vld [vmem:[#allocation11 + $0x36c] ss:$24 sps:$4 sm:$0xff]  }
 0x380   :  { %6316 = vmatpush1.bf16.msra.mxu0 %v8647_v49  ;;  %6347 = vmatprep.mubr.bf16.mxu0 %v9464_v51  ;;  %v8701_v31 = vld [vmem:[#allocation11 + $0x4b0] ss:$24 sps:$4 sm:$0xff]   ;;  %v8709_v33 = vld [vmem:[#allocation11 + $0x4e4] ss:$24 sps:$4 sm:$0xff]   ;;  %v8707_v35 = vld [vmem:[#allocation11 + $0x4e0] ss:$24 sps:$4 sm:$0xff]  }
 0x381   :  { %6317 = vmatprep.subr.bf16.mxu0 %v8655_v52  ;;  %6419 = vmatprep.subr.bf16.mxu1 %v8658_v57  ;;  %v8710_v34 = vld [vmem:[#allocation11 + $0x368] ss:$24 sps:$4 sm:$0xff]   ;;  %v8718_v36 = vld [vmem:[#allocation11 + $0x39c] ss:$24 sps:$4 sm:$0xff]   ;;  %v8716_v38 = vld [vmem:[#allocation11 + $0x398] ss:$24 sps:$4 sm:$0xff]  }
 0x382   :  { %v8715_v37 = vld [vmem:[#allocation11 + $0x514] ss:$24 sps:$4 sm:$0xff]   ;;  %v8713_v39 = vld [vmem:[#allocation11 + $0x510] ss:$24 sps:$4 sm:$0xff]   ;;  %v8721_v41 = vld [vmem:[#allocation11 + $0x544] ss:$24 sps:$4 sm:$0xff]  }
 0x383   :  { %6420 = vmatpush1.bf16.msra.mxu1 %v8656_v58  ;;  %v8724_v11 = vld [vmem:[#allocation11 + $0x3cc] ss:$24 sps:$4 sm:$0xff]   ;;  %v8722_v50 = vld [vmem:[#allocation11 + $0x3c8] ss:$24 sps:$4 sm:$0xff]   ;;  %v8730_v42 = vld [vmem:[#allocation11 + $0x3fc] ss:$24 sps:$4 sm:$0xff]  }
 0x384   :  { %6318 = vmatpush1.bf16.msra.mxu0 %v8653_v61  ;;  %6421 = vmatprep.subr.bf16.mxu1 %v8664_v62  ;;  %v8719_v1 = vld [vmem:[#allocation11 + $0x540] ss:$24 sps:$4 sm:$0xff]   ;;  %v8727_v17 = vld [vmem:[#allocation11 + $0x574] ss:$24 sps:$4 sm:$0xff]   ;;  %v8725_v47 = vld [vmem:[#allocation11 + $0x570] ss:$24 sps:$4 sm:$0xff]  }
 0x385   :  { %6319 = vmatprep.subr.bf16.mxu0 %v8661_v0  ;;  %v8728_v44 = vld [vmem:[#allocation11 + $0x3f8] ss:$24 sps:$4 sm:$0xff]   ;;  %v8736_v49 = vld [vmem:[#allocation11 + $0x42c] ss:$24 sps:$4 sm:$0xff]   ;;  %v8734_v57 = vld [vmem:[#allocation11 + $0x428] ss:$24 sps:$4 sm:$0xff]  }
 0x386   :  { %v8733_v52 = vld [vmem:[#allocation11 + $0x5a4] ss:$24 sps:$4 sm:$0xff]   ;;  %v8731_v58 = vld [vmem:[#allocation11 + $0x5a0] ss:$24 sps:$4 sm:$0xff]   ;;  %v8739_v62 = vld [vmem:[#allocation11 + $0x5d4] ss:$24 sps:$4 sm:$0xff]  }
 0x387   :  { %6422 = vmatpush1.bf16.msra.mxu1 %v8662_v2  ;;  %v8742_v61 = vld [vmem:[#allocation11 + $0x45c] ss:$24 sps:$4 sm:$0xff]   ;;  %v8740_v0 = vld [vmem:[#allocation11 + $0x458] ss:$24 sps:$4 sm:$0xff]  }
 0x388   :  { %6320 = vmatpush1.bf16.msra.mxu0 %v8659_v3  ;;  %6423 = vmatprep.subr.bf16.mxu1 %v8670_v5  ;;  %v8737_v2 = vld [vmem:[#allocation11 + $0x5d0] ss:$24 sps:$4 sm:$0xff]   ;;  %v8745_v3 = vld [vmem:[#allocation11 + $0x48c] ss:$24 sps:$4 sm:$0xff]  }
 0x389   :  { %6321 = vmatprep.subr.bf16.mxu0 %v8667_v29  ;;  %v8769_v5 = vld [vmem:[#allocation11 + $0x604] ss:$24 sps:$4 sm:$0xff]   ;;  %v8743_v29 = vld [vmem:[#allocation11 + $0x488] ss:$24 sps:$4 sm:$0xff]  }
 0x38b   :  { %6424 = vmatpush1.bf16.msra.mxu1 %v8668_v53  ;;  %v8748_v53 = vld [vmem:[#allocation11 + $0x4bc] ss:$24 sps:$4 sm:$0xff]  }
 0x38c   :  { %6322 = vmatpush1.bf16.msra.mxu0 %v8665_v6  ;;  %6425 = vmatprep.subr.bf16.mxu1 %v8676_v7  ;;  %v8767_v6 = vld [vmem:[#allocation11 + $0x600] ss:$24 sps:$4 sm:$0xff]   ;;  %v8775_v7 = vld [vmem:[#allocation11 + $0x634] ss:$24 sps:$4 sm:$0xff]  }
 0x38d   :  { %6323 = vmatprep.subr.bf16.mxu0 %v8673_v54  ;;  %v8746_v54 = vld [vmem:[#allocation11 + $0x4b8] ss:$24 sps:$4 sm:$0xff]  }
 0x38f   :  { %6426 = vmatpush1.bf16.msra.mxu1 %v8674_v56  ;;  %v8751_v56 = vld [vmem:[#allocation11 + $0x4ec] ss:$24 sps:$4 sm:$0xff]  }
 0x390   :  { %6324 = vmatpush1.bf16.msra.mxu0 %v8671_v15  ;;  %6427 = vmatprep.subr.bf16.mxu1 %v8682_v8  ;;  %v8773_v15 = vld [vmem:[#allocation11 + $0x630] ss:$24 sps:$4 sm:$0xff]   ;;  %v8781_v8 = vld [vmem:[#allocation11 + $0x664] ss:$24 sps:$4 sm:$0xff]  }
 0x391   :  { %6325 = vmatprep.subr.bf16.mxu0 %v8679_v59  ;;  %v8749_v59 = vld [vmem:[#allocation11 + $0x4e8] ss:$24 sps:$4 sm:$0xff]  }
 0x393   :  { %6428 = vmatpush1.bf16.msra.mxu1 %v8680_v9  ;;  %v8754_v9 = vld [vmem:[#allocation11 + $0x51c] ss:$24 sps:$4 sm:$0xff]  }
 0x394   :  { %6326 = vmatpush1.bf16.msra.mxu0 %v8677_v10  ;;  %6429 = vmatprep.subr.bf16.mxu1 %v8688_v13  ;;  %v8779_v10 = vld [vmem:[#allocation11 + $0x660] ss:$24 sps:$4 sm:$0xff]   ;;  %v8787_v13 = vld [vmem:[#allocation11 + $0x694] ss:$24 sps:$4 sm:$0xff]  }
 0x395   :  { %6327 = vmatprep.subr.bf16.mxu0 %v8685_v14  ;;  %v8752_v14 = vld [vmem:[#allocation11 + $0x518] ss:$24 sps:$4 sm:$0xff]  }
 0x397   :  { %6430 = vmatpush1.bf16.msra.mxu1 %v8686_v16  ;;  %v8757_v16 = vld [vmem:[#allocation11 + $0x54c] ss:$24 sps:$4 sm:$0xff]  }
 0x398   :  { %6328 = vmatpush1.bf16.msra.mxu0 %v8683_v18  ;;  %6431 = vmatprep.subr.bf16.mxu1 %v8694_v19  ;;  %v8785_v18 = vld [vmem:[#allocation11 + $0x690] ss:$24 sps:$4 sm:$0xff]   ;;  %v8793_v19 = vld [vmem:[#allocation11 + $0x6c4] ss:$24 sps:$4 sm:$0xff]  }
 0x399   :  { %6329 = vmatprep.subr.bf16.mxu0 %v8691_v20  ;;  %v8755_v20 = vld [vmem:[#allocation11 + $0x548] ss:$24 sps:$4 sm:$0xff]  }
 0x39b   :  { %6432 = vmatpush1.bf16.msra.mxu1 %v8692_v21  ;;  %v8760_v21 = vld [vmem:[#allocation11 + $0x57c] ss:$24 sps:$4 sm:$0xff]  }
 0x39c   :  { %6330 = vmatpush1.bf16.msra.mxu0 %v8689_v22  ;;  %6444 = vmatprep.subr.bf16.mxu1 %v8700_v24  ;;  %v8791_v22 = vld [vmem:[#allocation11 + $0x6c0] ss:$24 sps:$4 sm:$0xff]   ;;  %v8799_v24 = vld [vmem:[#allocation11 + $0x6f4] ss:$24 sps:$4 sm:$0xff]  }
 0x39d   :  { %6331 = vmatprep.subr.bf16.mxu0 %v8697_v25  ;;  %v8758_v25 = vld [vmem:[#allocation11 + $0x578] ss:$24 sps:$4 sm:$0xff]  }
 0x39e   :  { %6434 = vmatmul.mubr.bf16.vlgmr.msra.gmra.mrb[16].mxu1 %v9458_v43 }
 0x39f   :  { %6445 = vmatpush1.bf16.msra.mxu1 %v8698_v26  ;;  %6476 = vmatprep.mubr.bf16.mxu1 %v9464_v51  ;;  %v8763_v26 = vld [vmem:[#allocation11 + $0x5ac] ss:$24 sps:$4 sm:$0xff]  }
 0x3a0   :  { %6332 = vmatpush1.bf16.msra.mxu0 %v8695_v27  ;;  %6446 = vmatprep.subr.bf16.mxu1 %v8706_v28  ;;  %v8797_v27 = vld [vmem:[#allocation11 + $0x6f0] ss:$24 sps:$4 sm:$0xff]   ;;  %v8805_v28 = vld [vmem:[#allocation11 + $0x724] ss:$24 sps:$4 sm:$0xff]  }
 0x3a1   :  { %6333 = vmatprep.subr.bf16.mxu0 %v8703_v30  ;;  %v8761_v30 = vld [vmem:[#allocation11 + $0x5a8] ss:$24 sps:$4 sm:$0xff]  }
 0x3a3   :  { %6447 = vmatpush1.bf16.msra.mxu1 %v8704_v63  ;;  %v8766_v63 = vld [vmem:[#allocation11 + $0x5dc] ss:$24 sps:$4 sm:$0xff]  }
 0x3a4   :  { %6334 = vmatpush1.bf16.msra.mxu0 %v8701_v31  ;;  %6448 = vmatprep.subr.bf16.mxu1 %v8712_v32  ;;  %v8803_v31 = vld [vmem:[#allocation11 + $0x720] ss:$24 sps:$4 sm:$0xff]   ;;  %v8811_v32 = vld [vmem:[#allocation11 + $0x754] ss:$24 sps:$4 sm:$0xff]  }
 0x3a5   :  { %6335 = vmatprep.subr.bf16.mxu0 %v8709_v33  ;;  %v8764_v33 = vld [vmem:[#allocation11 + $0x5d8] ss:$24 sps:$4 sm:$0xff]  }
 0x3a7   :  { %6449 = vmatpush1.bf16.msra.mxu1 %v8710_v34  ;;  %v8772_v34 = vld [vmem:[#allocation11 + $0x60c] ss:$24 sps:$4 sm:$0xff]  }
 0x3a8   :  { %6336 = vmatpush1.bf16.msra.mxu0 %v8707_v35  ;;  %6450 = vmatprep.subr.bf16.mxu1 %v8718_v36  ;;  %v8809_v35 = vld [vmem:[#allocation11 + $0x750] ss:$24 sps:$4 sm:$0xff]   ;;  %v8817_v36 = vld [vmem:[#allocation11 + $0x784] ss:$24 sps:$4 sm:$0xff]  }
 0x3a9   :  { %6337 = vmatprep.subr.bf16.mxu0 %v8715_v37  ;;  %v8770_v37 = vld [vmem:[#allocation11 + $0x608] ss:$24 sps:$4 sm:$0xff]  }
 0x3ab   :  { %6451 = vmatpush1.bf16.msra.mxu1 %v8716_v38  ;;  %v8778_v38 = vld [vmem:[#allocation11 + $0x63c] ss:$24 sps:$4 sm:$0xff]  }
 0x3ac   :  { %6338 = vmatpush1.bf16.msra.mxu0 %v8713_v39  ;;  %6452 = vmatprep.subr.bf16.mxu1 %v8724_v11  ;;  %v8815_v39 = vld [vmem:[#allocation11 + $0x780] ss:$24 sps:$4 sm:$0xff]   ;;  %v8823_v11 = vld [vmem:[#allocation11 + $0x7b4] ss:$24 sps:$4 sm:$0xff]  }
 0x3ad   :  { %6339 = vmatprep.subr.bf16.mxu0 %v8721_v41  ;;  %v8776_v41 = vld [vmem:[#allocation11 + $0x638] ss:$24 sps:$4 sm:$0xff]  }
 0x3af   :  { %6453 = vmatpush1.bf16.msra.mxu1 %v8722_v50  ;;  %v8784_v50 = vld [vmem:[#allocation11 + $0x66c] ss:$24 sps:$4 sm:$0xff]  }
 0x3b0   :  { %6340 = vmatpush1.bf16.msra.mxu0 %v8719_v1  ;;  %6454 = vmatprep.subr.bf16.mxu1 %v8730_v42  ;;  %v8821_v1 = vld [vmem:[#allocation11 + $0x7b0] ss:$24 sps:$4 sm:$0xff]   ;;  %v8829_v42 = vld [vmem:[#allocation11 + $0x7e4] ss:$24 sps:$4 sm:$0xff]  }
 0x3b1   :  { %6341 = vmatprep.subr.bf16.mxu0 %v8727_v17  ;;  %v8782_v17 = vld [vmem:[#allocation11 + $0x668] ss:$24 sps:$4 sm:$0xff]  }
 0x3b3   :  { %6455 = vmatpush1.bf16.msra.mxu1 %v8728_v44  ;;  %v8790_v44 = vld [vmem:[#allocation11 + $0x69c] ss:$24 sps:$4 sm:$0xff]  }
 0x3b4   :  { %6342 = vmatpush1.bf16.msra.mxu0 %v8725_v47  ;;  %6456 = vmatprep.subr.bf16.mxu1 %v8736_v49  ;;  %v8827_v47 = vld [vmem:[#allocation11 + $0x7e0] ss:$24 sps:$4 sm:$0xff]   ;;  %v8835_v49 = vld [vmem:[#allocation11 + $0x814] ss:$24 sps:$4 sm:$0xff]  }
 0x3b5   :  { %6343 = vmatprep.subr.bf16.mxu0 %v8733_v52  ;;  %v8788_v52 = vld [vmem:[#allocation11 + $0x698] ss:$24 sps:$4 sm:$0xff]  }
 0x3b7   :  { %6457 = vmatpush1.bf16.msra.mxu1 %v8734_v57  ;;  %v8796_v57 = vld [vmem:[#allocation11 + $0x6cc] ss:$24 sps:$4 sm:$0xff]  }
 0x3b8   :  { %6344 = vmatpush1.bf16.msra.mxu0 %v8731_v58  ;;  %6458 = vmatprep.subr.bf16.mxu1 %v8742_v61  ;;  %v8833_v58 = vld [vmem:[#allocation11 + $0x810] ss:$24 sps:$4 sm:$0xff]   ;;  %v8841_v61 = vld [vmem:[#allocation11 + $0x844] ss:$24 sps:$4 sm:$0xff]  }
 0x3b9   :  { %6345 = vmatprep.subr.bf16.mxu0 %v8739_v62  ;;  %v8794_v62 = vld [vmem:[#allocation11 + $0x6c8] ss:$24 sps:$4 sm:$0xff]  }
 0x3bb   :  { %6459 = vmatpush1.bf16.msra.mxu1 %v8740_v0  ;;  %v8802_v0 = vld [vmem:[#allocation11 + $0x6fc] ss:$24 sps:$4 sm:$0xff]  }
 0x3bc   :  { %6346 = vmatpush1.bf16.msra.mxu0 %v8737_v2  ;;  %6460 = vmatprep.subr.bf16.mxu1 %v8745_v3  ;;  %v8839_v2 = vld [vmem:[#allocation11 + $0x840] ss:$24 sps:$4 sm:$0xff]   ;;  %v8847_v3 = vld [vmem:[#allocation11 + $0x874] ss:$24 sps:$4 sm:$0xff]  }
 0x3bd   :  { %6358 = vmatprep.subr.bf16.mxu0 %v8769_v5  ;;  %v8800_v5 = vld [vmem:[#allocation11 + $0x6f8] ss:$24 sps:$4 sm:$0xff]  }
 0x3bf   :  { %6348 = vmatmul.mubr.bf16.vlgmr.msra.gmra.mrb[12].mxu0 %v9460_v46  ;;  %6461 = vmatpush1.bf16.msra.mxu1 %v8743_v29  ;;  %v8808_v29 = vld [vmem:[#allocation11 + $0x72c] ss:$24 sps:$4 sm:$0xff]  }
 0x3c0   :  { %6462 = vmatprep.subr.bf16.mxu1 %v8748_v53  ;;  %6359 = vmatpush1.bf16.msra.mxu0 %v8767_v6  ;;  %v8845_v53 = vld [vmem:[#allocation11 + $0x870] ss:$24 sps:$4 sm:$0xff]   ;;  %v8853_v6 = vld [vmem:[#allocation11 + $0x8a4] ss:$24 sps:$4 sm:$0xff]  }
 0x3c1   :  { %6360 = vmatprep.subr.bf16.mxu0 %v8775_v7  ;;  %v8806_v7 = vld [vmem:[#allocation11 + $0x728] ss:$24 sps:$4 sm:$0xff]  }
 0x3c3   :  { %6463 = vmatpush1.bf16.msra.mxu1 %v8746_v54  ;;  %v8814_v54 = vld [vmem:[#allocation11 + $0x75c] ss:$24 sps:$4 sm:$0xff]  }
 0x3c4   :  { %6464 = vmatprep.subr.bf16.mxu1 %v8751_v56  ;;  %6361 = vmatpush1.bf16.msra.mxu0 %v8773_v15  ;;  %v8851_v56 = vld [vmem:[#allocation11 + $0x8a0] ss:$24 sps:$4 sm:$0xff]   ;;  %v8859_v15 = vld [vmem:[#allocation11 + $0x8d4] ss:$24 sps:$4 sm:$0xff]  }
 0x3c5   :  { %6362 = vmatprep.subr.bf16.mxu0 %v8781_v8  ;;  %v8812_v8 = vld [vmem:[#allocation11 + $0x758] ss:$24 sps:$4 sm:$0xff]  }
 0x3c7   :  { %6465 = vmatpush1.bf16.msra.mxu1 %v8749_v59  ;;  %v8820_v59 = vld [vmem:[#allocation11 + $0x78c] ss:$24 sps:$4 sm:$0xff]  }
 0x3c8   :  { %6466 = vmatprep.subr.bf16.mxu1 %v8754_v9  ;;  %6363 = vmatpush1.bf16.msra.mxu0 %v8779_v10  ;;  %v8857_v9 = vld [vmem:[#allocation11 + $0x8d0] ss:$24 sps:$4 sm:$0xff]   ;;  %v8865_v10 = vld [vmem:[#allocation11 + $0x14] ss:$24 sps:$4 sm:$0xff]  }
 0x3c9   :  { %6364 = vmatprep.subr.bf16.mxu0 %v8787_v13  ;;  %v8818_v13 = vld [vmem:[#allocation11 + $0x788] ss:$24 sps:$4 sm:$0xff]  }
 0x3cb   :  { %6467 = vmatpush1.bf16.msra.mxu1 %v8752_v14  ;;  %v8826_v14 = vld [vmem:[#allocation11 + $0x7bc] ss:$24 sps:$4 sm:$0xff]  }
 0x3cc   :  { %6468 = vmatprep.subr.bf16.mxu1 %v8757_v16  ;;  %6365 = vmatpush1.bf16.msra.mxu0 %v8785_v18  ;;  %v8824_v16 = vld [vmem:[#allocation11 + $0x7b8] ss:$24 sps:$4 sm:$0xff]   ;;  %v8832_v18 = vld [vmem:[#allocation11 + $0x7ec] ss:$24 sps:$4 sm:$0xff]  }
 0x3cd   :  { %6366 = vmatprep.subr.bf16.mxu0 %v8793_v19  ;;  %v8830_v19 = vld [vmem:[#allocation11 + $0x7e8] ss:$24 sps:$4 sm:$0xff]  }
 0x3cf   :  { %6469 = vmatpush1.bf16.msra.mxu1 %v8755_v20  ;;  %v8838_v20 = vld [vmem:[#allocation11 + $0x81c] ss:$24 sps:$4 sm:$0xff]  }
 0x3d0   :  { %6470 = vmatprep.subr.bf16.mxu1 %v8760_v21  ;;  %6367 = vmatpush1.bf16.msra.mxu0 %v8791_v22  ;;  %v8836_v21 = vld [vmem:[#allocation11 + $0x818] ss:$24 sps:$4 sm:$0xff]   ;;  %v8844_v22 = vld [vmem:[#allocation11 + $0x84c] ss:$24 sps:$4 sm:$0xff]  }
 0x3d1   :  { %6368 = vmatprep.subr.bf16.mxu0 %v8799_v24  ;;  %v8842_v24 = vld [vmem:[#allocation11 + $0x848] ss:$24 sps:$4 sm:$0xff]  }
 0x3d3   :  { %6471 = vmatpush1.bf16.msra.mxu1 %v8758_v25  ;;  %v8850_v25 = vld [vmem:[#allocation11 + $0x87c] ss:$24 sps:$4 sm:$0xff]  }
 0x3d4   :  { %6472 = vmatprep.subr.bf16.mxu1 %v8763_v26  ;;  %6369 = vmatpush1.bf16.msra.mxu0 %v8797_v27  ;;  %v8848_v26 = vld [vmem:[#allocation11 + $0x878] ss:$24 sps:$4 sm:$0xff]   ;;  %v8856_v27 = vld [vmem:[#allocation11 + $0x8ac] ss:$24 sps:$4 sm:$0xff]  }
 0x3d5   :  { %6370 = vmatprep.subr.bf16.mxu0 %v8805_v28  ;;  %v8854_v28 = vld [vmem:[#allocation11 + $0x8a8] ss:$24 sps:$4 sm:$0xff]  }
 0x3d7   :  { %6473 = vmatpush1.bf16.msra.mxu1 %v8761_v30  ;;  %v8862_v30 = vld [vmem:[#allocation11 + $0x8dc] ss:$24 sps:$4 sm:$0xff]  }
 0x3d8   :  { %6474 = vmatprep.subr.bf16.mxu1 %v8766_v63  ;;  %6371 = vmatpush1.bf16.msra.mxu0 %v8803_v31  ;;  %v8860_v63 = vld [vmem:[#allocation11 + $0x8d8] ss:$24 sps:$4 sm:$0xff]   ;;  %v2632_v31 = vrot.slane %v9446_v4, %v9425_v60 }
 0x3d9   :  { %6372 = vmatprep.subr.bf16.mxu0 %v8811_v32  ;;  %v2636_v32 = vrot.slane %v9446_v4, %v9428_v55 }
 0x3db   :  { %6475 = vmatpush1.bf16.msra.mxu1 %v8764_v33 }
 0x3dc   :  { %6487 = vmatprep.subr.bf16.mxu1 %v8772_v34  ;;  %6373 = vmatpush1.bf16.msra.mxu0 %v8809_v35 }
 0x3dd   :  { %6374 = vmatprep.subr.bf16.mxu0 %v8817_v36 }
 0x3de   :  { %6477 = vmatmul.mubr.bf16.vlgmr.msra.gmra.mrb[16].mxu1 %v9460_v46 }
 0x3df   :  { %6488 = vmatpush1.bf16.msra.mxu1 %v8770_v37 }
 0x3e0   :  { %6489 = vmatprep.subr.bf16.mxu1 %v8778_v38  ;;  %6375 = vmatpush1.bf16.msra.mxu0 %v8815_v39 }
 0x3e1   :  { %6376 = vmatprep.subr.bf16.mxu0 %v8823_v11 }
 0x3e3   :  { %6490 = vmatpush1.bf16.msra.mxu1 %v8776_v41 }
 0x3e4   :  { %6491 = vmatprep.subr.bf16.mxu1 %v8784_v50  ;;  %6377 = vmatpush1.bf16.msra.mxu0 %v8821_v1 }
 0x3e5   :  { %6378 = vmatprep.subr.bf16.mxu0 %v8829_v42 }
 0x3e7   :  { %6492 = vmatpush1.bf16.msra.mxu1 %v8782_v17 }
 0x3e8   :  { %6493 = vmatprep.subr.bf16.mxu1 %v8790_v44  ;;  %6379 = vmatpush1.bf16.msra.mxu0 %v8827_v47 }
 0x3e9   :  { %6380 = vmatprep.subr.bf16.mxu0 %v8835_v49 }
 0x3eb   :  { %6494 = vmatpush1.bf16.msra.mxu1 %v8788_v52 }
 0x3ec   :  { %6495 = vmatprep.subr.bf16.mxu1 %v8796_v57  ;;  %6381 = vmatpush1.bf16.msra.mxu0 %v8833_v58  ;;  %v8863_v57 = vld [vmem:[#allocation11 + $0x10] ss:$24 sps:$4 sm:$0xff]   ;;  %v8868_v58 = vld [vmem:[#allocation11 + $0x44] ss:$24 sps:$4 sm:$0xff]  }
 0x3ed   :  { %6382 = vmatprep.subr.bf16.mxu0 %v8841_v61  ;;  %v8866_v61 = vld [vmem:[#allocation11 + $0x40] ss:$24 sps:$4 sm:$0xff]  }
 0x3ef   :  { %6496 = vmatpush1.bf16.msra.mxu1 %v8794_v62  ;;  %v8871_v62 = vld [vmem:[#allocation11 + $0x74] ss:$24 sps:$4 sm:$0xff]  }
 0x3f0   :  { %6497 = vmatprep.subr.bf16.mxu1 %v8802_v0  ;;  %6383 = vmatpush1.bf16.msra.mxu0 %v8839_v2  ;;  %v8869_v0 = vld [vmem:[#allocation11 + $0x70] ss:$24 sps:$4 sm:$0xff]   ;;  %v8874_v2 = vld [vmem:[#allocation11 + $0xa4] ss:$24 sps:$4 sm:$0xff]  }
 0x3f1   :  { %6384 = vmatprep.subr.bf16.mxu0 %v8847_v3  ;;  %v8872_v3 = vld [vmem:[#allocation11 + $0xa0] ss:$24 sps:$4 sm:$0xff]  }
 0x3f3   :  { %6498 = vmatpush1.bf16.msra.mxu1 %v8800_v5  ;;  %v8877_v5 = vld [vmem:[#allocation11 + $0xd4] ss:$24 sps:$4 sm:$0xff]  }
 0x3f4   :  { %6499 = vmatprep.subr.bf16.mxu1 %v8808_v29  ;;  %6385 = vmatpush1.bf16.msra.mxu0 %v8845_v53  ;;  %v8875_v29 = vld [vmem:[#allocation11 + $0xd0] ss:$24 sps:$4 sm:$0xff]   ;;  %v8880_v53 = vld [vmem:[#allocation11 + $0x104] ss:$24 sps:$4 sm:$0xff]  }
 0x3f5   :  { %6386 = vmatprep.subr.bf16.mxu0 %v8853_v6  ;;  %v8878_v6 = vld [vmem:[#allocation11 + $0x100] ss:$24 sps:$4 sm:$0xff]  }
 0x3f7   :  { %6500 = vmatpush1.bf16.msra.mxu1 %v8806_v7  ;;  %v8883_v7 = vld [vmem:[#allocation11 + $0x134] ss:$24 sps:$4 sm:$0xff]  }
 0x3f8   :  { %6501 = vmatprep.subr.bf16.mxu1 %v8814_v54  ;;  %6387 = vmatpush1.bf16.msra.mxu0 %v8851_v56  ;;  %v8886_v54 = vld [vmem:[#allocation11 + $0x164] ss:$24 sps:$4 sm:$0xff]   ;;  %v8884_v56 = vld [vmem:[#allocation11 + $0x160] ss:$24 sps:$4 sm:$0xff]  }
 0x3f9   :  { %6388 = vmatprep.subr.bf16.mxu0 %v8859_v15  ;;  %v8889_v15 = vld [vmem:[#allocation11 + $0x194] ss:$24 sps:$4 sm:$0xff]  }
 0x3fb   :  { %6502 = vmatpush1.bf16.msra.mxu1 %v8812_v8  ;;  %v8887_v8 = vld [vmem:[#allocation11 + $0x190] ss:$24 sps:$4 sm:$0xff]  }
 0x3fc   :  { %6503 = vmatprep.subr.bf16.mxu1 %v8820_v59  ;;  %6389 = vmatpush1.bf16.msra.mxu0 %v8857_v9  ;;  %v8892_v59 = vld [vmem:[#allocation11 + $0x1c4] ss:$24 sps:$4 sm:$0xff]   ;;  %v8890_v9 = vld [vmem:[#allocation11 + $0x1c0] ss:$24 sps:$4 sm:$0xff]  }
 0x3fd   :  { %6530 = vmatprep.subr.bf16.mxu0 %v8865_v10  ;;  %v8895_v10 = vld [vmem:[#allocation11 + $0x1f4] ss:$24 sps:$4 sm:$0xff]  }
 0x3ff   :  { %6504 = vmatpush1.bf16.msra.mxu1 %v8818_v13  ;;  %v8893_v13 = vld [vmem:[#allocation11 + $0x1f0] ss:$24 sps:$4 sm:$0xff]  }
 0x400   :  { %6505 = vmatprep.subr.bf16.mxu1 %v8826_v14  ;;  %v8898_v14 = vld [vmem:[#allocation11 + $0x224] ss:$24 sps:$4 sm:$0xff]  }
 0x403   :  { %6506 = vmatpush1.bf16.msra.mxu1 %v8824_v16  ;;  %v8896_v16 = vld [vmem:[#allocation11 + $0x220] ss:$24 sps:$4 sm:$0xff]  }
 0x404   :  { %6507 = vmatprep.subr.bf16.mxu1 %v8832_v18  ;;  %v8901_v18 = vld [vmem:[#allocation11 + $0x254] ss:$24 sps:$4 sm:$0xff]  }
 0x407   :  { %6508 = vmatpush1.bf16.msra.mxu1 %v8830_v19  ;;  %v8899_v19 = vld [vmem:[#allocation11 + $0x250] ss:$24 sps:$4 sm:$0xff]  }
 0x408   :  { %6509 = vmatprep.subr.bf16.mxu1 %v8838_v20  ;;  %v8904_v20 = vld [vmem:[#allocation11 + $0x284] ss:$24 sps:$4 sm:$0xff]  }
 0x40b   :  { %6510 = vmatpush1.bf16.msra.mxu1 %v8836_v21  ;;  %v8902_v21 = vld [vmem:[#allocation11 + $0x280] ss:$24 sps:$4 sm:$0xff]  }
 0x40c   :  { %6511 = vmatprep.subr.bf16.mxu1 %v8844_v22  ;;  %v8907_v22 = vld [vmem:[#allocation11 + $0x2b4] ss:$24 sps:$4 sm:$0xff]  }
 0x40f   :  { %6512 = vmatpush1.bf16.msra.mxu1 %v8842_v24  ;;  %v8905_v24 = vld [vmem:[#allocation11 + $0x2b0] ss:$24 sps:$4 sm:$0xff]  }
 0x410   :  { %6513 = vmatprep.subr.bf16.mxu1 %v8850_v25  ;;  %v8910_v25 = vld [vmem:[#allocation11 + $0x2e4] ss:$24 sps:$4 sm:$0xff]  }
 0x413   :  { %6514 = vmatpush1.bf16.msra.mxu1 %v8848_v26  ;;  %v8908_v26 = vld [vmem:[#allocation11 + $0x2e0] ss:$24 sps:$4 sm:$0xff]  }
 0x414   :  { %6515 = vmatprep.subr.bf16.mxu1 %v8856_v27  ;;  %v8913_v27 = vld [vmem:[#allocation11 + $0x314] ss:$24 sps:$4 sm:$0xff]  }
 0x417   :  { %6516 = vmatpush1.bf16.msra.mxu1 %v8854_v28  ;;  %v8911_v28 = vld [vmem:[#allocation11 + $0x310] ss:$24 sps:$4 sm:$0xff]  }
 0x418   :  { %6517 = vmatprep.subr.bf16.mxu1 %v8862_v30  ;;  %v8916_v30 = vld [vmem:[#allocation11 + $0x344] ss:$24 sps:$4 sm:$0xff]  }
 0x41b   :  { %6518 = vmatpush1.bf16.msra.mxu1 %v8860_v63  ;;  %v8914_v63 = vld [vmem:[#allocation11 + $0x340] ss:$24 sps:$4 sm:$0xff]  }
 0x431   :  { %v4461_v33 = vpop.f32.mrb[12].mxu1 }
 0x432   :  { %v7615_v34 = vadd.f32 %v4461_v33, %v2632_v31  ;;  %v4463_v35 = vpop.f32.mrb[13].mxu1  ;;  %v8922_v33 = vld [vmem:[#allocation11 + $0x3a4] ss:$24 sps:$4 sm:$0xff]  }
 0x433   :  { %v7616_v36 = vadd.f32 %v4463_v35, %v2636_v32  ;;  %v4465_v37 = vpop.f32.mrb[14].mxu1  ;;  %v8925_v35 = vld [vmem:[#allocation11 + $0x3d4] ss:$24 sps:$4 sm:$0xff]  }
 0x434   :  { %v4486_v38 = vmul.f32 0.01, %v7615_v34  ;;  %v7617_v39 = vadd.f32 %v4465_v37, %v2632_v31  ;;  %v4467_v11 = vpop.f32.mrb[15].mxu1  ;;  %vm4474_vm4 = vcmp.gt.f32.partialorder %v7615_v34, 0.0  ;;  %v8919_v31 = vld [vmem:[#allocation11 + $0x374] ss:$24 sps:$4 sm:$0xff]  }
 0x435   :  { %v4487_v41 = vmul.f32 0.01, %v7616_v36  ;;  %v7618_v50 = vadd.f32 %v4467_v11, %v2636_v32  ;;  %vm4475_vm5 = vcmp.gt.f32.partialorder %v7616_v36, 0.0  ;;  %v8917_v32 = vld [vmem:[#allocation11 + $0x370] ss:$24 sps:$4 sm:$0xff]  }
 0x436   :  { %vm4480_vm6 = vcmp.gt.f32.partialorder %v7617_v39, 0.0  ;;  %v4492_v1 = vmul.f32 0.01, %v7617_v39  ;;  %v4498_v17 = vsel %vm4474_vm4, %v7615_v34, %v4486_v38  ;;  %v8920_v34 = vld [vmem:[#allocation11 + $0x3a0] ss:$24 sps:$4 sm:$0xff]  }
 0x437   :  { %vm4481_vm7 = vcmp.gt.f32.partialorder %v7618_v50, 0.0  ;;  %v4493_v42 = vmul.f32 0.01, %v7618_v50  ;;  %v4499_v4 = vsel %vm4475_vm5, %v7616_v36, %v4487_v41  ;;  %v8923_v36 = vld [vmem:[#allocation11 + $0x3d0] ss:$24 sps:$4 sm:$0xff]  }
 0x438   :  { %v4504_v44 = vsel %vm4480_vm6, %v7617_v39, %v4492_v1  ;;  %v8928_v37 = vld [vmem:[#allocation11 + $0x404] ss:$24 sps:$4 sm:$0xff]   ;;  %v8931_v38 = vld [vmem:[#allocation11 + $0x434] ss:$24 sps:$4 sm:$0xff]   ;;  %v8932_v11 = vld [vmem:[#allocation11 + $0x460] ss:$24 sps:$4 sm:$0xff]  }
 0x439   :  { %v9478_v47 = vpack.c.bf16 %v4504_v44, %v4498_v17  ;;  %v4505_v49 = vsel %vm4481_vm7, %v7618_v50, %v4493_v42  ;;  %v8934_v39 = vld [vmem:[#allocation11 + $0x464] ss:$24 sps:$4 sm:$0xff]   ;;  %v8937_v41 = vld [vmem:[#allocation11 + $0x494] ss:$24 sps:$4 sm:$0xff]   ;;  %v8935_v50 = vld [vmem:[#allocation11 + $0x490] ss:$24 sps:$4 sm:$0xff]  }
 0x43a   :  { %v9480_v52 = vpack.c.bf16 %v4505_v49, %v4499_v4  ;;  %v8940_v1 = vld [vmem:[#allocation11 + $0x4c4] ss:$24 sps:$4 sm:$0xff]   ;;  %v8938_v42 = vld [vmem:[#allocation11 + $0x4c0] ss:$24 sps:$4 sm:$0xff]   ;;  %v8943_v17 = vld [vmem:[#allocation11 + $0x4f4] ss:$24 sps:$4 sm:$0xff]  }
 0x43b   :  { %v8941_v44 = vld [vmem:[#allocation11 + $0x4f0] ss:$24 sps:$4 sm:$0xff]   ;;  %v8946_v4 = vld [vmem:[#allocation11 + $0x524] ss:$24 sps:$4 sm:$0xff]   ;;  %v8944_v49 = vld [vmem:[#allocation11 + $0x520] ss:$24 sps:$4 sm:$0xff]  }
 0x43c   :  { %6390 = vmatprep.mubr.bf16.mxu0 %v9480_v52  ;;  %6519 = vmatprep.mubr.bf16.mxu1 %v9480_v52 }
 0x43d   :  { %6391 = vmatmul.mubr.bf16.vlgmr.msra.gmra.mrb[12].mxu0 %v9478_v47  ;;  %6520 = vmatmul.mubr.bf16.vlgmr.msra.gmra.mrb[16].mxu1 %v9478_v47 }
 0x43e   :  { %6531 = vmatpush1.bf16.msra.mxu0 %v8863_v57  ;;  %6562 = vmatprep.mubr.bf16.mxu0 %v9462_v48  ;;  %v8881_v48 = vld [vmem:[#allocation11 + $0x130] ss:$24 sps:$4 sm:$0xff]   ;;  %v8949_v57 = vld [vmem:[#allocation11 + $0x554] ss:$24 sps:$4 sm:$0xff]  }
 0x43f   :  { %6532 = vmatprep.subr.bf16.mxu0 %v8868_v58  ;;  %v8947_v58 = vld [vmem:[#allocation11 + $0x550] ss:$24 sps:$4 sm:$0xff]  }
 0x442   :  { %6533 = vmatpush1.bf16.msra.mxu0 %v8866_v61  ;;  %v8952_v61 = vld [vmem:[#allocation11 + $0x584] ss:$24 sps:$4 sm:$0xff]  }
 0x443   :  { %6534 = vmatprep.subr.bf16.mxu0 %v8871_v62  ;;  %v8950_v62 = vld [vmem:[#allocation11 + $0x580] ss:$24 sps:$4 sm:$0xff]  }
 0x446   :  { %6535 = vmatpush1.bf16.msra.mxu0 %v8869_v0  ;;  %v8955_v0 = vld [vmem:[#allocation11 + $0x5b4] ss:$24 sps:$4 sm:$0xff]  }
 0x447   :  { %6536 = vmatprep.subr.bf16.mxu0 %v8874_v2  ;;  %v8953_v2 = vld [vmem:[#allocation11 + $0x5b0] ss:$24 sps:$4 sm:$0xff]  }
 0x44a   :  { %6537 = vmatpush1.bf16.msra.mxu0 %v8872_v3  ;;  %v8958_v3 = vld [vmem:[#allocation11 + $0x5e4] ss:$24 sps:$4 sm:$0xff]  }
 0x44b   :  { %6538 = vmatprep.subr.bf16.mxu0 %v8877_v5  ;;  %v8956_v5 = vld [vmem:[#allocation11 + $0x5e0] ss:$24 sps:$4 sm:$0xff]  }
 0x44e   :  { %6539 = vmatpush1.bf16.msra.mxu0 %v8875_v29  ;;  %v8961_v29 = vld [vmem:[#allocation11 + $0x614] ss:$24 sps:$4 sm:$0xff]  }
 0x44f   :  { %6540 = vmatprep.subr.bf16.mxu0 %v8880_v53  ;;  %v8959_v53 = vld [vmem:[#allocation11 + $0x610] ss:$24 sps:$4 sm:$0xff]  }
 0x452   :  { %6541 = vmatpush1.bf16.msra.mxu0 %v8878_v6  ;;  %v8964_v6 = vld [vmem:[#allocation11 + $0x644] ss:$24 sps:$4 sm:$0xff]  }
 0x453   :  { %6542 = vmatprep.subr.bf16.mxu0 %v8883_v7  ;;  %v8962_v7 = vld [vmem:[#allocation11 + $0x640] ss:$24 sps:$4 sm:$0xff]  }
 0x456   :  { %6543 = vmatpush1.bf16.msra.mxu0 %v8881_v48  ;;  %v8967_v48 = vld [vmem:[#allocation11 + $0x674] ss:$24 sps:$4 sm:$0xff]  }
 0x457   :  { %6544 = vmatprep.subr.bf16.mxu0 %v8886_v54  ;;  %v8965_v54 = vld [vmem:[#allocation11 + $0x670] ss:$24 sps:$4 sm:$0xff]  }
 0x45a   :  { %6545 = vmatpush1.bf16.msra.mxu0 %v8884_v56  ;;  %v8970_v56 = vld [vmem:[#allocation11 + $0x6a4] ss:$24 sps:$4 sm:$0xff]  }
 0x45b   :  { %6546 = vmatprep.subr.bf16.mxu0 %v8889_v15  ;;  %v8968_v15 = vld [vmem:[#allocation11 + $0x6a0] ss:$24 sps:$4 sm:$0xff]  }
 0x45e   :  { %6547 = vmatpush1.bf16.msra.mxu0 %v8887_v8  ;;  %v8973_v8 = vld [vmem:[#allocation11 + $0x6d4] ss:$24 sps:$4 sm:$0xff]  }
 0x45f   :  { %6548 = vmatprep.subr.bf16.mxu0 %v8892_v59  ;;  %v8971_v59 = vld [vmem:[#allocation11 + $0x6d0] ss:$24 sps:$4 sm:$0xff]  }
 0x462   :  { %6549 = vmatpush1.bf16.msra.mxu0 %v8890_v9  ;;  %v8976_v9 = vld [vmem:[#allocation11 + $0x704] ss:$24 sps:$4 sm:$0xff]  }
 0x463   :  { %6550 = vmatprep.subr.bf16.mxu0 %v8895_v10  ;;  %v8979_v10 = vld [vmem:[#allocation11 + $0x734] ss:$24 sps:$4 sm:$0xff]  }
 0x466   :  { %6551 = vmatpush1.bf16.msra.mxu0 %v8893_v13  ;;  %v8982_v13 = vld [vmem:[#allocation11 + $0x764] ss:$24 sps:$4 sm:$0xff]  }
 0x467   :  { %6552 = vmatprep.subr.bf16.mxu0 %v8898_v14  ;;  %v8980_v14 = vld [vmem:[#allocation11 + $0x760] ss:$24 sps:$4 sm:$0xff]  }
 0x46a   :  { %6553 = vmatpush1.bf16.msra.mxu0 %v8896_v16  ;;  %v8985_v16 = vld [vmem:[#allocation11 + $0x794] ss:$24 sps:$4 sm:$0xff]  }
 0x46b   :  { %6554 = vmatprep.subr.bf16.mxu0 %v8901_v18  ;;  %v8983_v18 = vld [vmem:[#allocation11 + $0x790] ss:$24 sps:$4 sm:$0xff]  }
 0x46e   :  { %6555 = vmatpush1.bf16.msra.mxu0 %v8899_v19  ;;  %v8988_v19 = vld [vmem:[#allocation11 + $0x7c4] ss:$24 sps:$4 sm:$0xff]  }
 0x46f   :  { %6556 = vmatprep.subr.bf16.mxu0 %v8904_v20  ;;  %v8986_v20 = vld [vmem:[#allocation11 + $0x7c0] ss:$24 sps:$4 sm:$0xff]  }
 0x472   :  { %6557 = vmatpush1.bf16.msra.mxu0 %v8902_v21  ;;  %v8991_v21 = vld [vmem:[#allocation11 + $0x7f4] ss:$24 sps:$4 sm:$0xff]  }
 0x473   :  { %6558 = vmatprep.subr.bf16.mxu0 %v8907_v22  ;;  %v8989_v22 = vld [vmem:[#allocation11 + $0x7f0] ss:$24 sps:$4 sm:$0xff]  }
 0x476   :  { %6559 = vmatpush1.bf16.msra.mxu0 %v8905_v24  ;;  %v8994_v24 = vld [vmem:[#allocation11 + $0x824] ss:$24 sps:$4 sm:$0xff]  }
 0x477   :  { %6560 = vmatprep.subr.bf16.mxu0 %v8910_v25  ;;  %v8992_v25 = vld [vmem:[#allocation11 + $0x820] ss:$24 sps:$4 sm:$0xff]  }
 0x47a   :  { %6561 = vmatpush1.bf16.msra.mxu0 %v8908_v26  ;;  %v8997_v26 = vld [vmem:[#allocation11 + $0x854] ss:$24 sps:$4 sm:$0xff]  }
 0x47b   :  { %6573 = vmatprep.subr.bf16.mxu0 %v8913_v27  ;;  %v8995_v27 = vld [vmem:[#allocation11 + $0x850] ss:$24 sps:$4 sm:$0xff]  }
 0x47d   :  { %6563 = vmatmul.mubr.bf16.vlgmr.msra.gmra.mrb[16].mxu0 %v9458_v43  ;;  %v8926_v43 = vld [vmem:[#allocation11 + $0x400] ss:$24 sps:$4 sm:$0xff]  }
 0x47e   :  { %6574 = vmatpush1.bf16.msra.mxu0 %v8911_v28  ;;  %6605 = vmatprep.mubr.bf16.mxu0 %v9464_v51  ;;  %v8929_v51 = vld [vmem:[#allocation11 + $0x430] ss:$24 sps:$4 sm:$0xff]   ;;  %v9000_v28 = vld [vmem:[#allocation11 + $0x884] ss:$24 sps:$4 sm:$0xff]  }
 0x47f   :  { %6575 = vmatprep.subr.bf16.mxu0 %v8916_v30  ;;  %v8998_v30 = vld [vmem:[#allocation11 + $0x880] ss:$24 sps:$4 sm:$0xff]  }
 0x482   :  { %6576 = vmatpush1.bf16.msra.mxu0 %v8914_v63  ;;  %v9003_v63 = vld [vmem:[#allocation11 + $0x8b4] ss:$24 sps:$4 sm:$0xff]  }
 0x483   :  { %6577 = vmatprep.subr.bf16.mxu0 %v8919_v31  ;;  %v9001_v31 = vld [vmem:[#allocation11 + $0x8b0] ss:$24 sps:$4 sm:$0xff]  }
 0x486   :  { %6578 = vmatpush1.bf16.msra.mxu0 %v8917_v32  ;;  %v9006_v32 = vld [vmem:[#allocation11 + $0x8e4] ss:$24 sps:$4 sm:$0xff]  }
 0x487   :  { %6579 = vmatprep.subr.bf16.mxu0 %v8922_v33  ;;  %v9004_v33 = vld [vmem:[#allocation11 + $0x8e0] ss:$24 sps:$4 sm:$0xff]  }
 0x48a   :  { %6580 = vmatpush1.bf16.msra.mxu0 %v8920_v34  ;;  %v4800_v34 = vld [vmem:[#allocation13] sm:$0x3f] }
 0x48b   :  { %6581 = vmatprep.subr.bf16.mxu0 %v8925_v35  ;;  %v4805_v35 = vrot.slane %v4800_v34, %v9385_v45 }
 0x48e   :  { %6582 = vmatpush1.bf16.msra.mxu0 %v8923_v36  ;;  %v4813_v36 = vrot.slane %v4800_v34, %v9407_v12 }
 0x48f   :  { %6583 = vmatprep.subr.bf16.mxu0 %v8928_v37  ;;  %v4809_v37 = vrot.slane %v4800_v34, %v9388_v23 }
 0x492   :  { %6584 = vmatpush1.bf16.msra.mxu0 %v8926_v43  ;;  %v4817_v43 = vrot.slane %v4800_v34, %v9410_v40 }
 0x493   :  { %6585 = vmatprep.subr.bf16.mxu0 %v8931_v38 }
 0x496   :  { %6586 = vmatpush1.bf16.msra.mxu0 %v8929_v51 }
 0x497   :  { %6587 = vmatprep.subr.bf16.mxu0 %v8934_v39 }
 0x49a   :  { %6588 = vmatpush1.bf16.msra.mxu0 %v8932_v11 }
 0x49b   :  { %6589 = vmatprep.subr.bf16.mxu0 %v8937_v41 }
 0x49e   :  { %6590 = vmatpush1.bf16.msra.mxu0 %v8935_v50 }
 0x49f   :  { %6591 = vmatprep.subr.bf16.mxu0 %v8940_v1 }
 0x4a2   :  { %6592 = vmatpush1.bf16.msra.mxu0 %v8938_v42 }
 0x4a3   :  { %6593 = vmatprep.subr.bf16.mxu0 %v8943_v17 }
 0x4a6   :  { %6594 = vmatpush1.bf16.msra.mxu0 %v8941_v44 }
 0x4a7   :  { %6595 = vmatprep.subr.bf16.mxu0 %v8946_v4 }
 0x4aa   :  { %6596 = vmatpush1.bf16.msra.mxu0 %v8944_v49 }
 0x4ab   :  { %6597 = vmatprep.subr.bf16.mxu0 %v8949_v57 }
 0x4ae   :  { %6598 = vmatpush1.bf16.msra.mxu0 %v8947_v58 }
 0x4af   :  { %6599 = vmatprep.subr.bf16.mxu0 %v8952_v61 }
 0x4b2   :  { %6600 = vmatpush1.bf16.msra.mxu0 %v8950_v62 }
 0x4b3   :  { %6601 = vmatprep.subr.bf16.mxu0 %v8955_v0 }
 0x4b6   :  { %6602 = vmatpush1.bf16.msra.mxu0 %v8953_v2 }
 0x4b7   :  { %6603 = vmatprep.subr.bf16.mxu0 %v8958_v3 }
 0x4ba   :  { %6604 = vmatpush1.bf16.msra.mxu0 %v8956_v5 }
 0x4bb   :  { %6616 = vmatprep.subr.bf16.mxu0 %v8961_v29 }
 0x4bd   :  { %6606 = vmatmul.mubr.bf16.vlgmr.msra.gmra.mrb[16].mxu0 %v9460_v46  ;;  %v8974_v46 = vld [vmem:[#allocation11 + $0x700] ss:$24 sps:$4 sm:$0xff]  }
 0x4be   :  { %6617 = vmatpush1.bf16.msra.mxu0 %v8959_v53  ;;  %6648 = vmatprep.mubr.bf16.mxu0 %v9480_v52  ;;  %v8977_v52 = vld [vmem:[#allocation11 + $0x730] ss:$24 sps:$4 sm:$0xff]  }
 0x4bf   :  { %6618 = vmatprep.subr.bf16.mxu0 %v8964_v6 }
 0x4c2   :  { %6619 = vmatpush1.bf16.msra.mxu0 %v8962_v7 }
 0x4c3   :  { %6620 = vmatprep.subr.bf16.mxu0 %v8967_v48 }
 0x4c6   :  { %6621 = vmatpush1.bf16.msra.mxu0 %v8965_v54 }
 0x4c7   :  { %6622 = vmatprep.subr.bf16.mxu0 %v8970_v56 }
 0x4ca   :  { %6623 = vmatpush1.bf16.msra.mxu0 %v8968_v15  ;;  %v4821_v15 = vrot.slane %v4800_v34, %v9425_v60 }
 0x4cb   :  { %6624 = vmatprep.subr.bf16.mxu0 %v8973_v8  ;;  %v4825_v8 = vrot.slane %v4800_v34, %v9428_v55 }
 0x4ce   :  { %6625 = vmatpush1.bf16.msra.mxu0 %v8971_v59 }
 0x4cf   :  { %6626 = vmatprep.subr.bf16.mxu0 %v8976_v9 }
 0x4d2   :  { %6627 = vmatpush1.bf16.msra.mxu0 %v8974_v46 }
 0x4d3   :  { %6628 = vmatprep.subr.bf16.mxu0 %v8979_v10 }
 0x4d6   :  { %6629 = vmatpush1.bf16.msra.mxu0 %v8977_v52 }
 0x4d7   :  { %6630 = vmatprep.subr.bf16.mxu0 %v8982_v13 }
 0x4da   :  { %6631 = vmatpush1.bf16.msra.mxu0 %v8980_v14 }
 0x4db   :  { %6632 = vmatprep.subr.bf16.mxu0 %v8985_v16 }
 0x4de   :  { %6633 = vmatpush1.bf16.msra.mxu0 %v8983_v18 }
 0x4df   :  { %6634 = vmatprep.subr.bf16.mxu0 %v8988_v19 }
 0x4e2   :  { %6635 = vmatpush1.bf16.msra.mxu0 %v8986_v20 }
 0x4e3   :  { %6636 = vmatprep.subr.bf16.mxu0 %v8991_v21 }
 0x4e6   :  { %6637 = vmatpush1.bf16.msra.mxu0 %v8989_v22 }
 0x4e7   :  { %6638 = vmatprep.subr.bf16.mxu0 %v8994_v24 }
 0x4ea   :  { %6639 = vmatpush1.bf16.msra.mxu0 %v8992_v25 }
 0x4eb   :  { %6640 = vmatprep.subr.bf16.mxu0 %v8997_v26 }
 0x4ee   :  { %6641 = vmatpush1.bf16.msra.mxu0 %v8995_v27 }
 0x4ef   :  { %6642 = vmatprep.subr.bf16.mxu0 %v9000_v28 }
 0x4f2   :  { %6643 = vmatpush1.bf16.msra.mxu0 %v8998_v30 }
 0x4f3   :  { %6644 = vmatprep.subr.bf16.mxu0 %v9003_v63 }
 0x4f6   :  { %6645 = vmatpush1.bf16.msra.mxu0 %v9001_v31 }
 0x4f7   :  { %6646 = vmatprep.subr.bf16.mxu0 %v9006_v32 }
 0x4fa   :  { %6647 = vmatpush1.bf16.msra.mxu0 %v9004_v33 }
 0x4fd   :  { %6649 = vmatmul.mubr.bf16.vlgmr.msra.gmra.mrb[16].mxu0 %v9478_v47 }
 0x510   :  { %v6392_v38 = vpop.f32.mrb[12].mxu0  ;;  %v6521_v51 = vpop.f32.mrb[16].mxu1 }
 0x511   :  { %v7619_v39 = vadd.f32 %v6392_v38, %v4805_v35  ;;  %v7623_v11 = vadd.f32 %v6521_v51, %v4813_v36  ;;  %v6394_v41 = vpop.f32.mrb[13].mxu0  ;;  %v6523_v50 = vpop.f32.mrb[17].mxu1 }
 0x512   :  { %v7620_v1 = vadd.f32 %v6394_v41, %v4809_v37  ;;  %v7624_v42 = vadd.f32 %v6523_v50, %v4817_v43  ;;  %v6396_v17 = vpop.f32.mrb[14].mxu0  ;;  %v6525_v44 = vpop.f32.mrb[18].mxu1 }
 0x513   :  { %vm6659_vm8 = vcmp.gt.f32.partialorder %v7619_v39, 0.0  ;;  %v6671_v47 = vmul.f32 0.01, %v7619_v39  ;;  %vm6661_vm9 = vcmp.gt.f32.partialorder %v7623_v11, 0.0  ;;  %v6673_v45 = vmul.f32 0.01, %v7623_v11 }
 0x514   :  { %vm6660_vm10 = vcmp.gt.f32.partialorder %v7620_v1, 0.0  ;;  %v6672_v12 = vmul.f32 0.01, %v7620_v1  ;;  %vm6662_vm11 = vcmp.gt.f32.partialorder %v7624_v42, 0.0  ;;  %v6674_v23 = vmul.f32 0.01, %v7624_v42 }
 0x515   :  { %v6683_v4 = vsel %vm6659_vm8, %v7619_v39, %v6671_v47  ;;  %v6685_v40 = vsel %vm6661_vm9, %v7623_v11, %v6673_v45  ;;  %v7621_v49 = vadd.f32 %v6396_v17, %v4805_v35  ;;  %v7625_v57 = vadd.f32 %v6525_v44, %v4813_v36  ;;  %v6398_v58 = vpop.f32.mrb[15].mxu0  ;;  %v6527_v61 = vpop.f32.mrb[19].mxu1 }
 0x516   :  { %6695 = vst [vmem:[#allocation14] sm:$0xff] %v6683_v4  ;;  %6697 = vst [vmem:[#allocation14 + $0x10] sm:$0xff] %v6685_v40  ;;  %v6684_v62 = vsel %vm6660_vm10, %v7620_v1, %v6672_v12  ;;  %v6686_v0 = vsel %vm6662_vm11, %v7624_v42, %v6674_v23  ;;  %v7622_v2 = vadd.f32 %v6398_v58, %v4809_v37 }
 0x517   :  { %v7626_v3 = vadd.f32 %v6527_v61, %v4817_v43  ;;  %6696 = vst [vmem:[#allocation14 + $0x8] sm:$0xff] %v6684_v62  ;;  %6698 = vst [vmem:[#allocation14 + $0x18] sm:$0xff] %v6686_v0  ;;  %vm6665_vm12 = vcmp.gt.f32.partialorder %v7621_v49, 0.0  ;;  %v6677_v5 = vmul.f32 0.01, %v7621_v49  ;;  %vm6667_vm13 = vcmp.gt.f32.partialorder %v7625_v57, 0.0 }
 0x518   :  { %v6679_v29 = vmul.f32 0.01, %v7625_v57  ;;  %vm6666_vm14 = vcmp.gt.f32.partialorder %v7622_v2, 0.0  ;;  %v6678_v53 = vmul.f32 0.01, %v7622_v2 }
 0x519   :  { %vm6668_vm15 = vcmp.gt.f32.partialorder %v7626_v3, 0.0  ;;  %v6680_v6 = vmul.f32 0.01, %v7626_v3  ;;  %v6689_v7 = vsel %vm6665_vm12, %v7621_v49, %v6677_v5 }
 0x51a   :  { %v6691_v48 = vsel %vm6667_vm13, %v7625_v57, %v6679_v29  ;;  %6701 = vst [vmem:[#allocation14 + $0x30] sm:$0xff] %v6689_v7  ;;  %v6690_v54 = vsel %vm6666_vm14, %v7622_v2, %v6678_v53 }
 0x51b   :  { %6703 = vst [vmem:[#allocation14 + $0x40] sm:$0xff] %v6691_v48  ;;  %v6692_v56 = vsel %vm6668_vm15, %v7626_v3, %v6680_v6  ;;  %6702 = vst [vmem:[#allocation14 + $0x38] sm:$0xff] %v6690_v54 }
 0x51c   :  { %6704 = vst [vmem:[#allocation14 + $0x48] sm:$0xff] %v6692_v56 }
 0x5d0   :  { %v6650_v59 = vpop.f32.mrb[16].mxu0 }
 0x5d1   :  { %v7627_v9 = vadd.f32 %v6650_v59, %v4821_v15  ;;  %v6652_v46 = vpop.f32.mrb[17].mxu0 }
 0x5d2   :  { %v7628_v10 = vadd.f32 %v6652_v46, %v4825_v8  ;;  %v6654_v52 = vpop.f32.mrb[18].mxu0 }
 0x5d3   :  { %vm6663_vm0 = vcmp.gt.f32.partialorder %v7627_v9, 0.0  ;;  %v6675_v13 = vmul.f32 0.01, %v7627_v9  ;;  %v7629_v14 = vadd.f32 %v6654_v52, %v4821_v15  ;;  %v6656_v16 = vpop.f32.mrb[19].mxu0 }
 0x5d4   :  { %vm6664_vm1 = vcmp.gt.f32.partialorder %v7628_v10, 0.0  ;;  %v6676_v18 = vmul.f32 0.01, %v7628_v10  ;;  %v7630_v19 = vadd.f32 %v6656_v16, %v4825_v8 }
 0x5d5   :  { %v6687_v20 = vsel %vm6663_vm0, %v7627_v9, %v6675_v13  ;;  %vm6669_vm2 = vcmp.gt.f32.partialorder %v7629_v14, 0.0  ;;  %v6681_v21 = vmul.f32 0.01, %v7629_v14 }
 0x5d6   :  { %6699 = vst [vmem:[#allocation14 + $0x20] sm:$0xff] %v6687_v20  ;;  %v6688_v60 = vsel %vm6664_vm1, %v7628_v10, %v6676_v18  ;;  %vm6670_vm3 = vcmp.gt.f32.partialorder %v7630_v19, 0.0  ;;  %v6682_v55 = vmul.f32 0.01, %v7630_v19 }
 0x5d7   :  { %6700 = vst [vmem:[#allocation14 + $0x28] sm:$0xff] %v6688_v60  ;;  %v6693_v22 = vsel %vm6669_vm2, %v7629_v14, %v6681_v21 }
 0x5d8   :  { %6705 = vst [vmem:[#allocation14 + $0x50] sm:$0xff] %v6693_v22  ;;  %v6694_v24 = vsel %vm6670_vm3, %v7630_v19, %v6682_v55 }
 0x5d9   :  { %6706 = vst [vmem:[#allocation14 + $0x58] sm:$0xff] %v6694_v24 }
 0x5da   :  { %9173 = shalt.err (!%p9170_p4)
}
 0x5db   :  { %s9174_s16 = scalar_lea.hbm %s9520_s7, 1536 }
 0x5dc   :  { %p9175_p5 = scmp.ne.s32.totalorder %s9520_s7, %s9174_s16  ;;  %p9178_p6 = scmp.lt.u32.totalorder %s9174_s16, %s9520_s7 }
 0x5de   :  { %p9180_p7 = pnand %p9178_p6, %p9175_p5 }
 0x5e0   :  { %9183 = shalt.err (!%p9180_p7)
}
 0x5e1   :  { %6718 = dma.vmem_to_hbm [thread:$0]  %s6713_s14, 1536, %s9520_s7, [#allocation4], %s9200_s5, %s9200_s5, %s9201_s11  }
 0x5e2   :  { %9192 = dma.done.wait [#allocation4], 1536  }
 0x5e3   :  { %9193 = vsyncadd [#allocation4], 4294965760 }
 0x5e4   :  { %6722 = vsyncpa [#allocation3], 1 }
 0x5e5   :  { %6723 = vsyncpa [#allocation6], 1 }
 0x5e6   :  { %6724 = vsyncpa [#allocation9], 1 }
 0x5e7   :  { %6725 = vsyncpa [#allocation12], 1 }
 0x5e8   :  { %6726 = vsyncpa [#allocation4], 1 }

</bundles_post_ra>
